<compile_context>
chip_gen: v7x
topology: tpu7x:2x2x1
jax: 0.10.0
libtpu: 0.0.40
codegen_flags: <defaults>
</compile_context>

<pallas_src>
import math
import numpy as np
import jax
import jax.numpy as jnp
from jax.experimental import pallas as pl
from jax.experimental.pallas import tpu as pltpu

# ----------------------- small-but-consistent GLM configuration -----------------------
SEQ = 8                         # seq_len
BATCH = 2
HIDDEN = 256                    # hidden_size
NUM_HEADS = 2
HEAD_DIM = HIDDEN // NUM_HEADS  # hidden_size_per_attention_head (=128, lane aligned)
INNER = 4 * HIDDEN              # inner_hidden_size (mlp_ratio = 4)
NUM_LAYERS = 28
LAYER_ID = 1
LN_EPS = 1e-5
MAX_SEQ_LEN = 512
ALPHA = (2 * NUM_LAYERS) ** 0.5
COEFF = float(LAYER_ID + 1)     # GLM query_key_layer_scaling_coeff
ROT_DIM = HEAD_DIM // 2         # 2D rotary: half of head_dim per positional component
DTYPE = jnp.bfloat16            # stand-in for torch.float16


def _gelu_tanh(x):
    # TODO(synk): module default is exact erf-GELU (nn.functional.gelu); the kernel uses the
    # tanh approximation (identical to ChatGLM's gelu_impl) since erf is not guaranteed to lower.
    return 0.5 * x * (1.0 + jnp.tanh(0.7978845608028654 * (x + 0.044715 * x * x * x)))


# ------------------------------------ Pallas kernel ------------------------------------
def glm_block_kernel(x_ref, cos_ref, sin_ref, mask_ref,
                     wqkv_ref, bqkv_ref, vec_ref,
                     wo_ref, wfc_ref, bfc_ref, wpj_ref,
                     out_ref):
    f32 = jnp.float32
    bf16 = jnp.bfloat16
    S = x_ref.shape[1]                                            # rows per block (= seq_len)
    H = x_ref.shape[2]

    x = x_ref[0].astype(f32)                                      # [S, H]

    # packed [1, N] vector params: rows of the [8, H] slab
    vec = vec_ref[...]                                            # [8, H] f32
    ln1_g, ln1_b = vec[0:1, :], vec[1:2, :]
    ln2_g, ln2_b = vec[2:3, :], vec[3:4, :]
    bo, bpj = vec[4:5, :], vec[5:6, :]

    # ---- input_layernorm (LayerNorm1D, f32) ----
    mu = jnp.mean(x, axis=-1, keepdims=True)
    var = jnp.mean(jnp.square(x - mu), axis=-1, keepdims=True)
    attn_in = (x - mu) * jax.lax.rsqrt(var + LN_EPS) * ln1_g + ln1_b
    attn_in_b = attn_in.astype(bf16)                              # bf16 operand for the MXU

    # ---- fused QKV projection: ONE bf16 matmul, f32 accumulate ----
    qkv = jnp.dot(attn_in_b, wqkv_ref[...], preferred_element_type=f32) + bqkv_ref[...]
    q = qkv[:, 0 * H:1 * H]                                       # lane-aligned slices
    k = qkv[:, 1 * H:2 * H]
    v = qkv[:, 2 * H:3 * H]

    # ---- 2D rotary embedding: x*cos + rotate_half(x)*sin per ROT_DIM segment ----
    # cos/sin arrive head-narrow [S, HEAD_DIM]; broadcast across heads once (hoisted).
    cos = cos_ref[0]                                              # [S, HEAD_DIM] f32
    sin = sin_ref[0]
    cos_h = jnp.concatenate([cos] * NUM_HEADS, axis=-1)           # [S, H]
    sin_h = jnp.concatenate([sin] * NUM_HEADS, axis=-1)

    half = ROT_DIM // 2

    def rotate_half_seg(t):                                       # VPU slice/negate/concat
        parts = []
        for seg in range(NUM_HEADS * 2):
            b0 = seg * ROT_DIM
            parts.append(-t[:, b0 + half:b0 + ROT_DIM])           # out[:half]      = -x[half:]
            parts.append(t[:, b0:b0 + half])                      # out[half:ROT]   =  x[:half]
        return jnp.concatenate(parts, axis=-1)

    q = q * cos_h + rotate_half_seg(q) * sin_h
    k = k * cos_h + rotate_half_seg(k) * sin_h

    # GLM scales q by 1/(sqrt(hd)*coeff) and the scores by coeff: net 1/sqrt(hd).
    q = q * (1.0 / math.sqrt(HEAD_DIM))

    q_b = q.astype(bf16)
    k_b = k.astype(bf16)
    v_b = v.astype(bf16)

    # ---- attention: batched per-head dot_general on [NH, S, HEAD_DIM] ----
    def to_heads(t):                                              # [S, H] -> [NH, S, HD]
        return jnp.concatenate(
            [t[:, h * HEAD_DIM:(h + 1) * HEAD_DIM] for h in range(NUM_HEADS)],
            axis=0).reshape(NUM_HEADS, S, HEAD_DIM)

    q3 = to_heads(q_b)
    k3 = to_heads(k_b)
    v3 = to_heads(v_b)

    scores = jnp.einsum('hqd,hkd->hqk', q3, k3,
                        preferred_element_type=f32)               # [NH, S, S]
    # additive mask (in-block masked = -10000*coeff; softmax-equivalent to the reference
    # fill-then-scale order), broadcast across heads.
    logits = scores + mask_ref[...][None, :, :]
    m = jnp.max(logits, axis=-1, keepdims=True)
    p = jnp.exp(logits - m)
    p = p * pl.reciprocal(jnp.sum(p, axis=-1, keepdims=True), approx=True)

    ctx = jnp.einsum('hqk,hkd->hqd', p.astype(bf16), v3,
                     preferred_element_type=f32)                  # [NH, S, HD]
    ctx2 = ctx.reshape(NUM_HEADS * S, HEAD_DIM).astype(bf16)
    context = jnp.concatenate(
        [ctx2[h * S:(h + 1) * S, :] for h in range(NUM_HEADS)], axis=1)   # [S, H]

    attn_out = jnp.dot(context, wo_ref[...], preferred_element_type=f32) + bo

    # ---- residual 1: attention_input * alpha + attention_output ----
    h1 = attn_in * ALPHA + attn_out

    # ---- post_attention_layernorm ----
    mu2 = jnp.mean(h1, axis=-1, keepdims=True)
    var2 = jnp.mean(jnp.square(h1 - mu2), axis=-1, keepdims=True)
    mlp_in = (h1 - mu2) * jax.lax.rsqrt(var2 + LN_EPS) * ln2_g + ln2_b
    mlp_in_b = mlp_in.astype(bf16)

    # ---- MLP: h -> 4h, GELU, 4h -> h ----
    ff = jnp.dot(mlp_in_b, wfc_ref[...], preferred_element_type=f32) + bfc_ref[...]
    ff_b = _gelu_tanh(ff).astype(bf16)
    mlp_out = jnp.dot(ff_b, wpj_ref[...], preferred_element_type=f32) + bpj

    # ---- residual 2: mlp_input * alpha + mlp_output ----
    out_ref[0] = (mlp_in * ALPHA + mlp_out).astype(out_ref.dtype)


# ------------------------------------ wrapper (glue) ------------------------------------
def glm_block_forward(hidden_states, position_ids, attention_mask, params):
    """hidden_states: [seq, batch, hidden] (bf16)
       position_ids:  [batch, 2, seq] int32 (row 0 = positions, row 1 = block positions)
       attention_mask:[1, 1, seq, seq]  (nonzero = masked)"""
    S, B, H = hidden_states.shape
    x3d = jnp.transpose(hidden_states, (1, 0, 2))                    # [B, S, H]

    # Rotary table gather by 2D position ids (pure glue); head-narrow f32 [B, S, HEAD_DIM].
    cos_t, sin_t = params["cos_table"], params["sin_table"]          # [MAX_SEQ_LEN, ROT_DIM] f32
    pid = position_ids[:, 0, :]
    bid = position_ids[:, 1, :]
    cos_h = jnp.concatenate([cos_t[pid], cos_t[bid]], axis=-1).astype(jnp.float32)
    sin_h = jnp.concatenate([sin_t[pid], sin_t[bid]], axis=-1).astype(jnp.float32)

    # Additive [S, S] mask (shared across batch & heads, as the module's contract says):
    # in-block masked = -10000*coeff (softmax-equivalent to GLM's fill-then-scale order).
    mask2d = attention_mask.reshape(S, S).astype(jnp.float32)
    mask_add = jnp.where(mask2d > 0.0, jnp.float32(-10000.0 * COEFF), jnp.float32(0.0))

    ins = [x3d, cos_h, sin_h, mask_add,
           params["wqkv"], params["bqkv"], params["vec_h"],
           params["wo"], params["wfc"], params["bfc"], params["wpj"]]

    full = lambda a: pl.BlockSpec(a.shape, lambda b: (0,) * a.ndim)
    in_specs = [
        pl.BlockSpec((1, S, H), lambda b: (b, 0, 0)),                # x
        pl.BlockSpec((1, S, HEAD_DIM), lambda b: (b, 0, 0)),         # cos
        pl.BlockSpec((1, S, HEAD_DIM), lambda b: (b, 0, 0)),         # sin
        full(mask_add),                                              # [S, S] mask
        full(params["wqkv"]), full(params["bqkv"]), full(params["vec_h"]),
        full(params["wo"]), full(params["wfc"]), full(params["bfc"]), full(params["wpj"]),
    ]
    out_spec = pl.BlockSpec((1, S, H), lambda b: (b, 0, 0))

    R = B * S
    flops = int(2 * R * H * (3 * H)                                  # fused QKV
                + 2 * 2 * B * NUM_HEADS * S * S * HEAD_DIM           # scores + context
                + 2 * R * H * H                                      # output projection
                + 2 * 2 * R * H * INNER)                             # MLP
    transcendentals = int(B * NUM_HEADS * S * S + R * INNER)
    bytes_accessed = int(sum(int(np.prod(a.shape)) * a.dtype.itemsize for a in ins)
                         + R * H * np.dtype(DTYPE).itemsize)

    out3d = pl.pallas_call(
        glm_block_kernel,
        out_shape=jax.ShapeDtypeStruct((B, S, H), DTYPE),
        grid_spec=pltpu.PrefetchScalarGridSpec(
            num_scalar_prefetch=0,
            grid=(B,),                                               # parallel over batch
            in_specs=in_specs,
            out_specs=out_spec),
        compiler_params=pltpu.CompilerParams(
            dimension_semantics=("parallel",),                       # v7x: 2 TCs split batch
            vmem_limit_bytes=32 * 1024 * 1024),
        cost_estimate=pl.CostEstimate(flops=flops,
                                      transcendentals=transcendentals,
                                      bytes_accessed=bytes_accessed),
    )(*ins)

    return jnp.transpose(out3d, (1, 0, 2))                           # back to [seq, batch, hidden]


# ------------------------------------ parameter init ------------------------------------
def init_params(key):
    ks = jax.random.split(key, 8)

    def dense(k, fi, fo):
        return (jax.random.normal(k, (fi, fo), jnp.float32) * 0.02).astype(DTYPE)

    def bias(k, fo):
        return (jax.random.normal(k, (1, fo), jnp.float32) * 0.02).astype(DTYPE)

    # fused_qkv=True: one [H, 3H] matrix with ChatGLM layout [..., num_heads, 3*head_dim];
    # pre-permute columns to a [q | k | v] layout (glue, no numerical effect) so the kernel
    # can take lane-aligned slices of the single fused matmul result.
    w_qkv = dense(ks[0], HIDDEN, 3 * HIDDEN)
    b_qkv = bias(ks[1], 3 * HIDDEN)
    w_r = np.asarray(w_qkv, np.float32).reshape(HIDDEN, NUM_HEADS, 3, HEAD_DIM)
    b_r = np.asarray(b_qkv, np.float32).reshape(1, NUM_HEADS, 3, HEAD_DIM)
    wqkv = np.concatenate([w_r[:, :, i, :].reshape(HIDDEN, HIDDEN) for i in range(3)], axis=1)
    bqkv = np.concatenate([b_r[:, :, i, :].reshape(1, HIDDEN) for i in range(3)], axis=1)

    wo, bo = dense(ks[2], HIDDEN, HIDDEN), bias(ks[3], HIDDEN)
    wfc, bfc = dense(ks[4], HIDDEN, INNER), bias(ks[5], INNER)
    wpj, bpj = dense(ks[6], INNER, HIDDEN), bias(ks[7], HIDDEN)

    # pack the [1, H]-shaped vector params into a single [8, H] f32 slab
    vec_h = np.zeros((8, HIDDEN), np.float32)
    vec_h[0, :] = 1.0                                                # ln1_g
    vec_h[1, :] = 0.0                                                # ln1_b
    vec_h[2, :] = 1.0                                                # ln2_g
    vec_h[3, :] = 0.0                                                # ln2_b
    vec_h[4, :] = np.asarray(bo, np.float32)[0]                      # bo
    vec_h[5, :] = np.asarray(bpj, np.float32)[0]                     # bpj

    # rotary tables (fp32 precompute, stay fp32)
    inv_freq = 1.0 / (10000.0 ** (np.arange(0, ROT_DIM, 2, dtype=np.float32) / ROT_DIM))
    t = np.arange(MAX_SEQ_LEN, dtype=np.float32)
    freqs = np.einsum("i,j->ij", t, inv_freq)
    emb = np.concatenate([freqs, freqs], axis=-1)                    # [MAX_SEQ_LEN, ROT_DIM]

    return dict(
        wqkv=jnp.asarray(wqkv).astype(DTYPE),
        bqkv=jnp.asarray(bqkv, jnp.float32),
        vec_h=jnp.asarray(vec_h, jnp.float32),
        wo=wo, wfc=wfc,
        bfc=jnp.asarray(np.asarray(bfc, np.float32), jnp.float32),
        wpj=wpj,
        cos_table=jnp.asarray(np.cos(emb), jnp.float32),
        sin_table=jnp.asarray(np.sin(emb), jnp.float32),
    )


# ------------------------------------------ main -----------------------------------------
if __name__ == "__main__":
    key = jax.random.PRNGKey(0)
    k_param, k_x = jax.random.split(key)
    params = init_params(k_param)

    hidden_states = (jax.random.normal(k_x, (SEQ, BATCH, HIDDEN), jnp.float32)).astype(DTYPE)

    # GLM-style 2D position ids: [batch, 2, seq]
    context_length = SEQ - 2
    pos = np.arange(SEQ, dtype=np.int32)
    pos = np.where(pos >= context_length, context_length - 1, pos)
    block_pos = np.concatenate([np.zeros(context_length, np.int32),
                                np.arange(1, SEQ - context_length + 1, dtype=np.int32)])
    position_ids = jnp.asarray(np.tile(np.stack([pos, block_pos])[None], (BATCH, 1, 1)))

    # GLM attention mask [1, 1, S, S]: bidirectional over the prompt, causal over generation.
    mask_np = np.zeros((1, 1, SEQ, SEQ), np.float32)
    for i in range(SEQ):
        for j in range(SEQ):
            if j >= context_length and j > i:
                mask_np[0, 0, i, j] = 1.0
    attention_mask = jnp.asarray(mask_np)

    out = glm_block_forward(hidden_states, position_ids, attention_mask, params)
    jax.block_until_ready(out)
    assert out.shape == (SEQ, BATCH, HIDDEN) and out.dtype == DTYPE
    print("KERNEL_OK")
</pallas_src>

<mosaic_0001>
module attributes {stable_mosaic.version = 11 : i64} {
  func.func @glm_block_kernel(%arg0: i32, %arg1: memref<1x8x256xbf16, #tpu.memory_space<vmem>>, %arg2: memref<1x8x128xf32, #tpu.memory_space<vmem>>, %arg3: memref<1x8x128xf32, #tpu.memory_space<vmem>>, %arg4: memref<8x8xf32, #tpu.memory_space<vmem>>, %arg5: memref<256x768xbf16, #tpu.memory_space<vmem>>, %arg6: memref<1x768xf32, #tpu.memory_space<vmem>>, %arg7: memref<8x256xf32, #tpu.memory_space<vmem>>, %arg8: memref<256x256xbf16, #tpu.memory_space<vmem>>, %arg9: memref<256x1024xbf16, #tpu.memory_space<vmem>>, %arg10: memref<1x1024xf32, #tpu.memory_space<vmem>>, %arg11: memref<1024x256xbf16, #tpu.memory_space<vmem>>, %arg12: memref<1x8x256xbf16, #tpu.memory_space<vmem>>) attributes {dimension_semantics = [#tpu.dimension_semantics<parallel>], iteration_bounds = array<i64: 2>, scalar_prefetch = 0 : i64, scratch_operands = 0 : i64, tpu.core_type = #tpu.core_type<tc>, window_params = [{transform_indices = @transform_0, window_bounds = array<i64: 1, 8, 256>}, {transform_indices = @transform_1, window_bounds = array<i64: 1, 8, 128>}, {transform_indices = @transform_2, window_bounds = array<i64: 1, 8, 128>}, {pipeline_mode = #tpu.pipeline_mode<synchronous>, transform_indices = @transform_3, window_bounds = array<i64: 8, 8>}, {pipeline_mode = #tpu.pipeline_mode<synchronous>, transform_indices = @transform_4, window_bounds = array<i64: 256, 768>}, {pipeline_mode = #tpu.pipeline_mode<synchronous>, transform_indices = @transform_5, window_bounds = array<i64: 1, 768>}, {pipeline_mode = #tpu.pipeline_mode<synchronous>, transform_indices = @transform_6, window_bounds = array<i64: 8, 256>}, {pipeline_mode = #tpu.pipeline_mode<synchronous>, transform_indices = @transform_7, window_bounds = array<i64: 256, 256>}, {pipeline_mode = #tpu.pipeline_mode<synchronous>, transform_indices = @transform_8, window_bounds = array<i64: 256, 1024>}, {pipeline_mode = #tpu.pipeline_mode<synchronous>, transform_indices = @transform_9, window_bounds = array<i64: 1, 1024>}, {pipeline_mode = #tpu.pipeline_mode<synchronous>, transform_indices = @transform_10, window_bounds = array<i64: 1024, 256>}, {transform_indices = @transform_11, window_bounds = array<i64: 1, 8, 256>}]} {
    %c0 = arith.constant 0 : index
    %c0_0 = arith.constant 0 : index
    %c0_1 = arith.constant 0 : index
    %0 = vector.load %arg1[%c0, %c0_0, %c0_1] : memref<1x8x256xbf16, #tpu.memory_space<vmem>>, vector<1x8x256xbf16>
    %1 = vector.shape_cast %0 : vector<1x8x256xbf16> to vector<8x256xbf16>
    %2 = arith.extf %1 : vector<8x256xbf16> to vector<8x256xf32>
    %c0_2 = arith.constant 0 : index
    %c0_3 = arith.constant 0 : index
    %3 = vector.load %arg7[%c0_2, %c0_3] : memref<8x256xf32, #tpu.memory_space<vmem>>, vector<8x256xf32>
    %4 = vector.extract_strided_slice %3 {offsets = [0, 0], sizes = [1, 256], strides = [1, 1]} : vector<8x256xf32> to vector<1x256xf32>
    %5 = vector.extract_strided_slice %3 {offsets = [1, 0], sizes = [1, 256], strides = [1, 1]} : vector<8x256xf32> to vector<1x256xf32>
    %6 = vector.extract_strided_slice %3 {offsets = [2, 0], sizes = [1, 256], strides = [1, 1]} : vector<8x256xf32> to vector<1x256xf32>
    %7 = vector.extract_strided_slice %3 {offsets = [3, 0], sizes = [1, 256], strides = [1, 1]} : vector<8x256xf32> to vector<1x256xf32>
    %8 = vector.extract_strided_slice %3 {offsets = [4, 0], sizes = [1, 256], strides = [1, 1]} : vector<8x256xf32> to vector<1x256xf32>
    %9 = vector.extract_strided_slice %3 {offsets = [5, 0], sizes = [1, 256], strides = [1, 1]} : vector<8x256xf32> to vector<1x256xf32>
    %cst = arith.constant dense<0.000000e+00> : vector<8xf32>
    %10 = vector.multi_reduction <add>, %2, %cst [1] : vector<8x256xf32> to vector<8xf32>
    %11 = vector.shape_cast %10 : vector<8xf32> to vector<8x1xf32>
    %cst_4 = arith.constant 2.560000e+02 : f32
    %12 = vector.broadcast %cst_4 : f32 to vector<8x1xf32>
    %13 = arith.divf %11, %12 : vector<8x1xf32>
    %14 = vector.broadcast %13 : vector<8x1xf32> to vector<8x256xf32>
    %15 = arith.subf %2, %14 : vector<8x256xf32>
    %16 = arith.mulf %15, %15 : vector<8x256xf32>
    %cst_5 = arith.constant dense<0.000000e+00> : vector<8xf32>
    %17 = vector.multi_reduction <add>, %16, %cst_5 [1] : vector<8x256xf32> to vector<8xf32>
    %18 = vector.shape_cast %17 : vector<8xf32> to vector<8x1xf32>
    %cst_6 = arith.constant 2.560000e+02 : f32
    %19 = vector.broadcast %cst_6 : f32 to vector<8x1xf32>
    %20 = arith.divf %18, %19 : vector<8x1xf32>
    %21 = vector.broadcast %13 : vector<8x1xf32> to vector<8x256xf32>
    %22 = arith.subf %2, %21 : vector<8x256xf32>
    %cst_7 = arith.constant 9.99999974E-6 : f32
    %23 = vector.broadcast %cst_7 : f32 to vector<8x1xf32>
    %24 = arith.addf %20, %23 : vector<8x1xf32>
    %25 = math.rsqrt %24 : vector<8x1xf32>
    %26 = vector.broadcast %25 : vector<8x1xf32> to vector<8x256xf32>
    %27 = arith.mulf %22, %26 : vector<8x256xf32>
    %28 = vector.broadcast %4 : vector<1x256xf32> to vector<8x256xf32>
    %29 = arith.mulf %27, %28 : vector<8x256xf32>
    %30 = vector.broadcast %5 : vector<1x256xf32> to vector<8x256xf32>
    %31 = arith.addf %29, %30 : vector<8x256xf32>
    %32 = arith.truncf %31 : vector<8x256xf32> to vector<8x256xbf16>
    %c0_8 = arith.constant 0 : index
    %c0_9 = arith.constant 0 : index
    %33 = vector.load %arg5[%c0_8, %c0_9] : memref<256x768xbf16, #tpu.memory_space<vmem>>, vector<256x768xbf16>
    %cst_10 = arith.constant dense<0.000000e+00> : vector<8x768xf32>
    %34 = tpu.matmul %32, %33, %cst_10 {dimension_numbers = #tpu.dot_dimension_numbers<[1], [0], [0], [1], [0, 0, 1, 1], [], []>} : vector<8x256xbf16>, vector<256x768xbf16>, vector<8x768xf32> -> vector<8x768xf32>
    %c0_11 = arith.constant 0 : index
    %c0_12 = arith.constant 0 : index
    %35 = vector.load %arg6[%c0_11, %c0_12] : memref<1x768xf32, #tpu.memory_space<vmem>>, vector<1x768xf32>
    %36 = vector.broadcast %35 : vector<1x768xf32> to vector<8x768xf32>
    %37 = arith.addf %34, %36 : vector<8x768xf32>
    %38 = vector.extract_strided_slice %37 {offsets = [0, 0], sizes = [8, 256], strides = [1, 1]} : vector<8x768xf32> to vector<8x256xf32>
    %39 = vector.extract_strided_slice %37 {offsets = [0, 256], sizes = [8, 256], strides = [1, 1]} : vector<8x768xf32> to vector<8x256xf32>
    %40 = vector.extract_strided_slice %37 {offsets = [0, 512], sizes = [8, 256], strides = [1, 1]} : vector<8x768xf32> to vector<8x256xf32>
    %c0_13 = arith.constant 0 : index
    %c0_14 = arith.constant 0 : index
    %c0_15 = arith.constant 0 : index
    %41 = vector.load %arg2[%c0_13, %c0_14, %c0_15] : memref<1x8x128xf32, #tpu.memory_space<vmem>>, vector<1x8x128xf32>
    %42 = vector.shape_cast %41 : vector<1x8x128xf32> to vector<8x128xf32>
    %c0_16 = arith.constant 0 : index
    %c0_17 = arith.constant 0 : index
    %c0_18 = arith.constant 0 : index
    %43 = vector.load %arg3[%c0_16, %c0_17, %c0_18] : memref<1x8x128xf32, #tpu.memory_space<vmem>>, vector<1x8x128xf32>
    %44 = vector.shape_cast %43 : vector<1x8x128xf32> to vector<8x128xf32>
    %45 = tpu.concatenate %42, %42 in 1 : vector<8x128xf32>, vector<8x128xf32> -> vector<8x256xf32>
    %46 = tpu.concatenate %44, %44 in 1 : vector<8x128xf32>, vector<8x128xf32> -> vector<8x256xf32>
    %47 = arith.mulf %38, %45 : vector<8x256xf32>
    %48 = vector.extract_strided_slice %38 {offsets = [0, 32], sizes = [8, 32], strides = [1, 1]} : vector<8x256xf32> to vector<8x32xf32>
    %cst_19 = arith.constant 0.000000e+00 : f32
    %49 = vector.broadcast %cst_19 : f32 to vector<8x32xf32>
    %50 = arith.subf %49, %48 : vector<8x32xf32>
    %51 = vector.extract_strided_slice %38 {offsets = [0, 0], sizes = [8, 32], strides = [1, 1]} : vector<8x256xf32> to vector<8x32xf32>
    %52 = vector.extract_strided_slice %38 {offsets = [0, 96], sizes = [8, 32], strides = [1, 1]} : vector<8x256xf32> to vector<8x32xf32>
    %cst_20 = arith.constant 0.000000e+00 : f32
    %53 = vector.broadcast %cst_20 : f32 to vector<8x32xf32>
    %54 = arith.subf %53, %52 : vector<8x32xf32>
    %55 = vector.extract_strided_slice %38 {offsets = [0, 64], sizes = [8, 32], strides = [1, 1]} : vector<8x256xf32> to vector<8x32xf32>
    %56 = vector.extract_strided_slice %38 {offsets = [0, 160], sizes = [8, 32], strides = [1, 1]} : vector<8x256xf32> to vector<8x32xf32>
    %cst_21 = arith.constant 0.000000e+00 : f32
    %57 = vector.broadcast %cst_21 : f32 to vector<8x32xf32>
    %58 = arith.subf %57, %56 : vector<8x32xf32>
    %59 = vector.extract_strided_slice %38 {offsets = [0, 128], sizes = [8, 32], strides = [1, 1]} : vector<8x256xf32> to vector<8x32xf32>
    %60 = vector.extract_strided_slice %38 {offsets = [0, 224], sizes = [8, 32], strides = [1, 1]} : vector<8x256xf32> to vector<8x32xf32>
    %cst_22 = arith.constant 0.000000e+00 : f32
    %61 = vector.broadcast %cst_22 : f32 to vector<8x32xf32>
    %62 = arith.subf %61, %60 : vector<8x32xf32>
    %63 = vector.extract_strided_slice %38 {offsets = [0, 192], sizes = [8, 32], strides = [1, 1]} : vector<8x256xf32> to vector<8x32xf32>
    %64 = tpu.concatenate %50, %51, %54, %55, %58, %59, %62, %63 in 1 : vector<8x32xf32>, vector<8x32xf32>, vector<8x32xf32>, vector<8x32xf32>, vector<8x32xf32>, vector<8x32xf32>, vector<8x32xf32>, vector<8x32xf32> -> vector<8x256xf32>
    %65 = arith.mulf %64, %46 : vector<8x256xf32>
    %66 = arith.addf %47, %65 : vector<8x256xf32>
    %67 = arith.mulf %39, %45 : vector<8x256xf32>
    %68 = vector.extract_strided_slice %39 {offsets = [0, 32], sizes = [8, 32], strides = [1, 1]} : vector<8x256xf32> to vector<8x32xf32>
    %cst_23 = arith.constant 0.000000e+00 : f32
    %69 = vector.broadcast %cst_23 : f32 to vector<8x32xf32>
    %70 = arith.subf %69, %68 : vector<8x32xf32>
    %71 = vector.extract_strided_slice %39 {offsets = [0, 0], sizes = [8, 32], strides = [1, 1]} : vector<8x256xf32> to vector<8x32xf32>
    %72 = vector.extract_strided_slice %39 {offsets = [0, 96], sizes = [8, 32], strides = [1, 1]} : vector<8x256xf32> to vector<8x32xf32>
    %cst_24 = arith.constant 0.000000e+00 : f32
    %73 = vector.broadcast %cst_24 : f32 to vector<8x32xf32>
    %74 = arith.subf %73, %72 : vector<8x32xf32>
    %75 = vector.extract_strided_slice %39 {offsets = [0, 64], sizes = [8, 32], strides = [1, 1]} : vector<8x256xf32> to vector<8x32xf32>
    %76 = vector.extract_strided_slice %39 {offsets = [0, 160], sizes = [8, 32], strides = [1, 1]} : vector<8x256xf32> to vector<8x32xf32>
    %cst_25 = arith.constant 0.000000e+00 : f32
    %77 = vector.broadcast %cst_25 : f32 to vector<8x32xf32>
    %78 = arith.subf %77, %76 : vector<8x32xf32>
    %79 = vector.extract_strided_slice %39 {offsets = [0, 128], sizes = [8, 32], strides = [1, 1]} : vector<8x256xf32> to vector<8x32xf32>
    %80 = vector.extract_strided_slice %39 {offsets = [0, 224], sizes = [8, 32], strides = [1, 1]} : vector<8x256xf32> to vector<8x32xf32>
    %cst_26 = arith.constant 0.000000e+00 : f32
    %81 = vector.broadcast %cst_26 : f32 to vector<8x32xf32>
    %82 = arith.subf %81, %80 : vector<8x32xf32>
    %83 = vector.extract_strided_slice %39 {offsets = [0, 192], sizes = [8, 32], strides = [1, 1]} : vector<8x256xf32> to vector<8x32xf32>
    %84 = tpu.concatenate %70, %71, %74, %75, %78, %79, %82, %83 in 1 : vector<8x32xf32>, vector<8x32xf32>, vector<8x32xf32>, vector<8x32xf32>, vector<8x32xf32>, vector<8x32xf32>, vector<8x32xf32>, vector<8x32xf32> -> vector<8x256xf32>
    %85 = arith.mulf %84, %46 : vector<8x256xf32>
    %86 = arith.addf %67, %85 : vector<8x256xf32>
    %cst_27 = arith.constant 0.0883883461 : f32
    %87 = vector.broadcast %cst_27 : f32 to vector<8x256xf32>
    %88 = arith.mulf %66, %87 : vector<8x256xf32>
    %89 = arith.truncf %88 : vector<8x256xf32> to vector<8x256xbf16>
    %90 = arith.truncf %86 : vector<8x256xf32> to vector<8x256xbf16>
    %91 = arith.truncf %40 : vector<8x256xf32> to vector<8x256xbf16>
    %92 = vector.extract_strided_slice %89 {offsets = [0, 0], sizes = [8, 128], strides = [1, 1]} : vector<8x256xbf16> to vector<8x128xbf16>
    %93 = vector.extract_strided_slice %89 {offsets = [0, 128], sizes = [8, 128], strides = [1, 1]} : vector<8x256xbf16> to vector<8x128xbf16>
    %94 = tpu.concatenate %92, %93 in 0 : vector<8x128xbf16>, vector<8x128xbf16> -> vector<16x128xbf16>
    %95 = vector.shape_cast %94 : vector<16x128xbf16> to vector<2x8x128xbf16>
    %96 = vector.extract_strided_slice %90 {offsets = [0, 0], sizes = [8, 128], strides = [1, 1]} : vector<8x256xbf16> to vector<8x128xbf16>
    %97 = vector.extract_strided_slice %90 {offsets = [0, 128], sizes = [8, 128], strides = [1, 1]} : vector<8x256xbf16> to vector<8x128xbf16>
    %98 = tpu.concatenate %96, %97 in 0 : vector<8x128xbf16>, vector<8x128xbf16> -> vector<16x128xbf16>
    %99 = vector.shape_cast %98 : vector<16x128xbf16> to vector<2x8x128xbf16>
    %100 = vector.extract_strided_slice %91 {offsets = [0, 0], sizes = [8, 128], strides = [1, 1]} : vector<8x256xbf16> to vector<8x128xbf16>
    %101 = vector.extract_strided_slice %91 {offsets = [0, 128], sizes = [8, 128], strides = [1, 1]} : vector<8x256xbf16> to vector<8x128xbf16>
    %102 = tpu.concatenate %100, %101 in 0 : vector<8x128xbf16>, vector<8x128xbf16> -> vector<16x128xbf16>
    %103 = vector.shape_cast %102 : vector<16x128xbf16> to vector<2x8x128xbf16>
    "tpu.trace_start"() <{level = 10 : i32, message = "hqd,hkd->hqk"}> : () -> ()
    %cst_28 = arith.constant dense<0.000000e+00> : vector<2x8x8xf32>
    %104 = tpu.matmul %95, %99, %cst_28 {dimension_numbers = #tpu.dot_dimension_numbers<[2], [2], [1], [1], [0, 0, 0, 1, 1, 1], [0], [0]>} : vector<2x8x128xbf16>, vector<2x8x128xbf16>, vector<2x8x8xf32> -> vector<2x8x8xf32>
    "tpu.trace_stop"() : () -> ()
    %c0_29 = arith.constant 0 : index
    %c0_30 = arith.constant 0 : index
    %105 = vector.load %arg4[%c0_29, %c0_30] : memref<8x8xf32, #tpu.memory_space<vmem>>, vector<8x8xf32>
    %106 = vector.shape_cast %105 : vector<8x8xf32> to vector<1x8x8xf32>
    %107 = vector.broadcast %106 : vector<1x8x8xf32> to vector<2x8x8xf32>
    %108 = arith.addf %104, %107 : vector<2x8x8xf32>
    %cst_31 = arith.constant dense<0xFF800000> : vector<2x8xf32>
    %109 = vector.multi_reduction <maximumf>, %108, %cst_31 [2] : vector<2x8x8xf32> to vector<2x8xf32>
    %110 = vector.shape_cast %109 : vector<2x8xf32> to vector<2x8x1xf32>
    %111 = vector.broadcast %110 : vector<2x8x1xf32> to vector<2x8x8xf32>
    %112 = arith.subf %108, %111 : vector<2x8x8xf32>
    %113 = math.exp %112 : vector<2x8x8xf32>
    %cst_32 = arith.constant dense<0.000000e+00> : vector<2x8xf32>
    %114 = vector.multi_reduction <add>, %113, %cst_32 [2] : vector<2x8x8xf32> to vector<2x8xf32>
    %115 = vector.shape_cast %114 : vector<2x8xf32> to vector<2x8x1xf32>
    %116 = tpu.reciprocal %115 {approx = true} : vector<2x8x1xf32> -> vector<2x8x1xf32>
    %117 = vector.broadcast %116 : vector<2x8x1xf32> to vector<2x8x8xf32>
    %118 = arith.mulf %113, %117 : vector<2x8x8xf32>
    %119 = arith.truncf %118 : vector<2x8x8xf32> to vector<2x8x8xbf16>
    "tpu.trace_start"() <{level = 10 : i32, message = "hqk,hkd->hqd"}> : () -> ()
    %cst_33 = arith.constant dense<0.000000e+00> : vector<2x8x128xf32>
    %120 = tpu.matmul %119, %103, %cst_33 {dimension_numbers = #tpu.dot_dimension_numbers<[2], [1], [1], [2], [0, 0, 0, 1, 1, 2], [0], [0]>} : vector<2x8x8xbf16>, vector<2x8x128xbf16>, vector<2x8x128xf32> -> vector<2x8x128xf32>
    "tpu.trace_stop"() : () -> ()
    %121 = vector.shape_cast %120 : vector<2x8x128xf32> to vector<16x128xf32>
    %122 = arith.truncf %121 : vector<16x128xf32> to vector<16x128xbf16>
    %123 = vector.extract_strided_slice %122 {offsets = [0, 0], sizes = [8, 128], strides = [1, 1]} : vector<16x128xbf16> to vector<8x128xbf16>
    %124 = vector.extract_strided_slice %122 {offsets = [8, 0], sizes = [8, 128], strides = [1, 1]} : vector<16x128xbf16> to vector<8x128xbf16>
    %125 = tpu.concatenate %123, %124 in 1 : vector<8x128xbf16>, vector<8x128xbf16> -> vector<8x256xbf16>
    %c0_34 = arith.constant 0 : index
    %c0_35 = arith.constant 0 : index
    %126 = vector.load %arg8[%c0_34, %c0_35] : memref<256x256xbf16, #tpu.memory_space<vmem>>, vector<256x256xbf16>
    %cst_36 = arith.constant dense<0.000000e+00> : vector<8x256xf32>
    %127 = tpu.matmul %125, %126, %cst_36 {dimension_numbers = #tpu.dot_dimension_numbers<[1], [0], [0], [1], [0, 0, 1, 1], [], []>} : vector<8x256xbf16>, vector<256x256xbf16>, vector<8x256xf32> -> vector<8x256xf32>
    %128 = vector.broadcast %8 : vector<1x256xf32> to vector<8x256xf32>
    %129 = arith.addf %127, %128 : vector<8x256xf32>
    %cst_37 = arith.constant 7.48331499 : f32
    %130 = vector.broadcast %cst_37 : f32 to vector<8x256xf32>
    %131 = arith.mulf %31, %130 : vector<8x256xf32>
    %132 = arith.addf %131, %129 : vector<8x256xf32>
    %cst_38 = arith.constant dense<0.000000e+00> : vector<8xf32>
    %133 = vector.multi_reduction <add>, %132, %cst_38 [1] : vector<8x256xf32> to vector<8xf32>
    %134 = vector.shape_cast %133 : vector<8xf32> to vector<8x1xf32>
    %cst_39 = arith.constant 2.560000e+02 : f32
    %135 = vector.broadcast %cst_39 : f32 to vector<8x1xf32>
    %136 = arith.divf %134, %135 : vector<8x1xf32>
    %137 = vector.broadcast %136 : vector<8x1xf32> to vector<8x256xf32>
    %138 = arith.subf %132, %137 : vector<8x256xf32>
    %139 = arith.mulf %138, %138 : vector<8x256xf32>
    %cst_40 = arith.constant dense<0.000000e+00> : vector<8xf32>
    %140 = vector.multi_reduction <add>, %139, %cst_40 [1] : vector<8x256xf32> to vector<8xf32>
    %141 = vector.shape_cast %140 : vector<8xf32> to vector<8x1xf32>
    %cst_41 = arith.constant 2.560000e+02 : f32
    %142 = vector.broadcast %cst_41 : f32 to vector<8x1xf32>
    %143 = arith.divf %141, %142 : vector<8x1xf32>
    %144 = vector.broadcast %136 : vector<8x1xf32> to vector<8x256xf32>
    %145 = arith.subf %132, %144 : vector<8x256xf32>
    %cst_42 = arith.constant 9.99999974E-6 : f32
    %146 = vector.broadcast %cst_42 : f32 to vector<8x1xf32>
    %147 = arith.addf %143, %146 : vector<8x1xf32>
    %148 = math.rsqrt %147 : vector<8x1xf32>
    %149 = vector.broadcast %148 : vector<8x1xf32> to vector<8x256xf32>
    %150 = arith.mulf %145, %149 : vector<8x256xf32>
    %151 = vector.broadcast %6 : vector<1x256xf32> to vector<8x256xf32>
    %152 = arith.mulf %150, %151 : vector<8x256xf32>
    %153 = vector.broadcast %7 : vector<1x256xf32> to vector<8x256xf32>
    %154 = arith.addf %152, %153 : vector<8x256xf32>
    %155 = arith.truncf %154 : vector<8x256xf32> to vector<8x256xbf16>
    %c0_43 = arith.constant 0 : index
    %c0_44 = arith.constant 0 : index
    %156 = vector.load %arg9[%c0_43, %c0_44] : memref<256x1024xbf16, #tpu.memory_space<vmem>>, vector<256x1024xbf16>
    %cst_45 = arith.constant dense<0.000000e+00> : vector<8x1024xf32>
    %157 = tpu.matmul %155, %156, %cst_45 {dimension_numbers = #tpu.dot_dimension_numbers<[1], [0], [0], [1], [0, 0, 1, 1], [], []>} : vector<8x256xbf16>, vector<256x1024xbf16>, vector<8x1024xf32> -> vector<8x1024xf32>
    %c0_46 = arith.constant 0 : index
    %c0_47 = arith.constant 0 : index
    %158 = vector.load %arg10[%c0_46, %c0_47] : memref<1x1024xf32, #tpu.memory_space<vmem>>, vector<1x1024xf32>
    %159 = vector.broadcast %158 : vector<1x1024xf32> to vector<8x1024xf32>
    %160 = arith.addf %157, %159 : vector<8x1024xf32>
    %cst_48 = arith.constant 5.000000e-01 : f32
    %161 = vector.broadcast %cst_48 : f32 to vector<8x1024xf32>
    %162 = arith.mulf %161, %160 : vector<8x1024xf32>
    %cst_49 = arith.constant 4.471500e-02 : f32
    %163 = vector.broadcast %cst_49 : f32 to vector<8x1024xf32>
    %164 = arith.mulf %163, %160 : vector<8x1024xf32>
    %165 = arith.mulf %164, %160 : vector<8x1024xf32>
    %166 = arith.mulf %165, %160 : vector<8x1024xf32>
    %167 = arith.addf %160, %166 : vector<8x1024xf32>
    %cst_50 = arith.constant 0.797884583 : f32
    %168 = vector.broadcast %cst_50 : f32 to vector<8x1024xf32>
    %169 = arith.mulf %168, %167 : vector<8x1024xf32>
    %170 = math.tanh %169 : vector<8x1024xf32>
    %cst_51 = arith.constant 1.000000e+00 : f32
    %171 = vector.broadcast %cst_51 : f32 to vector<8x1024xf32>
    %172 = arith.addf %171, %170 : vector<8x1024xf32>
    %173 = arith.mulf %162, %172 : vector<8x1024xf32>
    %174 = arith.truncf %173 : vector<8x1024xf32> to vector<8x1024xbf16>
    %c0_52 = arith.constant 0 : index
    %c0_53 = arith.constant 0 : index
    %175 = vector.load %arg11[%c0_52, %c0_53] : memref<1024x256xbf16, #tpu.memory_space<vmem>>, vector<1024x256xbf16>
    %cst_54 = arith.constant dense<0.000000e+00> : vector<8x256xf32>
    %176 = tpu.matmul %174, %175, %cst_54 {dimension_numbers = #tpu.dot_dimension_numbers<[1], [0], [0], [1], [0, 0, 1, 1], [], []>} : vector<8x1024xbf16>, vector<1024x256xbf16>, vector<8x256xf32> -> vector<8x256xf32>
    %177 = vector.broadcast %9 : vector<1x256xf32> to vector<8x256xf32>
    %178 = arith.addf %176, %177 : vector<8x256xf32>
    %cst_55 = arith.constant 7.48331499 : f32
    %179 = vector.broadcast %cst_55 : f32 to vector<8x256xf32>
    %180 = arith.mulf %154, %179 : vector<8x256xf32>
    %181 = arith.addf %180, %178 : vector<8x256xf32>
    %182 = arith.truncf %181 : vector<8x256xf32> to vector<8x256xbf16>
    %c0_56 = arith.constant 0 : index
    %c0_57 = arith.constant 0 : index
    %c0_58 = arith.constant 0 : index
    %183 = vector.load %arg12[%c0_56, %c0_57, %c0_58] : memref<1x8x256xbf16, #tpu.memory_space<vmem>>, vector<1x8x256xbf16>
    %184 = vector.shape_cast %183 : vector<1x8x256xbf16> to vector<8x256xbf16>
    %185 = vector.shape_cast %182 : vector<8x256xbf16> to vector<1x8x256xbf16>
    tpu.vector_store %arg12[%c0_56, %c0_57, %c0_58], %185 {strides = array<i32>} : memref<1x8x256xbf16, #tpu.memory_space<vmem>>, vector<1x8x256xbf16>,
    return
  }
  func.func @transform_0(%arg0: i32) -> (i32, i32, i32) {
    %c0_i32 = arith.constant 0 : i32
    %c0_i32_0 = arith.constant 0 : i32
    %c0_i32_1 = arith.constant 0 : i32
    return %arg0, %c0_i32, %c0_i32_0 : i32, i32, i32
  }
  func.func @transform_1(%arg0: i32) -> (i32, i32, i32) {
    %c0_i32 = arith.constant 0 : i32
    %c0_i32_0 = arith.constant 0 : i32
    %c0_i32_1 = arith.constant 0 : i32
    return %arg0, %c0_i32, %c0_i32_0 : i32, i32, i32
  }
  func.func @transform_2(%arg0: i32) -> (i32, i32, i32) {
    %c0_i32 = arith.constant 0 : i32
    %c0_i32_0 = arith.constant 0 : i32
    %c0_i32_1 = arith.constant 0 : i32
    return %arg0, %c0_i32, %c0_i32_0 : i32, i32, i32
  }
  func.func @transform_3(%arg0: i32) -> (i32, i32) {
    %c0_i32 = arith.constant 0 : i32
    %c0_i32_0 = arith.constant 0 : i32
    %c0_i32_1 = arith.constant 0 : i32
    return %c0_i32, %c0_i32_0 : i32, i32
  }
  func.func @transform_4(%arg0: i32) -> (i32, i32) {
    %c0_i32 = arith.constant 0 : i32
    %c0_i32_0 = arith.constant 0 : i32
    %c0_i32_1 = arith.constant 0 : i32
    return %c0_i32, %c0_i32_0 : i32, i32
  }
  func.func @transform_5(%arg0: i32) -> (i32, i32) {
    %c0_i32 = arith.constant 0 : i32
    %c0_i32_0 = arith.constant 0 : i32
    %c0_i32_1 = arith.constant 0 : i32
    return %c0_i32, %c0_i32_0 : i32, i32
  }
  func.func @transform_6(%arg0: i32) -> (i32, i32) {
    %c0_i32 = arith.constant 0 : i32
    %c0_i32_0 = arith.constant 0 : i32
    %c0_i32_1 = arith.constant 0 : i32
    return %c0_i32, %c0_i32_0 : i32, i32
  }
  func.func @transform_7(%arg0: i32) -> (i32, i32) {
    %c0_i32 = arith.constant 0 : i32
    %c0_i32_0 = arith.constant 0 : i32
    %c0_i32_1 = arith.constant 0 : i32
    return %c0_i32, %c0_i32_0 : i32, i32
  }
  func.func @transform_8(%arg0: i32) -> (i32, i32) {
    %c0_i32 = arith.constant 0 : i32
    %c0_i32_0 = arith.constant 0 : i32
    %c0_i32_1 = arith.constant 0 : i32
    return %c0_i32, %c0_i32_0 : i32, i32
  }
  func.func @transform_9(%arg0: i32) -> (i32, i32) {
    %c0_i32 = arith.constant 0 : i32
    %c0_i32_0 = arith.constant 0 : i32
    %c0_i32_1 = arith.constant 0 : i32
    return %c0_i32, %c0_i32_0 : i32, i32
  }
  func.func @transform_10(%arg0: i32) -> (i32, i32) {
    %c0_i32 = arith.constant 0 : i32
    %c0_i32_0 = arith.constant 0 : i32
    %c0_i32_1 = arith.constant 0 : i32
    return %c0_i32, %c0_i32_0 : i32, i32
  }
  func.func @transform_11(%arg0: i32) -> (i32, i32, i32) {
    %c0_i32 = arith.constant 0 : i32
    %c0_i32_0 = arith.constant 0 : i32
    %c0_i32_1 = arith.constant 0 : i32
    return %arg0, %c0_i32, %c0_i32_0 : i32, i32, i32
  }
}

</mosaic_0001>

<bundles_post_ra>
// kernel: tpu_custom_call.1
= control target key start
LH: loop header
LB: loop body
LE: loop exit
PB: predicated region body
PF: predicated region fallthrough
CT: control target
= control target key end

     0   :  { %s6172_s0 = inlined_call_operand.hbm [shape: bf16[2,8,256], index: 0, kind: input, shape index: {}]   ;;  %s6173_s1 = inlined_call_operand.hbm [shape: f32[2,8,128], index: 1, kind: input, shape index: {}]   ;;  %s6174_s2 = inlined_call_operand.hbm [shape: f32[2,8,128], index: 2, kind: input, shape index: {}]   ;;  %s6175_s3 = inlined_call_operand.hbm [shape: f32[8,8], index: 3, kind: input, shape index: {}]   ;;  %s6176_s4 = inlined_call_operand.hbm [shape: bf16[256,768], index: 4, kind: input, shape index: {}]   ;;  %s6177_s5 = inlined_call_operand.hbm [shape: f32[1,768], index: 5, kind: input, shape index: {}]   ;;  %s6178_s6 = inlined_call_operand.vmem [shape: f32[8,256], index: 6, kind: input, shape index: {}]   ;;  %s6179_s7 = inlined_call_operand.hbm [shape: bf16[256,256], index: 7, kind: input, shape index: {}]   ;;  %s6180_s8 = inlined_call_operand.hbm [shape: bf16[256,1024], index: 8, kind: input, shape index: {}]   ;;  %s6181_s9 = inlined_call_operand.vmem [shape: f32[1,1024], index: 9, kind: input, shape index: {}]   ;;  %s6182_s10 = inlined_call_operand.hbm [shape: bf16[1024,256], index: 10, kind: input, shape index: {}]   ;;  %s6183_s11 = inlined_call_operand.hbm [shape: bf16[2,8,256], index: 11, kind: output, shape index: {}]  }
   0x1   :  { %6206 = sst [smem:[#allocation30_spill]] %s6173_s1 }
   0x2   :  { %6207 = sst [smem:[#allocation31_spill]] %s6175_s3 }
   0x3   :  { %6208 = sst [smem:[#allocation32_spill]] %s6177_s5 }
   0x4   :  { %6209 = sst [smem:[#allocation33_spill]] %s6178_s6 }
   0x5   :  { %6210 = sst [smem:[#allocation34_spill]] %s6180_s8 }
   0x6   :  { %6211 = sst [smem:[#allocation35_spill]] %s6181_s9 }
   0x7   :  { %6212 = sst [smem:[#allocation36_spill]] %s6183_s11 }
   0x8   :  { %16 = vsyncpa [#allocation3], 0 }
   0x9   :  { %18 = vsyncpa [#allocation3 + $0x1], 0 }
   0xa   :  { %19 = vsyncpa [#allocation6], 0 }
   0xb   :  { %21 = vsyncpa [#allocation6 + $0x1], 0 }
   0xc   :  { %22 = vsyncpa [#allocation9], 0 }
   0xd   :  { %23 = vsyncpa [#allocation12], 0 }
   0xe   :  { %24 = vsyncpa [#allocation15], 0 }
   0xf   :  { %25 = vsyncpa [#allocation4], 0 }
  0x10   :  { %27 = vsyncpa [#allocation4 + $0x1], 0  ;;  %s5543_s17 = smov 0   ;;  %s5545_s18 = smov 0  }
  0x11   :  { %s5547_s19 = smov 0   ;;  %s5549_s20 = smov 0  }
  0x12 LB: > { %6213 = sst [smem:[#allocation24_spill]] %s5449_s17  ;;  %s5463_s21 = smov [#allocation8]   ;;  %s5461_s20 = sphi %s5549_s20, %s6256_s20   ;;  %s5457_s19 = sphi %s5547_s19, %s6260_s19   ;;  %s5453_s18 = sphi %s5545_s18, %s6259_s18   ;;  %s5449_s17 = sphi %s5543_s17, %s6258_s17  }
  0x13   : > { %6214 = sst [smem:[#allocation25_spill]] %s5461_s20  ;;  %s323_s22 = sshll.u32 %s5463_s21, 4  ;;  %s324_s22 = int_to_ptr.vmem [resolvable:$true] %s323_s22 }
  0x14   : > { %s5564_s23 = sadd.s32 4294967295, %s5461_s20   ;;  %p4119_p0 = scmp.ge.s32.totalorder %s5461_s20, 1 }
  0x15   : > { %p6184_p1 = scmp.eq.s32.totalorder %s5564_s23, 0  ;;  %p310_p2 = scmp.lt.s32.totalorder %s5461_s20, 3 }
  0x16   : > { %s5464_s25 = smov [#allocation11]   ;;  %s5465_s27 = smov [#allocation14]  }
  0x17   : > { %p5569_p3 = pnand %p4119_p0, %p310_p2  ;;  %s347_s26 = sshll.u32 %s5464_s25, 4  ;;  %s5576_s26 = int_to_ptr.vmem [resolvable:$true] %s347_s26 }
  0x18   : > { %s373_s28 = sshll.u32 %s5465_s27, 4  ;;  %s6217_s3 = sld [smem:[#allocation31_spill]]  ;;  %s5584_s28 = int_to_ptr.vmem [resolvable:$true] %s373_s28 }
  0x19   : > { %s6215_s24 = scalar_select %p5569_p3, 1, 0 }
  0x1a   : > { %p4610_p5 = pneg %p5569_p3 }
  0x1c   : > { %p5580_p6 = pnand %p4610_p5, %p6184_p1 }
  0x1e   : > { %s6216_s29 = scalar_select %p5580_p6, 1, 0 }
  0x1f   : > { %s5121_s13 = scalar_lea.hbm %s6217_s3, 128  ;;  %p5594_p8 = pneg %p5580_p6 }
  0x20   : > { %p5122_p7 = scmp.ne.s32.totalorder %s6217_s3, %s5121_s13  ;;  %p5128_p11 = scmp.lt.u32.totalorder %s5121_s13, %s6217_s3 }
  0x21   : > { %s6218_s16 = scalar_select %p5594_p8, 1, 0 }
  0x22   : > { %p5124_p9 = pnand %p5594_p8, %p5122_p7 }
  0x24   : > { %p5125_p10 = pneg %p5124_p9 }
  0x26   : > { %p5130_p12 = pnand %p5128_p11, %p5125_p10 }
  0x28   : > { %5133 = shalt.err (!%p5130_p12)
}
  0x29   : > { %s5134_s27 = scalar_lea.vmem %s324_s22, 128  ;;  %p5142_p5 = scmp.lt.s32.totalorder %s324_s22, %s324_s22 }
  0x2a   : > { %p5135_p13 = scmp.ne.s32.totalorder %s324_s22, %s5134_s27  ;;  %p5143_p4 = scmp.lt.s32.totalorder %s5134_s27, %s5134_s27 }
  0x2c   : > { %p5137_p0 = pnand %p5135_p13, %p5594_p8  ;;  %p5144_p1 = por %p5143_p4, %p5142_p5 }
  0x2e   : > { %p5138_p2 = pneg %p5137_p0 }
  0x30   : > { %p5145_p3 = pnand %p5144_p1, %p5138_p2 }
  0x32   : > { %5148 = shalt.err (!%p5145_p3)
}
  0x33   : > { %4613 = dma.hbm_to_vmem [thread:$0]  (!%p5580_p6), %s6217_s3, 128, %s324_s22, [#allocation9]  }
  0x34   : > { %s6219_s5 = sld [smem:[#allocation32_spill]] }
  0x3a   : > { %s5149_s15 = scalar_lea.hbm %s6219_s5, 96 }
  0x3b   : > { %p5150_p7 = scmp.ne.s32.totalorder %s6219_s5, %s5149_s15  ;;  %p5156_p1 = scmp.lt.u32.totalorder %s5149_s15, %s6219_s5 }
  0x3d   : > { %p5152_p9 = pnand %p5150_p7, %p5594_p8 }
  0x3f   : > { %p5153_p4 = pneg %p5152_p9 }
  0x41   : > { %p5158_p3 = pnand %p5156_p1, %p5153_p4 }
  0x43   : > { %5161 = shalt.err (!%p5158_p3)
}
  0x44   : > { %s5162_s22 = scalar_lea.vmem %s5576_s26, 96  ;;  %p5170_p13 = scmp.lt.s32.totalorder %s5576_s26, %s5576_s26 }
  0x45   : > { %p5163_p10 = scmp.ne.s32.totalorder %s5576_s26, %s5162_s22  ;;  %p5171_p0 = scmp.lt.s32.totalorder %s5162_s22, %s5162_s22 }
  0x47   : > { %p5165_p11 = pnand %p5163_p10, %p5594_p8  ;;  %p5172_p2 = por %p5171_p0, %p5170_p13 }
  0x49   : > { %p5166_p12 = pneg %p5165_p11 }
  0x4b   : > { %p5173_p5 = pnand %p5172_p2, %p5166_p12 }
  0x4d   : > { %5176 = shalt.err (!%p5173_p5)
}
  0x4e   : > { %4619 = dma.hbm_to_vmem [thread:$0]  (!%p5580_p6), %s6219_s5, 96, %s5576_s26, [#allocation12]  }
  0x4f   : > { %s6220_s8 = sld [smem:[#allocation34_spill]] }
  0x55   : > { %s5177_s14 = scalar_lea.hbm %s6220_s8, 16384 }
  0x56   : > { %p5178_p7 = scmp.ne.s32.totalorder %s6220_s8, %s5177_s14  ;;  %p5184_p1 = scmp.lt.u32.totalorder %s5177_s14, %s6220_s8 }
  0x58   : > { %p5180_p9 = pnand %p5178_p7, %p5594_p8 }
  0x5a   : > { %p5181_p4 = pneg %p5180_p9 }
  0x5c   : > { %p5186_p3 = pnand %p5184_p1, %p5181_p4 }
  0x5e   : > { %5189 = shalt.err (!%p5186_p3)
}
  0x5f   : > { %s5190_s26 = scalar_lea.vmem %s5584_s28, 16384  ;;  %p5198_p13 = scmp.lt.s32.totalorder %s5584_s28, %s5584_s28 }
  0x60   : > { %p5191_p10 = scmp.ne.s32.totalorder %s5584_s28, %s5190_s26  ;;  %p5199_p0 = scmp.lt.s32.totalorder %s5190_s26, %s5190_s26 }
  0x62   : > { %p5193_p11 = pnand %p5191_p10, %p5594_p8  ;;  %p5200_p2 = por %p5199_p0, %p5198_p13 }
  0x64   : > { %p5194_p12 = pneg %p5193_p11 }
  0x66   : > { %p5201_p5 = pnand %p5200_p2, %p5194_p12 }
  0x68   : > { %5204 = shalt.err (!%p5201_p5)
}
  0x69   : > { %s5466_s22 = smov 512   ;;  %s5467_s11 = smov 32  }
  0x6a   : > { %4625 = dma.hbm_to_vmem [thread:$0]  (!%p5580_p6), %s6220_s8, 16384, %s5584_s28, [#allocation15], %s5466_s22, %s5466_s22, %s5467_s11  }
  0x6b   : > { %s4118_s13 = sadd.s32 4294967294, %s5461_s20   ;;  %s5658_s14 = sadd.s32 1, %s5461_s20  }
  0x6c   : > { %6221 = sst [smem:[#allocation26_spill]] %s5658_s14  ;;  %s40_s15 = sadd.s32 1, %s5457_s19 }
  0x6d   : > { %s37_s21 = ssub.s32 %s5461_s20, %s5658_s14  ;;  %p47_p7 = scmp.ne.s32.totalorder %s5457_s19, %s5453_s18 }
  0x6e   : > { %p38_p9 = scmp.eq.s32.totalorder %s37_s21, 0  ;;  %p48_p4 = scmp.eq.s32.totalorder %s5461_s20, 0 }
  0x6f   : > { %p53_p1 = scmp.ne.s32.totalorder %s5453_s18, %s5449_s17  ;;  %p297_p3 = scmp.eq.s32.totalorder %s5564_s23, 1 }
  0x70   : > { %s5670_s25 = scalar_select %p38_p9, %s5457_s19, %s40_s15  }
  0x71   : > { %p49_p10 = por %p48_p4, %p47_p7  ;;  %p6223_p11 = scmp.eq.s32.totalorder %s5564_s23, 0 }
  0x72   : > { %6222 = sst [smem:[#allocation27_spill]] %s5670_s25  ;;  %p5678_p13 = por %p297_p3, %p47_p7 }
  0x73   : > { %p5674_p12 = por %p6223_p11, %p53_p1  ;;  %p303_p0 = scmp.eq.s32.totalorder %s4118_s13, 1 }
  0x74   : > { %s6225_s27 = scalar_select %p5678_p13, 1, 0 }
  0x75   : > { %s6224_s28 = scalar_select %p5674_p12, 1, 0 }
  0x76   : > { %6226 = sst [smem:[#allocation28_spill]] %s6225_s27  ;;  %p4649_p2 = scmp.lt.s32.totalorder %s5461_s20, 2 }
  0x77   : > { %s6187_s26 = sand.u32 1, %s5457_s19   ;;  %p5684_p5 = por %p303_p0, %p53_p1 }
  0x78   : > { %s5690_s11 = sshll.u32 %s6187_s26, 3  ;;  %s5693_s30 = sshll.u32 %s5461_s20, 7 }
  0x79   : > { %s6227_s22 = scalar_select %p5684_p5, 1, 0 }
  0x7a   : > { %p5695_p9 = pnand %p4649_p2, %p49_p10  ;;  %s422_s15 = sand.u32 1, %s5461_s20  }
  0x7b   : > { %6228 = sst [smem:[#allocation29_spill]] %s6227_s22  ;;  %s6230_s1 = sld [smem:[#allocation30_spill]] }
  0x7c   : > { %s6229_s12 = scalar_select %p5695_p9, 1, 0 }
  0x7d   : > { %s426_s26 = scalar_lea.vmem [#allocation5], %s5690_s11  ;;  %s5709_s8 = scalar_lea.sflag [#allocation6], %s422_s15 }
  0x7e   : > { %s433_s5 = sshll.u32 %s426_s26, 4  ;;  %p5715_p4 = pneg %p5695_p9  ;;  %s5707_s5 = int_to_ptr.vmem [resolvable:$true] %s433_s5 }
  0x80   : > { %s6231_s14 = scalar_select %p5715_p4, 1, 0 }
  0x81   : > { %s5704_s3 = scalar_lea.hbm %s6230_s1, %s5693_s30  ;;  %s5210_s20 = scalar_lea.hbm %s6230_s1, 256 }
  0x82   : > { %s5205_s25 = scalar_lea.hbm %s5704_s3, 128  ;;  %p5211_p10 = scmp.lt.u32.totalorder %s5704_s3, %s6230_s1 }
  0x83   : > { %p5206_p7 = scmp.ne.s32.totalorder %s5704_s3, %s5205_s25  ;;  %p5212_p11 = scmp.lt.u32.totalorder %s5210_s20, %s5205_s25 }
  0x84   : > { %p5214_p2 = scmp.lt.u32.totalorder %s5205_s25, %s5704_s3 }
  0x85   : > { %p5208_p1 = pnand %p5715_p4, %p5206_p7  ;;  %p5213_p0 = por %p5212_p11, %p5211_p10 }
  0x87   : > { %p5209_p3 = pneg %p5208_p1  ;;  %p5215_p5 = por %p5214_p2, %p5213_p0 }
  0x89   : > { %p5216_p13 = pnand %p5215_p5, %p5209_p3 }
  0x8b   : > { %5219 = shalt.err (!%p5216_p13)
}
  0x8c   : > { %s5220_s15 = scalar_lea.vmem %s5707_s5, 128  ;;  %s5468_s13 = smov [#allocation5]  }
  0x8d   : > { %p5221_p7 = scmp.ne.s32.totalorder %s5707_s5, %s5220_s15  ;;  %s5225_s21 = sshll.u32 %s5468_s13, 4  ;;  %s5226_s21 = int_to_ptr.vmem [resolvable:$false] %s5225_s21 }
  0x8e   : > { %s5227_s22 = scalar_lea.vmem %s5226_s21, 256  ;;  %p5228_p6 = scmp.lt.s32.totalorder %s5707_s5, %s5226_s21 }
  0x8f   : > { %p5223_p1 = pnand %p5221_p7, %p5715_p4  ;;  %p5229_p8 = scmp.lt.s32.totalorder %s5227_s22, %s5220_s15 }
  0x91   : > { %p5224_p12 = pneg %p5223_p1  ;;  %p5230_p10 = por %p5229_p8, %p5228_p6 }
  0x93   : > { %p5231_p11 = pnand %p5230_p10, %p5224_p12 }
  0x95   : > { %5234 = shalt.err (!%p5231_p11)
}
  0x96   : > { %4635 = dma.hbm_to_vmem [thread:$0]  (!%p5695_p9), %s5704_s3, 128, %s5707_s5, %s5709_s8  }
  0x97   : > { %s5469_s20 = smov [#allocation10]   ;;  %s5235_s13 = scalar_lea.hbm %s6176_s4, 12288 }
  0x98   : > { %s333_s25 = sshll.u32 %s5469_s20, 4  ;;  %p5236_p6 = scmp.ne.s32.totalorder %s6176_s4, %s5235_s13  ;;  %s334_s25 = int_to_ptr.vmem [resolvable:$true] %s333_s25 }
  0x99   : > { %p6232_p8 = scmp.ne.s32.totalorder %s6218_s16, 0  ;;  %p5242_p5 = scmp.lt.u32.totalorder %s5235_s13, %s6176_s4 }
  0x9b   : > { %p5238_p12 = pnand %p5236_p6, %p6232_p8 }
  0x9d   : > { %p5239_p13 = pneg %p5238_p12 }
  0x9f   : > { %p5244_p3 = pnand %p5242_p5, %p5239_p13 }
  0xa1   : > { %5247 = shalt.err (!%p5244_p3)
}
  0xa2   : > { %s5248_s3 = scalar_lea.vmem %s334_s25, 12288  ;;  %p5256_p1 = scmp.lt.s32.totalorder %s334_s25, %s334_s25 }
  0xa3   : > { %p5249_p0 = scmp.ne.s32.totalorder %s334_s25, %s5248_s3  ;;  %p5257_p10 = scmp.lt.s32.totalorder %s5248_s3, %s5248_s3 }
  0xa5   : > { %p5251_p2 = pnand %p5249_p0, %p6232_p8  ;;  %p5258_p11 = por %p5257_p10, %p5256_p1 }
  0xa7   : > { %p5252_p7 = pneg %p5251_p2 }
  0xa9   : > { %p5259_p9 = pnand %p5258_p11, %p5252_p7 }
  0xab   : > { %5262 = shalt.err (!%p5259_p9)
}
  0xac   : > { %s5470_s1 = smov 384   ;;  %s5471_s5 = smov 24  }
  0xad   : > { %p6233_p6 = scmp.ne.s32.totalorder %s6216_s29, 0  ;;  %s5472_s26 = smov [#allocation13]  }
  0xae   : > { %s360_s13 = sshll.u32 %s5472_s26, 4  ;;  %s5263_s22 = scalar_lea.hbm %s6179_s7, 4096  ;;  %s361_s13 = int_to_ptr.vmem [resolvable:$true] %s360_s13 }
  0xaf   : > { %4616 = dma.hbm_to_vmem [thread:$0]  (!%p6233_p6), %s6176_s4, 12288, %s334_s25, [#allocation9], %s5470_s1, %s5470_s1, %s5471_s5  }
  0xb0   : > { %p5264_p9 = scmp.ne.s32.totalorder %s6179_s7, %s5263_s22  ;;  %p5270_p5 = scmp.lt.u32.totalorder %s5263_s22, %s6179_s7 }
  0xb2   : > { %p5266_p12 = pnand %p5264_p9, %p6232_p8 }
  0xb4   : > { %p5267_p13 = pneg %p5266_p12 }
  0xb6   : > { %p5272_p3 = pnand %p5270_p5, %p5267_p13 }
  0xb8   : > { %5275 = shalt.err (!%p5272_p3)
}
  0xb9   : > { %s5276_s25 = scalar_lea.vmem %s361_s13, 4096  ;;  %p5284_p1 = scmp.lt.s32.totalorder %s361_s13, %s361_s13 }
  0xba   : > { %p5277_p0 = scmp.ne.s32.totalorder %s361_s13, %s5276_s25  ;;  %p5285_p10 = scmp.lt.s32.totalorder %s5276_s25, %s5276_s25 }
  0xbc   : > { %p5279_p2 = pnand %p5277_p0, %p6232_p8  ;;  %p5286_p11 = por %p5285_p10, %p5284_p1 }
  0xbe   : > { %p5280_p7 = pneg %p5279_p2 }
  0xc0   : > { %p5287_p4 = pnand %p5286_p11, %p5280_p7 }
  0xc2   : > { %5290 = shalt.err (!%p5287_p4)
}
  0xc3   : > { %s5473_s27 = smov 128   ;;  %s5474_s1 = smov 8  }
  0xc4   : > { %4622 = dma.hbm_to_vmem [thread:$0]  (!%p6233_p6), %s6179_s7, 4096, %s361_s13, [#allocation12], %s5473_s27, %s5473_s27, %s5474_s1  }
  0xc5   : > { %s5475_s5 = smov [#allocation16]   ;;  %s5291_s21 = scalar_lea.hbm %s6182_s10, 16384 }
  0xc6   : > { %s389_s17 = sshll.u32 %s5475_s5, 4  ;;  %p5292_p4 = scmp.ne.s32.totalorder %s6182_s10, %s5291_s21  ;;  %s390_s17 = int_to_ptr.vmem [resolvable:$true] %s389_s17 }
  0xc7   : > { %p5298_p13 = scmp.lt.u32.totalorder %s5291_s21, %s6182_s10 }
  0xc8   : > { %p5294_p9 = pnand %p5292_p4, %p6232_p8 }
  0xca   : > { %p5295_p12 = pneg %p5294_p9 }
  0xcc   : > { %p5300_p5 = pnand %p5298_p13, %p5295_p12 }
  0xce   : > { %5303 = shalt.err (!%p5300_p5)
}
  0xcf   : > { %s5304_s13 = scalar_lea.vmem %s390_s17, 16384  ;;  %p5312_p7 = scmp.lt.s32.totalorder %s390_s17, %s390_s17 }
  0xd0   : > { %p5305_p3 = scmp.ne.s32.totalorder %s390_s17, %s5304_s13  ;;  %p5313_p1 = scmp.lt.s32.totalorder %s5304_s13, %s5304_s13 }
  0xd2   : > { %p5307_p0 = pnand %p5305_p3, %p6232_p8  ;;  %p5314_p10 = por %p5313_p1, %p5312_p7 }
  0xd4   : > { %p5308_p2 = pneg %p5307_p0 }
  0xd6   : > { %p5315_p11 = pnand %p5314_p10, %p5308_p2 }
  0xd8   : > { %5318 = shalt.err (!%p5315_p11)
}
  0xd9   : > { %4628 = dma.hbm_to_vmem [thread:$0]  (!%p6233_p6), %s6182_s10, 16384, %s390_s17, [#allocation15], %s5473_s27, %s5473_s27, %s5474_s1  }
  0xda   : > { %s5797_s16 = scalar_lea.hbm %s6172_s0, %s5693_s30  ;;  %s407_s26 = scalar_lea.vmem [#allocation2], %s5690_s11 }
  0xdb   : > { %s415_s21 = sshll.u32 %s407_s26, 4  ;;  %s6234_s29 = sand.u32 1, %s5457_s19   ;;  %s416_s21 = int_to_ptr.vmem [resolvable:$true] %s415_s21 }
  0xdc   : > { %s404_s15 = scalar_lea.sflag [#allocation3], %s6234_s29  ;;  %s5319_s22 = scalar_lea.hbm %s5797_s16, 128 }
  0xdd   : > { %p5320_p8 = scmp.ne.s32.totalorder %s5797_s16, %s5319_s22  ;;  %p6235_p4 = scmp.ne.s32.totalorder %s6231_s14, 0 }
  0xde   : > { %s5324_s17 = scalar_lea.hbm %s6172_s0, 256  ;;  %p5325_p6 = scmp.lt.u32.totalorder %s5797_s16, %s6172_s0 }
  0xdf   : > { %p5322_p9 = pnand %p5320_p8, %p6235_p4  ;;  %p5326_p13 = scmp.lt.u32.totalorder %s5324_s17, %s5319_s22 }
  0xe0   : > { %p5328_p3 = scmp.lt.u32.totalorder %s5319_s22, %s5797_s16 }
  0xe1   : > { %p5323_p12 = pneg %p5322_p9  ;;  %p5327_p5 = por %p5326_p13, %p5325_p6 }
  0xe3   : > { %p5329_p0 = por %p5328_p3, %p5327_p5 }
  0xe5   : > { %p5330_p2 = pnand %p5329_p0, %p5323_p12 }
  0xe7   : > { %5333 = shalt.err (!%p5330_p2)
}
  0xe8   : > { %s5334_s13 = scalar_lea.vmem %s416_s21, 128  ;;  %s5476_s6 = smov [#allocation2]  }
  0xe9   : > { %p5335_p7 = scmp.ne.s32.totalorder %s416_s21, %s5334_s13  ;;  %s5339_s9 = sshll.u32 %s5476_s6, 4  ;;  %s5340_s9 = int_to_ptr.vmem [resolvable:$false] %s5339_s9 }
  0xea   : > { %s5341_s5 = scalar_lea.vmem %s5340_s9, 256  ;;  %p5342_p11 = scmp.lt.s32.totalorder %s416_s21, %s5340_s9 }
  0xeb   : > { %p5337_p1 = pnand %p5335_p7, %p6235_p4  ;;  %p5343_p8 = scmp.lt.s32.totalorder %s5341_s5, %s5334_s13 }
  0xed   : > { %p5338_p10 = pneg %p5337_p1  ;;  %p5344_p9 = por %p5343_p8, %p5342_p11 }
  0xef   : > { %p5345_p6 = pnand %p5344_p9, %p5338_p10 }
  0xf1   : > { %5348 = shalt.err (!%p5345_p6)
}
  0xf2   : > { %p6236_p13 = scmp.ne.s32.totalorder %s6229_s12, 0  ;;  %s5823_s29 = scalar_lea.hbm %s6174_s2, %s5693_s30 }
  0xf3   : > { %s444_s22 = scalar_lea.vmem [#allocation7], %s5690_s11  ;;  %s5349_s1 = scalar_lea.hbm %s5823_s29, 128 }
  0xf4   : > { %4632 = dma.hbm_to_vmem [thread:$0]  (!%p6236_p13), %s5797_s16, 128, %s416_s21, %s404_s15  }
  0xf5   : > { %s451_s27 = sshll.u32 %s444_s22, 4  ;;  %p5350_p12 = scmp.ne.s32.totalorder %s5823_s29, %s5349_s1  ;;  %s452_s27 = int_to_ptr.vmem [resolvable:$true] %s451_s27 }
  0xf6   : > { %s5354_s16 = scalar_lea.hbm %s6174_s2, 256  ;;  %p5355_p0 = scmp.lt.u32.totalorder %s5823_s29, %s6174_s2 }
  0xf7   : > { %p5352_p5 = pnand %p5350_p12, %p6235_p4  ;;  %p5356_p2 = scmp.lt.u32.totalorder %s5354_s16, %s5349_s1 }
  0xf8   : > { %p5358_p1 = scmp.lt.u32.totalorder %s5349_s1, %s5823_s29 }
  0xf9   : > { %p5353_p3 = pneg %p5352_p5  ;;  %p5357_p7 = por %p5356_p2, %p5355_p0 }
  0xfb   : > { %p5359_p10 = por %p5358_p1, %p5357_p7 }
  0xfd   : > { %p5360_p11 = pnand %p5359_p10, %p5353_p3 }
  0xff   : > { %5363 = shalt.err (!%p5360_p11)
}
 0x100   : > { %s5364_s11 = scalar_lea.vmem %s452_s27, 128  ;;  %s5477_s30 = smov [#allocation7]  }
 0x101   : > { %p5365_p8 = scmp.ne.s32.totalorder %s452_s27, %s5364_s11  ;;  %s5369_s25 = sshll.u32 %s5477_s30, 4  ;;  %s5370_s25 = int_to_ptr.vmem [resolvable:$false] %s5369_s25 }
 0x102   : > { %s5371_s13 = scalar_lea.vmem %s5370_s25, 256  ;;  %p5372_p12 = scmp.lt.s32.totalorder %s452_s27, %s5370_s25 }
 0x103   : > { %p5367_p9 = pnand %p5365_p8, %p6235_p4  ;;  %p5373_p5 = scmp.lt.s32.totalorder %s5371_s13, %s5364_s11 }
 0x105   : > { %p5368_p6 = pneg %p5367_p9  ;;  %p5374_p13 = por %p5373_p5, %p5372_p12 }
 0x107   : > { %p5375_p0 = pnand %p5374_p13, %p5368_p6 }
 0x109   : > { %5378 = shalt.err (!%p5375_p0)
}
 0x10a   : > { %p6237_p2 = scmp.ne.s32.totalorder %s6229_s12, 0  ;;  %p6238_p3 = scmp.ne.s32.totalorder %s6215_s24, 0 }
 0x10b   : > { %s5847_s14 = sand.u32 (!%p6238_p3), 1, %s5453_s18   ;;  %p6239_p4 = scmp.ne.s32.totalorder (!%p6238_p3), %s6224_s28, 0 }
 0x10c   : > { %4638 = dma.hbm_to_vmem [thread:$0]  (!%p6237_p2), %s5823_s29, 128, %s452_s27, %s5709_s8  }
 0x10d   : > { %460 = sbr.rel (%p6238_p3) target bundleno = 2811 (0xafb), region = 64  ;;  %s5850_s6 = sshll.u32 (!%p6238_p3), %s5847_s14, 3 }
 0x10e   : > { %s463_s9 = scalar_lea.sflag (!%p6238_p3), [#allocation3], %s5847_s14  ;;  %s466_s5 = scalar_lea.vmem (!%p6238_p3), [#allocation2], %s5850_s6 }
 0x114   : > { %5424 = dma.done.wait (%p6239_p4), %s463_s9, 128  }
 0x115   : > { %5426 = vsyncadd (%p6239_p4), %s463_s9, 4294967168  ;;  %s471_s8 = sand.u32 1, %s5564_s23   ;;  %s475_s12 = scalar_lea.vmem [#allocation5], %s5850_s6 }
 0x116   : > { %s472_s24 = scalar_lea.sflag [#allocation6], %s471_s8 }
 0x117   : > { %5428 = dma.done.wait (%p6239_p4), %s472_s24, 256  }
 0x118   : > { %5430 = vsyncadd (%p6239_p4), %s472_s24, 4294967040  ;;  %s484_s20 = scalar_lea.vmem [#allocation7], %s5850_s6  ;;  %p6240_p13 = scmp.eq.s32.totalorder %s5564_s23, 0 }
 0x11a   : > { %5432 = dma.done.wait (%p6240_p13), [#allocation9], 12416   ;;  %p6241_p7 = pmov %p6240_p13 }
 0x11c   : > { %5434 = vsyncadd (%p6241_p7), [#allocation9], 4294954880  ;;  %p6242_p1 = pmov %p6241_p7 }
 0x11e   : > { %5436 = dma.done.wait (%p6242_p1), [#allocation12], 4192   ;;  %p6243_p10 = pmov %p6242_p1 }
 0x11f   : > { %p6244_p11 = pmov %p6242_p1 }
 0x120   : > { %5438 = vsyncadd (%p6243_p10), [#allocation12], 4294963104 }
 0x121   : > { %5440 = dma.done.wait (%p6244_p11), [#allocation15], 32768   ;;  %p6245_p8 = pmov %p6242_p1 }
 0x122   : > { %v5877_v0 = vld [vmem:[%s466_s5] sm:$0xff]  ;;  %v4705_v4 = vld [vmem:[#allocation10 + $0x4] ss:$24 sps:$4 sm:$0xff]   ;;  %v4707_v5 = vld [vmem:[#allocation10] ss:$24 sps:$4 sm:$0xff]   ;;  %s6246_s29 = sld [smem:[#allocation33_spill]] }
 0x123   : > { %5442 = vsyncadd (%p6245_p8), [#allocation15], 4294934528  ;;  %v559_v1 = vunpack.c.l.bf16 %v5877_v0  ;;  %v560_v2 = vunpack.c.h.bf16 %v5877_v0  ;;  %v4708_v6 = vld [vmem:[#allocation10 + $0xc] ss:$24 sps:$4 sm:$0xff]   ;;  %v4710_v7 = vld [vmem:[#allocation10 + $0x8] ss:$24 sps:$4 sm:$0xff]   ;;  %1210 = vmatprep.subr.bf16.mxu0 %v4705_v4 }
 0x124   : > { %v4711_v8 = vld [vmem:[#allocation10 + $0x34] ss:$24 sps:$4 sm:$0xff]   ;;  %1251 = vmatprep.subr.bf16.mxu1 %v4708_v6  ;;  %1211 = vmatpush1.bf16.msra.mxu0 %v4707_v5  ;;  %v4713_v10 = vld [vmem:[#allocation10 + $0x30] ss:$24 sps:$4 sm:$0xff]   ;;  %v4717_v12 = vld [vmem:[#allocation10 + $0x64] ss:$24 sps:$4 sm:$0xff]  }
 0x125   : > { %v563_v3 = vadd.f32 %v560_v2, %v559_v1  ;;  %v4714_v9 = vld [vmem:[#allocation10 + $0x3c] ss:$24 sps:$4 sm:$0xff]   ;;  %1252 = vmatpush1.bf16.msra.mxu1 %v4710_v7  ;;  %v4716_v11 = vld [vmem:[#allocation10 + $0x38] ss:$24 sps:$4 sm:$0xff]   ;;  %1212 = vmatprep.subr.bf16.mxu0 %v4711_v8  ;;  %v4720_v13 = vld [vmem:[#allocation10 + $0x6c] ss:$24 sps:$4 sm:$0xff]  }
 0x126   : > { %1253 = vmatprep.subr.bf16.mxu1 %v4714_v9  ;;  %v4719_v14 = vld [vmem:[#allocation10 + $0x60] ss:$24 sps:$4 sm:$0xff]   ;;  %v4723_v16 = vld [vmem:[#allocation10 + $0x94] ss:$24 sps:$4 sm:$0xff]   ;;  %v4725_v18 = vld [vmem:[#allocation10 + $0x90] ss:$24 sps:$4 sm:$0xff]  }
 0x127   : > { %564 = vadd.xlane.f32.xlu0 %v563_v3  ;;  %v4722_v15 = vld [vmem:[#allocation10 + $0x68] ss:$24 sps:$4 sm:$0xff]   ;;  %v4726_v17 = vld [vmem:[#allocation10 + $0x9c] ss:$24 sps:$4 sm:$0xff]   ;;  %v4728_v19 = vld [vmem:[#allocation10 + $0x98] ss:$24 sps:$4 sm:$0xff]  }
 0x128   : > { %1213 = vmatpush1.bf16.msra.mxu0 %v4713_v10  ;;  %v4729_v20 = vld [vmem:[#allocation10 + $0xc4] ss:$24 sps:$4 sm:$0xff]   ;;  %v4731_v22 = vld [vmem:[#allocation10 + $0xc0] ss:$24 sps:$4 sm:$0xff]   ;;  %v4735_v24 = vld [vmem:[#allocation10 + $0xf4] ss:$24 sps:$4 sm:$0xff]  }
 0x129   : > { %1254 = vmatpush1.bf16.msra.mxu1 %v4716_v11  ;;  %1214 = vmatprep.subr.bf16.mxu0 %v4717_v12  ;;  %v4732_v21 = vld [vmem:[#allocation10 + $0xcc] ss:$24 sps:$4 sm:$0xff]   ;;  %v4734_v23 = vld [vmem:[#allocation10 + $0xc8] ss:$24 sps:$4 sm:$0xff]   ;;  %v4738_v25 = vld [vmem:[#allocation10 + $0xfc] ss:$24 sps:$4 sm:$0xff]  }
 0x12a   : > { %1255 = vmatprep.subr.bf16.mxu1 %v4720_v13  ;;  %v4737_v26 = vld [vmem:[#allocation10 + $0xf0] ss:$24 sps:$4 sm:$0xff]   ;;  %v4741_v28 = vld [vmem:[#allocation10 + $0x124] ss:$24 sps:$4 sm:$0xff]   ;;  %v4743_v30 = vld [vmem:[#allocation10 + $0x120] ss:$24 sps:$4 sm:$0xff]  }
 0x12b   : > { %v4740_v27 = vld [vmem:[#allocation10 + $0xf8] ss:$24 sps:$4 sm:$0xff]   ;;  %v4744_v29 = vld [vmem:[#allocation10 + $0x12c] ss:$24 sps:$4 sm:$0xff]   ;;  %v4746_v31 = vld [vmem:[#allocation10 + $0x128] ss:$24 sps:$4 sm:$0xff]  }
 0x12c   : > { %1215 = vmatpush1.bf16.msra.mxu0 %v4719_v14  ;;  %v4747_v32 = vld [vmem:[#allocation10 + $0x154] ss:$24 sps:$4 sm:$0xff]   ;;  %v4749_v34 = vld [vmem:[#allocation10 + $0x150] ss:$24 sps:$4 sm:$0xff]   ;;  %v4753_v36 = vld [vmem:[#allocation10 + $0x184] ss:$24 sps:$4 sm:$0xff]   ;;  %v580_v14 = vlaneseq }
 0x12d   : > { %1256 = vmatpush1.bf16.msra.mxu1 %v4722_v15  ;;  %1216 = vmatprep.subr.bf16.mxu0 %v4723_v16  ;;  %v4750_v33 = vld [vmem:[#allocation10 + $0x15c] ss:$24 sps:$4 sm:$0xff]   ;;  %v4752_v35 = vld [vmem:[#allocation10 + $0x158] ss:$24 sps:$4 sm:$0xff]   ;;  %v4756_v37 = vld [vmem:[#allocation10 + $0x18c] ss:$24 sps:$4 sm:$0xff]  }
 0x12e   : > { %1257 = vmatprep.subr.bf16.mxu1 %v4726_v17  ;;  %v4755_v38 = vld [vmem:[#allocation10 + $0x180] ss:$24 sps:$4 sm:$0xff]   ;;  %v4759_v40 = vld [vmem:[#allocation10 + $0x1b4] ss:$24 sps:$4 sm:$0xff]   ;;  %v4761_v42 = vld [vmem:[#allocation10 + $0x1b0] ss:$24 sps:$4 sm:$0xff]  }
 0x12f   : > { %v4758_v39 = vld [vmem:[#allocation10 + $0x188] ss:$24 sps:$4 sm:$0xff]   ;;  %v4762_v41 = vld [vmem:[#allocation10 + $0x1bc] ss:$24 sps:$4 sm:$0xff]   ;;  %v4764_v43 = vld [vmem:[#allocation10 + $0x1b8] ss:$24 sps:$4 sm:$0xff]  }
 0x130   : > { %1217 = vmatpush1.bf16.msra.mxu0 %v4725_v18  ;;  %v4765_v44 = vld [vmem:[#allocation10 + $0x1e4] ss:$24 sps:$4 sm:$0xff]   ;;  %v4767_v52 = vld [vmem:[#allocation10 + $0x1e0] ss:$24 sps:$4 sm:$0xff]   ;;  %v4771_v55 = vld [vmem:[#allocation10 + $0x214] ss:$24 sps:$4 sm:$0xff]  }
 0x131   : > { %1258 = vmatpush1.bf16.msra.mxu1 %v4728_v19  ;;  %1218 = vmatprep.subr.bf16.mxu0 %v4729_v20  ;;  %v4768_v53 = vld [vmem:[#allocation10 + $0x1ec] ss:$24 sps:$4 sm:$0xff]   ;;  %v4770_v54 = vld [vmem:[#allocation10 + $0x1e8] ss:$24 sps:$4 sm:$0xff]   ;;  %v4774_v57 = vld [vmem:[#allocation10 + $0x21c] ss:$24 sps:$4 sm:$0xff]  }
 0x132   : > { %1259 = vmatprep.subr.bf16.mxu1 %v4732_v21  ;;  %v4773_v56 = vld [vmem:[#allocation10 + $0x210] ss:$24 sps:$4 sm:$0xff]   ;;  %v4777_v59 = vld [vmem:[#allocation10 + $0x244] ss:$24 sps:$4 sm:$0xff]   ;;  %v4779_v60 = vld [vmem:[#allocation10 + $0x240] ss:$24 sps:$4 sm:$0xff]  }
 0x133   : > { %v4776_v58 = vld [vmem:[#allocation10 + $0x218] ss:$24 sps:$4 sm:$0xff]   ;;  %v4780_v61 = vld [vmem:[#allocation10 + $0x24c] ss:$24 sps:$4 sm:$0xff]   ;;  %v4782_v62 = vld [vmem:[#allocation10 + $0x248] ss:$24 sps:$4 sm:$0xff]  }
 0x134   : > { %1219 = vmatpush1.bf16.msra.mxu0 %v4731_v22  ;;  %v4783_v63 = vld [vmem:[#allocation10 + $0x274] ss:$24 sps:$4 sm:$0xff]   ;;  %v4789_v3 = vld [vmem:[#allocation10 + $0x2a4] ss:$24 sps:$4 sm:$0xff]   ;;  %v4791_v5 = vld [vmem:[#allocation10 + $0x2a0] ss:$24 sps:$4 sm:$0xff]  }
 0x135   : > { %1260 = vmatpush1.bf16.msra.mxu1 %v4734_v23  ;;  %1220 = vmatprep.subr.bf16.mxu0 %v4735_v24  ;;  %v4786_v0 = vld [vmem:[#allocation10 + $0x27c] ss:$24 sps:$4 sm:$0xff]   ;;  %v4792_v4 = vld [vmem:[#allocation10 + $0x2ac] ss:$24 sps:$4 sm:$0xff]   ;;  %v4794_v6 = vld [vmem:[#allocation10 + $0x2a8] ss:$24 sps:$4 sm:$0xff]  }
 0x136   : > { %1261 = vmatprep.subr.bf16.mxu1 %v4738_v25  ;;  %v4795_v7 = vld [vmem:[#allocation10 + $0x2d4] ss:$24 sps:$4 sm:$0xff]   ;;  %v4797_v9 = vld [vmem:[#allocation10 + $0x2d0] ss:$24 sps:$4 sm:$0xff]   ;;  %v5897_v16 = vshrl.u32 %v580_v14, 7  ;;  %s5479_s1 = smov 32  }
 0x137   : > { %v4798_v8 = vld [vmem:[#allocation10 + $0x2dc] ss:$24 sps:$4 sm:$0xff]   ;;  %v4800_v10 = vld [vmem:[#allocation10 + $0x2d8] ss:$24 sps:$4 sm:$0xff]   ;;  %v5910_v19 = vld [vmem:[%s6246_s29] sm:$0xff]  ;;  %s5480_s17 = smov 96  }
 0x138   : > { %1221 = vmatpush1.bf16.msra.mxu0 %v4737_v26  ;;  %v4803_v11 = vld [vmem:[#allocation10 + $0x14] ss:$24 sps:$4 sm:$0xff]   ;;  %v5900_v17 = vsub.s32 0, %v5897_v16  ;;  %v5913_v20 = vsub.s32 1, %v5897_v16  ;;  %vm5481_vm0 = vmmov 0   ;;  %vm1408_vm1 = vcmask 1043456  }
 0x139   : > { %1262 = vmatpush1.bf16.msra.mxu1 %v4740_v27  ;;  %1222 = vmatprep.subr.bf16.mxu0 %v4741_v28  ;;  %v5905_v18 = vld [vmem:[%s6246_s29 + $0x8] sm:$0xff]  ;;  %vm1355_vm2 = vcmask 261120   ;;  %vm1357_vm3 = vcmask 523264   ;;  %vm1359_vm4 = vcmask 785408   ;;  %vm1522_vm5 = vcmask 64512   ;;  %s6247_s25 = sld [smem:[#allocation35_spill]] }
 0x13a   : > { %1263 = vmatprep.subr.bf16.mxu1 %v4744_v29  ;;  %v587_v21 = vrot.slane %v5905_v18, %v5900_v17  ;;  %v583_v22 = vrot.slane %v5910_v19, %v5900_v17  ;;  %v597_v25 = vrot.slane %v5905_v18, %v5913_v20  ;;  %v593_v27 = vrot.slane %v5910_v19, %v5913_v20  ;;  %s6248_s24 = sld [smem:[#allocation28_spill]]  ;;  %s6249_s27 = sld [smem:[#allocation36_spill]] }
 0x13c   : > { %1223 = vmatpush1.bf16.msra.mxu0 %v4743_v30 }
 0x13d   : > { %1264 = vmatpush1.bf16.msra.mxu1 %v4746_v31  ;;  %1224 = vmatprep.subr.bf16.mxu0 %v4747_v32 }
 0x13e   : > { %1265 = vmatprep.subr.bf16.mxu1 %v4750_v33  ;;  %v4801_v33 = vld [vmem:[#allocation10 + $0x10] ss:$24 sps:$4 sm:$0xff]  }
 0x140   : > { %1225 = vmatpush1.bf16.msra.mxu0 %v4749_v34  ;;  %p6250_p6 = scmp.ne.s32.totalorder %s6248_s24, 0 }
 0x141   : > { %1266 = vmatpush1.bf16.msra.mxu1 %v4752_v35  ;;  %1226 = vmatprep.subr.bf16.mxu0 %v4753_v36  ;;  %v4806_v35 = vld [vmem:[#allocation10 + $0x44] ss:$24 sps:$4 sm:$0xff]   ;;  %v4804_v36 = vld [vmem:[#allocation10 + $0x40] ss:$24 sps:$4 sm:$0xff]  }
 0x142   : > { %1267 = vmatprep.subr.bf16.mxu1 %v4756_v37  ;;  %v4809_v37 = vld [vmem:[#allocation10 + $0x74] ss:$24 sps:$4 sm:$0xff]  }
 0x144   : > { %1227 = vmatpush1.bf16.msra.mxu0 %v4755_v38  ;;  %v4807_v38 = vld [vmem:[#allocation10 + $0x70] ss:$24 sps:$4 sm:$0xff]  }
 0x145   : > { %1268 = vmatpush1.bf16.msra.mxu1 %v4758_v39  ;;  %1228 = vmatprep.subr.bf16.mxu0 %v4759_v40  ;;  %v4812_v39 = vld [vmem:[#allocation10 + $0xa4] ss:$24 sps:$4 sm:$0xff]   ;;  %v4810_v40 = vld [vmem:[#allocation10 + $0xa0] ss:$24 sps:$4 sm:$0xff]  }
 0x146   : > { %1269 = vmatprep.subr.bf16.mxu1 %v4762_v41  ;;  %v4815_v41 = vld [vmem:[#allocation10 + $0xd4] ss:$24 sps:$4 sm:$0xff]  }
 0x148   : > { %1229 = vmatpush1.bf16.msra.mxu0 %v4761_v42  ;;  %v4813_v42 = vld [vmem:[#allocation10 + $0xd0] ss:$24 sps:$4 sm:$0xff]  }
 0x149   : > { %1270 = vmatpush1.bf16.msra.mxu1 %v4764_v43  ;;  %1230 = vmatprep.subr.bf16.mxu0 %v4765_v44  ;;  %v4818_v43 = vld [vmem:[#allocation10 + $0x104] ss:$24 sps:$4 sm:$0xff]   ;;  %v4816_v44 = vld [vmem:[#allocation10 + $0x100] ss:$24 sps:$4 sm:$0xff]  }
 0x14a   : > { %1271 = vmatprep.subr.bf16.mxu1 %v4768_v53  ;;  %v4833_v53 = vld [vmem:[#allocation10 + $0x1f4] ss:$24 sps:$4 sm:$0xff]  }
 0x14c   : > { %1231 = vmatpush1.bf16.msra.mxu0 %v4767_v52  ;;  %v4828_v52 = vld [vmem:[#allocation10 + $0x1c0] ss:$24 sps:$4 sm:$0xff]  }
 0x14d   : > { %1272 = vmatpush1.bf16.msra.mxu1 %v4770_v54  ;;  %1232 = vmatprep.subr.bf16.mxu0 %v4771_v55  ;;  %v4831_v54 = vld [vmem:[#allocation10 + $0x1f0] ss:$24 sps:$4 sm:$0xff]   ;;  %v4836_v55 = vld [vmem:[#allocation10 + $0x224] ss:$24 sps:$4 sm:$0xff]  }
 0x14e   : > { %1273 = vmatprep.subr.bf16.mxu1 %v4774_v57  ;;  %v4839_v57 = vld [vmem:[#allocation10 + $0x254] ss:$24 sps:$4 sm:$0xff]  }
 0x150   : > { %1233 = vmatpush1.bf16.msra.mxu0 %v4773_v56  ;;  %v4834_v56 = vld [vmem:[#allocation10 + $0x220] ss:$24 sps:$4 sm:$0xff]  }
 0x151   : > { %1274 = vmatpush1.bf16.msra.mxu1 %v4776_v58  ;;  %1234 = vmatprep.subr.bf16.mxu0 %v4777_v59  ;;  %v4837_v58 = vld [vmem:[#allocation10 + $0x250] ss:$24 sps:$4 sm:$0xff]   ;;  %v4842_v59 = vld [vmem:[#allocation10 + $0x284] ss:$24 sps:$4 sm:$0xff]  }
 0x152   : > { %1275 = vmatprep.subr.bf16.mxu1 %v4780_v61  ;;  %v4845_v61 = vld [vmem:[#allocation10 + $0x2b4] ss:$24 sps:$4 sm:$0xff]  }
 0x154   : > { %1235 = vmatpush1.bf16.msra.mxu0 %v4779_v60  ;;  %v4840_v60 = vld [vmem:[#allocation10 + $0x280] ss:$24 sps:$4 sm:$0xff]  }
 0x155   : > { %1276 = vmatpush1.bf16.msra.mxu1 %v4782_v62  ;;  %1236 = vmatprep.subr.bf16.mxu0 %v4783_v63  ;;  %v4843_v62 = vld [vmem:[#allocation10 + $0x2b0] ss:$24 sps:$4 sm:$0xff]   ;;  %v4848_v63 = vld [vmem:[#allocation10 + $0x2e4] ss:$24 sps:$4 sm:$0xff]  }
 0x156   : > { %1277 = vmatprep.subr.bf16.mxu1 %v4786_v0  ;;  %v4846_v0 = vld [vmem:[#allocation10 + $0x2e0] ss:$24 sps:$4 sm:$0xff]  }
 0x1b4   : > { %v565_v45 = vpop.xlane.xlu0 %564 }
 0x1b5   : > { %v567_v46 = vmul.f32 0.00390625, %v565_v45  ;;  %v4821_v45 = vld [vmem:[#allocation10 + $0x134] ss:$24 sps:$4 sm:$0xff]  }
 0x1b7   : > { %v5887_v47 = vsub.f32 %v559_v1, %v567_v46  ;;  %v5891_v48 = vsub.f32 %v560_v2, %v567_v46  ;;  %v4785_v1 = vld [vmem:[#allocation10 + $0x270] ss:$24 sps:$4 sm:$0xff]  }
 0x1b8   : > { %v4788_v2 = vld [vmem:[#allocation10 + $0x278] ss:$24 sps:$4 sm:$0xff]   ;;  %1237 = vmatpush1.bf16.msra.mxu0 %v4785_v1  ;;  %v5478_v1 = vmov 0.0  }
 0x1b9   : > { %v570_v49 = vmul.f32 %v5887_v47, %v5887_v47  ;;  %v571_v50 = vmul.f32 %v5891_v48, %v5891_v48  ;;  %1278 = vmatpush1.bf16.msra.mxu1 %v4788_v2  ;;  %1238 = vmatprep.subr.bf16.mxu0 %v4789_v3  ;;  %v4819_v46 = vld [vmem:[#allocation10 + $0x130] ss:$24 sps:$4 sm:$0xff]   ;;  %v5941_v2 = vsub.s32 2, %v5897_v16  ;;  %v698_v3 = vld [vmem:[#allocation11] sm:$0x3f] }
 0x1ba   : > { %1279 = vmatprep.subr.bf16.mxu1 %v4792_v4  ;;  %v5944_v4 = vsub.s32 3, %v5897_v16 }
 0x1bb   : > { %v572_v51 = vadd.f32 %v571_v50, %v570_v49  ;;  %v4827_v49 = vld [vmem:[#allocation10 + $0x194] ss:$24 sps:$4 sm:$0xff]   ;;  %v4825_v50 = vld [vmem:[#allocation10 + $0x190] ss:$24 sps:$4 sm:$0xff]  }
 0x1bc   : > { %1239 = vmatpush1.bf16.msra.mxu0 %v4791_v5  ;;  %v711_v5 = vrot.slane %v698_v3, %v5941_v2 }
 0x1bd   : > { %573 = vadd.xlane.f32.xlu0 %v572_v51  ;;  %1280 = vmatpush1.bf16.msra.mxu1 %v4794_v6  ;;  %v4830_v51 = vld [vmem:[#allocation10 + $0x1c4] ss:$24 sps:$4 sm:$0xff]   ;;  %v715_v6 = vrot.slane %v698_v3, %v5944_v4 }
 0x1be   : > { %1240 = vmatprep.subr.bf16.mxu0 %v4795_v7  ;;  %1281 = vmatprep.subr.bf16.mxu1 %v4798_v8 }
 0x1c0   : > { %1241 = vmatpush1.bf16.msra.mxu0 %v4797_v9 }
 0x1c1   : > { %1282 = vmatpush1.bf16.msra.mxu1 %v4800_v10  ;;  %1292 = vmatprep.subr.bf16.mxu0 %v4803_v11 }
 0x1c2   : > { %4566 = vmatprep.subr.bf16.mxu1 %v5478_v1 }
 0x24a   : > { %v574_v12 = vpop.xlane.xlu0 %573 }
 0x24b   : > { %v575_v13 = vmul.f32 0.00390625, %v574_v12 }
 0x24d   : > { %v576_v15 = vadd.f32 1e-05, %v575_v13 }
 0x24f   : > { %5089 = vrsqrt.f32 %v576_v15 }
 0x259   : > { %v5090_v23 = vpop.eup %5089 }
 0x25a   : > { %v579_v24 = vmul.f32 %v5090_v23, %v5891_v48  ;;  %v578_v26 = vmul.f32 %v5090_v23, %v5887_v47  ;;  %v4824_v47 = vld [vmem:[#allocation10 + $0x164] ss:$24 sps:$4 sm:$0xff]   ;;  %v4822_v48 = vld [vmem:[#allocation10 + $0x160] ss:$24 sps:$4 sm:$0xff]   ;;  %v703_v23 = vrot.slane %v698_v3, %v5900_v17 }
 0x25c   : > { %v589_v28 = vmul.f32 %v587_v21, %v579_v24  ;;  %v588_v29 = vmul.f32 %v583_v22, %v578_v26  ;;  %v707_v24 = vrot.slane %v698_v3, %v5913_v20 }
 0x25e   : > { %v5925_v30 = vadd.f32 %v597_v25, %v589_v28  ;;  %v5927_v31 = vadd.f32 %v593_v27, %v588_v29 }
 0x260   : > { %v601_v32 = vpack.c.bf16 %v5925_v30, %v5925_v30  ;;  %v5933_v34 = vpack.c.bf16 %v5927_v31, %v5927_v31 }
 0x262   : > { %1242 = vmatprep.mubr.bf16.mxu0 %v601_v32  ;;  %1283 = vmatprep.mubr.bf16.mxu1 %v601_v32 }
 0x263   : > { %1243 = vmatmul.mubr.bf16.vlgmr.msra.gmra.mrb[0].mxu0 %v5933_v34  ;;  %1284 = vmatmul.mubr.bf16.vlgmr.msra.gmra.mrb[0].mxu1 %v5933_v34 }
 0x264   : > { %1293 = vmatpush1.bf16.msra.mxu0 %v4801_v33  ;;  %1324 = vmatprep.mubr.bf16.mxu0 %v601_v32  ;;  %v5967_v32 = vsub.s32 4, %v5897_v16  ;;  %v5970_v33 = vsub.s32 5, %v5897_v16 }
 0x265   : > { %1294 = vmatprep.subr.bf16.mxu0 %v4806_v35  ;;  %4568 = vmatprep.mubr.msk.bf16.mxu1 %vm5481_vm0, %v5478_v1 }
 0x266   : > { %v723_v35 = vrot.slane %v698_v3, %v5970_v33 }
 0x268   : > { %1295 = vmatpush1.bf16.msra.mxu0 %v4804_v36 }
 0x269   : > { %1296 = vmatprep.subr.bf16.mxu0 %v4809_v37 }
 0x26c   : > { %1297 = vmatpush1.bf16.msra.mxu0 %v4807_v38 }
 0x26d   : > { %1298 = vmatprep.subr.bf16.mxu0 %v4812_v39 }
 0x270   : > { %1299 = vmatpush1.bf16.msra.mxu0 %v4810_v40 }
 0x271   : > { %1300 = vmatprep.subr.bf16.mxu0 %v4815_v41 }
 0x274   : > { %1301 = vmatpush1.bf16.msra.mxu0 %v4813_v42 }
 0x275   : > { %1302 = vmatprep.subr.bf16.mxu0 %v4818_v43 }
 0x278   : > { %1303 = vmatpush1.bf16.msra.mxu0 %v4816_v44 }
 0x279   : > { %1304 = vmatprep.subr.bf16.mxu0 %v4821_v45 }
 0x27c   : > { %1305 = vmatpush1.bf16.msra.mxu0 %v4819_v46 }
 0x27d   : > { %1306 = vmatprep.subr.bf16.mxu0 %v4824_v47 }
 0x280   : > { %1307 = vmatpush1.bf16.msra.mxu0 %v4822_v48 }
 0x281   : > { %1308 = vmatprep.subr.bf16.mxu0 %v4827_v49 }
 0x284   : > { %1309 = vmatpush1.bf16.msra.mxu0 %v4825_v50 }
 0x285   : > { %1310 = vmatprep.subr.bf16.mxu0 %v4830_v51 }
 0x288   : > { %1311 = vmatpush1.bf16.msra.mxu0 %v4828_v52 }
 0x289   : > { %1312 = vmatprep.subr.bf16.mxu0 %v4833_v53 }
 0x28c   : > { %1313 = vmatpush1.bf16.msra.mxu0 %v4831_v54 }
 0x28d   : > { %1314 = vmatprep.subr.bf16.mxu0 %v4836_v55  ;;  %v1334_v55 = vld [vmem:[%s484_s20] sm:$0xff]  ;;  %s556_s20 = scalar_lea.vmem [#allocation17], %s5850_s6 }
 0x28e   : > { %s3948_s28 = sshll.u32 %s556_s20, 4  ;;  %s6130_s28 = int_to_ptr.vmem [resolvable:$true] %s3948_s28 }
 0x28f   : > { %s5379_s3 = scalar_lea.vmem %s6130_s28, 128 }
 0x290   : > { %1315 = vmatpush1.bf16.msra.mxu0 %v4834_v56  ;;  %p5380_p9 = scmp.ne.s32.totalorder %s6130_s28, %s5379_s3 }
 0x291   : > { %1316 = vmatprep.subr.bf16.mxu0 %v4839_v57 }
 0x292   : > { %p5381_p12 = pnand %p5380_p9, %p6250_p6 }
 0x294   : > { %1317 = vmatpush1.bf16.msra.mxu0 %v4837_v58  ;;  %v1333_v58 = vld [vmem:[%s475_s12] sm:$0xff]  ;;  %s4545_s12 = sshll.u32 %s5564_s23, 7  ;;  %p5382_p5 = pneg %p5381_p12 }
 0x295   : > { %1318 = vmatprep.subr.bf16.mxu0 %v4842_v59  ;;  %s5482_s23 = smov [#allocation17]  }
 0x296   : > { %s5383_s6 = sshll.u32 %s5482_s23, 4  ;;  %s5384_s6 = int_to_ptr.vmem [resolvable:$false] %s5383_s6 }
 0x297   : > { %s5385_s16 = scalar_lea.vmem %s5384_s6, 256  ;;  %p5386_p0 = scmp.lt.s32.totalorder %s6130_s28, %s5384_s6 }
 0x298   : > { %1319 = vmatpush1.bf16.msra.mxu0 %v4840_v60  ;;  %p5387_p2 = scmp.lt.s32.totalorder %s5385_s16, %s5379_s3 }
 0x299   : > { %1320 = vmatprep.subr.bf16.mxu0 %v4845_v61 }
 0x29a   : > { %p5388_p3 = por %p5387_p2, %p5386_p0 }
 0x29c   : > { %1321 = vmatpush1.bf16.msra.mxu0 %v4843_v62  ;;  %p5389_p4 = pnand %p5388_p3, %p5382_p5 }
 0x29d   : > { %1322 = vmatprep.subr.bf16.mxu0 %v4848_v63 }
 0x2a0   : > { %1323 = vmatpush1.bf16.msra.mxu0 %v4846_v0 }
 0x2a1   : > { %4554 = vmatprep.subr.bf16.mxu0 %v5478_v1 }
 0x2a3   : > { %1325 = vmatmul.mubr.bf16.vlgmr.msra.gmra.mrb[4].mxu0 %v5933_v34  ;;  %v719_v34 = vrot.slane %v698_v3, %v5967_v32 }
 0x2a4   : > { %4556 = vmatprep.mubr.msk.bf16.mxu0 %vm5481_vm0, %v5478_v1 }
 0x336   : > { %v1244_v7 = vpop.f32.mrb[0].mxu0  ;;  %v1285_v8 = vpop.f32.mrb[0].mxu1 }
 0x337   : > { %v5948_v9 = vadd.f32 %v1285_v8, %v711_v5  ;;  %v1246_v10 = vpop.f32.mrb[1].mxu0  ;;  %v1287_v11 = vpop.f32.mrb[1].mxu1  ;;  %v5957_v25 = vadd.f32 %v1244_v7, %v703_v23 }
 0x338   : > { %v5950_v12 = vadd.f32 %v1287_v11, %v715_v6  ;;  %v1248_v13 = vpop.f32.mrb[2].mxu0  ;;  %v1289_v14 = vpop.f32.mrb[2].mxu1  ;;  %v1247_v26 = vadd.f32 %v1246_v10, %v707_v24 }
 0x339   : > { %v1249_v15 = vpop.f32.mrb[3].mxu0  ;;  %v1290_v21 = vpop.f32.mrb[3].mxu1  ;;  %v1370_v22 = vsub.f32 0.0, %v5948_v9  ;;  %v1337_v27 = vsub.f32 0.0, %v5957_v25  ;;  %v1368_v63 = vmul.f32 %v1333_v58, %v5948_v9 }
 0x33a   : > { %1385 = vrot.lane.b32.xlu1 %v5950_v12, %s5479_s1  ;;  %v1371_v28 = vsub.f32 0.0, %v5950_v12  ;;  %v1338_v29 = vsub.f32 0.0, %v1247_v26  ;;  %v1369_v0 = vmul.f32 %v1333_v58, %v5950_v12  ;;  %v1336_v13 = vmul.f32 %v1333_v58, %v1247_v26 }
 0x33b   : > { %1373 = vrot.lane.b32.xlu0 %v1370_v22, %s5480_s17 }
 0x33e   : > { %1377 = vrot.lane.b32.xlu1 %v5948_v9, %s5479_s1 }
 0x342   : > { %1352 = vrot.lane.b32.xlu1 %v1247_v26, %s5479_s1 }
 0x346   : > { %1340 = vrot.lane.b32.xlu1 %v1337_v27, %s5480_s17 }
 0x34a   : > { %1381 = vrot.lane.b32.xlu1 %v1371_v28, %s5480_s17  ;;  %v1335_v28 = vmul.f32 %v1333_v58, %v5957_v25 }
 0x34e   : > { %1348 = vrot.lane.b32.xlu1 %v1338_v29, %s5480_s17  ;;  %s3934_s17 = scalar_lea.sflag [#allocation4], %s5847_s14 }
 0x352   : > { %1344 = vrot.lane.b32.xlu1 %v5957_v25, %s5479_s1  ;;  %s6128_s1 = scalar_lea.hbm %s6249_s27, %s4545_s12 }
 0x376   : > { %v1326_v36 = vpop.f32.mrb[4].mxu0 }
 0x377   : > { %v1328_v37 = vpop.f32.mrb[5].mxu0  ;;  %v1327_v38 = vadd.f32 %v1326_v36, %v719_v34 }
 0x378   : > { %v1329_v39 = vadd.f32 %v1328_v37, %v723_v35  ;;  %v1330_v40 = vpop.f32.mrb[6].mxu0 }
 0x379   : > { %v1331_v41 = vpop.f32.mrb[7].mxu0  ;;  %v1404_v43 = vpack.c.bf16 %v1327_v38, %v1327_v38 }
 0x37a   : > { %v1405_v42 = vpack.c.bf16 %v1329_v39, %v1329_v39 }
 0x37c   : > { %v1432_v44 = vrot.slane %v1405_v42, 4 }
 0x37e   : > { %v5975_v45 = vsel %vm1408_vm1, %v1404_v43, %v1432_v44  ;;  %v1441_v44 = vld [vmem:[#allocation8] sm:$0xff] }
 0x37f   : > { %v4245_v46 = vcombine.low %v5975_v45, %v5975_v45 }
 0x381   : > { %v1551_v47 = vsel %vm1408_vm1, %v4245_v46, 0 }
 0x382   : > { %4567 = vmatpush3.bf16.msra.mxu1 %v1551_v47 }
 0x383   : > { %4572 = vmatprep.subr.bf16.mxu1 %v5478_v1 }
 0x3ac   : > { %v1386_v48 = vpop.permute.xlu1 %1385 }
 0x3ad   : > { %v1374_v50 = vpop.permute.xlu0 %1373 }
 0x3b0   : > { %v1378_v49 = vpop.permute.xlu1 %1377 }
 0x3b1   : > { %v1388_v52 = vsel %vm1355_vm2, %v1374_v50, %v1378_v49 }
 0x3b2   : > { %v1389_v53 = vsel %vm1357_vm3, %v1388_v52, %v1374_v50 }
 0x3b3   : > { %v1390_v56 = vsel %vm1359_vm4, %v1389_v53, %v1378_v49 }
 0x3b4   : > { %v1353_v51 = vpop.permute.xlu1 %1352  ;;  %v1394_v60 = vmul.f32 %v1390_v56, %v1334_v55 }
 0x3b6   : > { %v1396_v7 = vadd.f32 %v1394_v60, %v1368_v63 }
 0x3b8   : > { %v1341_v54 = vpop.permute.xlu1 %1340  ;;  %v1402_v23 = vpack.c.bf16 %v1396_v7, %v1396_v7 }
 0x3bc   : > { %v1382_v57 = vpop.permute.xlu1 %1381 }
 0x3bd   : > { %v1391_v59 = vsel %vm1355_vm2, %v1382_v57, %v1386_v48 }
 0x3be   : > { %v1392_v61 = vsel %vm1357_vm3, %v1391_v59, %v1382_v57 }
 0x3bf   : > { %v1393_v62 = vsel %vm1359_vm4, %v1392_v61, %v1386_v48 }
 0x3c0   : > { %v1395_v3 = vmul.f32 %v1393_v62, %v1334_v55  ;;  %v1349_v5 = vpop.permute.xlu1 %1348 }
 0x3c1   : > { %v1361_v6 = vsel %vm1355_vm2, %v1349_v5, %v1353_v51 }
 0x3c2   : > { %v1397_v8 = vadd.f32 %v1395_v3, %v1369_v0  ;;  %v1362_v10 = vsel %vm1357_vm3, %v1361_v6, %v1349_v5 }
 0x3c3   : > { %v1363_v11 = vsel %vm1359_vm4, %v1362_v10, %v1353_v51 }
 0x3c4   : > { %v1403_v14 = vpack.c.bf16 %v1397_v8, %v1397_v8  ;;  %v1365_v15 = vmul.f32 %v1363_v11, %v1334_v55  ;;  %v1345_v21 = vpop.permute.xlu1 %1344 }
 0x3c5   : > { %v1356_v22 = vsel %vm1355_vm2, %v1341_v54, %v1345_v21 }
 0x3c6   : > { %v1420_v9 = vrot.slane %v1403_v14, 4  ;;  %v1367_v24 = vadd.f32 %v1365_v15, %v1336_v13  ;;  %v1358_v12 = vsel %vm1357_vm3, %v1356_v22, %v1341_v54  ;;  %v4246_v13 = vcombine.high %v5975_v45, %v5975_v45  ;;  %v4851_v15 = vld [vmem:[#allocation13 + $0x4] ss:$8 sps:$4 sm:$0xff]   ;;  %v4852_v45 = vld [vmem:[#allocation13 + $0x10] ss:$8 sps:$4 sm:$0xff]  }
 0x3c7   : > { %v1360_v27 = vsel %vm1359_vm4, %v1358_v12, %v1345_v21  ;;  %v4854_v12 = vld [vmem:[#allocation13 + $0x14] ss:$8 sps:$4 sm:$0xff]  }
 0x3c8   : > { %v1399_v29 = vmul.f32 0.088388346, %v1367_v24  ;;  %v1364_v34 = vmul.f32 %v1360_v27, %v1334_v55  ;;  %v1423_v35 = vsel %vm1408_vm1, %v1402_v23, %v1420_v9  ;;  %v1597_v21 = vsel %vm1408_vm1, %v4246_v13, 0  ;;  %v4849_v9 = vld [vmem:[#allocation13] ss:$8 sps:$4 sm:$0xff]  }
 0x3c9   : > { %v4243_v36 = vcombine.low %v1423_v35, %v1423_v35  ;;  %v4244_v43 = vcombine.high %v1423_v35, %v1423_v35  ;;  %v4857_v27 = vld [vmem:[#allocation13 + $0x24] ss:$8 sps:$4 sm:$0xff]   ;;  %v4861_v35 = vld [vmem:[#allocation13 + $0x40] ss:$8 sps:$4 sm:$0xff]  }
 0x3ca   : > { %v1401_v26 = vpack.c.bf16 %v1399_v29, %v1399_v29  ;;  %v1366_v37 = vadd.f32 %v1364_v34, %v1335_v28  ;;  %v4855_v28 = vld [vmem:[#allocation13 + $0x20] ss:$8 sps:$4 sm:$0xff]   ;;  %v4860_v29 = vld [vmem:[#allocation13 + $0x34] ss:$8 sps:$4 sm:$0xff]   ;;  %v4858_v34 = vld [vmem:[#allocation13 + $0x30] ss:$8 sps:$4 sm:$0xff]  }
 0x3cb   : > { %4555 = vmatpush3.bf16.xpose.msra.mxu0 %v4243_v36  ;;  %v4866_v36 = vld [vmem:[#allocation13 + $0x54] ss:$8 sps:$4 sm:$0xff]  }
 0x3cc   : > { %v1398_v38 = vmul.f32 0.088388346, %v1366_v37  ;;  %4560 = vmatprep.subr.bf16.mxu0 %v5478_v1  ;;  %v1407_v39 = vrot.slane %v1401_v26, 4  ;;  %v4864_v26 = vld [vmem:[#allocation13 + $0x50] ss:$8 sps:$4 sm:$0xff]  }
 0x3cd   : > { %v4869_v37 = vld [vmem:[#allocation13 + $0x64] ss:$8 sps:$4 sm:$0xff]  }
 0x3ce   : > { %v1400_v40 = vpack.c.bf16 %v1398_v38, %v1398_v38  ;;  %v4867_v38 = vld [vmem:[#allocation13 + $0x60] ss:$8 sps:$4 sm:$0xff]  }
 0x3d0   : > { %v1411_v41 = vsel %vm1408_vm1, %v1400_v40, %v1407_v39  ;;  %v4872_v39 = vld [vmem:[#allocation13 + $0x74] ss:$8 sps:$4 sm:$0xff]   ;;  %v4870_v40 = vld [vmem:[#allocation13 + $0x70] ss:$8 sps:$4 sm:$0xff]  }
 0x3d1   : > { %v4241_v42 = vcombine.low %v1411_v41, %v1411_v41  ;;  %v4242_v25 = vcombine.high %v1411_v41, %v1411_v41  ;;  %v4875_v41 = vld [vmem:[#allocation13 + $0x84] ss:$8 sps:$4 sm:$0xff]  }
 0x3d3   : > { %4557 = vmatmul.mubr.bf16.vlgmr.msra.gmra.mrb[8].mxu0 %v4241_v42  ;;  %v4873_v42 = vld [vmem:[#allocation13 + $0x80] ss:$8 sps:$4 sm:$0xff]  }
 0x3d4   : > { %4561 = vmatpush3.bf16.xpose.msra.mxu0 %v4244_v43  ;;  %4562 = vmatprep.mubr.msk.bf16.mxu0 %vm5481_vm0, %v5478_v1  ;;  %v4878_v43 = vld [vmem:[#allocation13 + $0x94] ss:$8 sps:$4 sm:$0xff]  }
 0x3db   : > { %4563 = vmatmul.mubr.bf16.vlgmr.msra.gmra.mrb[12].mxu0 %v4242_v25  ;;  %v4876_v25 = vld [vmem:[#allocation13 + $0x90] ss:$8 sps:$4 sm:$0xff]  }
 0x4a6   : > { %v1476_v46 = vpop.f32.mrb[8].mxu0 }
 0x4a7   : > { %v1477_v47 = vadd.f32 %v1476_v46, %v1441_v44  ;;  %v4558_v48 = vpop.f32.mrb[9].mxu0  ;;  %v4879_v46 = vld [vmem:[#allocation13 + $0xa0] ss:$8 sps:$4 sm:$0xff]  }
 0x4a8   : > { %v1479_v49 = vpop.f32.mrb[10].mxu0  ;;  %v4882_v48 = vld [vmem:[#allocation13 + $0xb0] ss:$8 sps:$4 sm:$0xff]  }
 0x4a9   : > { %v4559_v50 = vpop.f32.mrb[11].mxu0  ;;  %v1523_v51 = vsel %vm1522_vm5, %v1477_v47, -inf  ;;  %v4887_v49 = vld [vmem:[#allocation13 + $0xc4] ss:$8 sps:$4 sm:$0xff]  }
 0x4aa   : > { %1524 = vmax.xlane.f32.xlu1 %v1523_v51  ;;  %v4885_v50 = vld [vmem:[#allocation13 + $0xc0] ss:$8 sps:$4 sm:$0xff]   ;;  %v4890_v51 = vld [vmem:[#allocation13 + $0xd4] ss:$8 sps:$4 sm:$0xff]  }
 0x4ae   : > { %v1516_v52 = vpop.f32.mrb[12].mxu0 }
 0x4af   : > { %v1517_v53 = vadd.f32 %v1516_v52, %v1441_v44  ;;  %v4564_v54 = vpop.f32.mrb[13].mxu0  ;;  %v4881_v44 = vld [vmem:[#allocation13 + $0xa4] ss:$8 sps:$4 sm:$0xff]   ;;  %v4888_v52 = vld [vmem:[#allocation13 + $0xd0] ss:$8 sps:$4 sm:$0xff]  }
 0x4b0   : > { %v1519_v55 = vpop.f32.mrb[14].mxu0  ;;  %v4891_v54 = vld [vmem:[#allocation13 + $0xe0] ss:$8 sps:$4 sm:$0xff]  }
 0x4b1   : > { %v4565_v56 = vpop.f32.mrb[15].mxu0  ;;  %v1526_v57 = vsel %vm1522_vm5, %v1517_v53, -inf  ;;  %v4896_v55 = vld [vmem:[#allocation13 + $0xf4] ss:$8 sps:$4 sm:$0xff]  }
 0x4b2   : > { %1527 = vmax.xlane.f32.xlu0 %v1526_v57  ;;  %v4894_v56 = vld [vmem:[#allocation13 + $0xf0] ss:$8 sps:$4 sm:$0xff]  }
 0x537   : > { %v1525_v58 = vpop.xlane.xlu1 %1524 }
 0x538   : > { %v1529_v59 = vsub.f32 %v1477_v47, %v1525_v58  ;;  %v4884_v47 = vld [vmem:[#allocation13 + $0xb4] ss:$8 sps:$4 sm:$0xff]  }
 0x53a   : > { %v1531_v60 = vmul.f32 1.442695, %v1529_v59 }
 0x53c   : > { %5091 = vpow2.f32 %v1531_v60 }
 0x53f   : > { %v1528_v61 = vpop.xlane.xlu0 %1527 }
 0x540   : > { %v1530_v62 = vsub.f32 %v1517_v53, %v1528_v61  ;;  %v4893_v53 = vld [vmem:[#allocation13 + $0xe4] ss:$8 sps:$4 sm:$0xff]  }
 0x542   : > { %v1533_v63 = vmul.f32 1.442695, %v1530_v62 }
 0x544   : > { %5093 = vpow2.f32 %v1533_v63 }
 0x546   : > { %v5092_v0 = vpop.eup %5091 }
 0x547   : > { %v1535_v3 = vsel %vm1522_vm5, %v5092_v0, 0.0 }
 0x548   : > { %1536 = vadd.xlane.f32.xlu0 %v1535_v3 }
 0x54e   : > { %v5094_v5 = vpop.eup %5093 }
 0x54f   : > { %v1538_v6 = vsel %vm1522_vm5, %v5094_v5, 0.0 }
 0x550   : > { %1539 = vadd.xlane.f32.xlu1 %v1538_v6  ;;  %v1678_v6 = vrot.slane %v5910_v19, %v5967_v32 }
 0x5d5   : > { %v1537_v7 = vpop.xlane.xlu0 %1536 }
 0x5d6   : > { %5095 = vrcp.f32 %v1537_v7  ;;  %v1682_v7 = vrot.slane %v5905_v18, %v5967_v32  ;;  %v1930_v18 = vld [vmem:[#allocation14 + $0x20] sm:$0xff] }
 0x5dd   : > { %v1540_v8 = vpop.xlane.xlu1 %1539 }
 0x5de   : > { %5097 = vrcp.f32 %v1540_v8 }
 0x5e0   : > { %v5096_v10 = vpop.eup %5095 }
 0x5e1   : > { %v1543_v11 = vmul.f32 %v5096_v10, %v5092_v0 }
 0x5e3   : > { %v1545_v14 = vpack.c.bf16 %v1543_v11, %v1543_v11  ;;  %v1884_v11 = vmul.f32 7.483315, %v5927_v31  ;;  %v1931_v31 = vld [vmem:[#allocation14 + $0x28] sm:$0xff] }
 0x5e5   : > { %4569 = vmatmul.mubr.msk.bf16.vlgmr.msra.gmra.mrb[4].mxu1 %vm1522_vm5, %v1545_v14 }
 0x5e6   : > { %4573 = vmatpush3.bf16.msra.mxu1 %v1597_v21  ;;  %4574 = vmatprep.mubr.msk.bf16.mxu1 %vm5481_vm0, %v5478_v1  ;;  %v4863_v1 = vld [vmem:[#allocation13 + $0x44] ss:$8 sps:$4 sm:$0xff]  }
 0x5e7   : > { %1843 = vmatprep.subr.bf16.mxu1 %v4851_v15  ;;  %v1885_v15 = vmul.f32 7.483315, %v5925_v30 }
 0x5e8   : > { %v5098_v22 = vpop.eup %5097 }
 0x5e9   : > { %v1544_v23 = vmul.f32 %v5098_v22, %v5094_v5 }
 0x5eb   : > { %v1546_v24 = vpack.c.bf16 %v1544_v23, %v1544_v23 }
 0x5ed   : > { %4575 = vmatmul.mubr.msk.bf16.vlgmr.msra.gmra.mrb[8].mxu1 %vm1522_vm5, %v1546_v24  ;;  %v1926_v24 = vld [vmem:[#allocation14] sm:$0xff] }
 0x5ee   : > { %1844 = vmatpush1.bf16.msra.mxu1 %v4849_v9 }
 0x5ef   : > { %1845 = vmatprep.subr.bf16.mxu1 %v4854_v12  ;;  %v1927_v12 = vld [vmem:[#allocation14 + $0x8] sm:$0xff] }
 0x5f0   : > { %v4284_v30 = vcombine.high %v1927_v12, %v1931_v31 }
 0x5f2   : > { %1846 = vmatpush1.bf16.msra.mxu1 %v4852_v45  ;;  %v4281_v45 = vcombine.low %v1926_v24, %v1930_v18 }
 0x5f3   : > { %1847 = vmatprep.subr.bf16.mxu1 %v4857_v27  ;;  %v4282_v27 = vcombine.high %v1926_v24, %v1930_v18  ;;  %v1986_v24 = vld [vmem:[#allocation14 + $0x1e0] sm:$0xff]  ;;  %v1983_v18 = vld [vmem:[#allocation14 + $0x1c8] sm:$0xff] }
 0x5f5   : > { %2736 = vmatprep.subr.bf16.mxu0 %v4282_v27 }
 0x5f6   : > { %1848 = vmatpush1.bf16.msra.mxu1 %v4855_v28  ;;  %v1934_v28 = vld [vmem:[#allocation14 + $0x40] sm:$0xff]  ;;  %2737 = vmatpush1.bf16.msra.mxu0 %v4281_v45 }
 0x5f7   : > { %1849 = vmatprep.subr.bf16.mxu1 %v4860_v29  ;;  %v1938_v29 = vld [vmem:[#allocation14 + $0x60] sm:$0xff] }
 0x5fa   : > { %1850 = vmatpush1.bf16.msra.mxu1 %v4858_v34  ;;  %v4283_v34 = vcombine.low %v1927_v12, %v1931_v31  ;;  %v1987_v12 = vld [vmem:[#allocation14 + $0x1e8] sm:$0xff] }
 0x5fb   : > { %1851 = vmatprep.subr.bf16.mxu1 %v4863_v1  ;;  %v4290_v1 = vcombine.high %v1934_v28, %v1938_v29 }
 0x5fd   : > { %2738 = vmatprep.subr.bf16.mxu0 %v4290_v1  ;;  %v1995_v1 = vld [vmem:[#allocation14 + $0x228] sm:$0xff] }
 0x5fe   : > { %1852 = vmatpush1.bf16.msra.mxu1 %v4861_v35  ;;  %v1935_v35 = vld [vmem:[#allocation14 + $0x48] sm:$0xff] }
 0x5ff   : > { %1853 = vmatprep.subr.bf16.mxu1 %v4866_v36  ;;  %v1939_v36 = vld [vmem:[#allocation14 + $0x68] sm:$0xff] }
 0x602   : > { %1854 = vmatpush1.bf16.msra.mxu1 %v4864_v26  ;;  %v1942_v26 = vld [vmem:[#allocation14 + $0x80] sm:$0xff] }
 0x603   : > { %1855 = vmatprep.subr.bf16.mxu1 %v4869_v37  ;;  %v4292_v37 = vcombine.high %v1935_v35, %v1939_v36 }
 0x606   : > { %1856 = vmatpush1.bf16.msra.mxu1 %v4867_v38  ;;  %v1946_v38 = vld [vmem:[#allocation14 + $0xa0] sm:$0xff] }
 0x607   : > { %1857 = vmatprep.subr.bf16.mxu1 %v4872_v39  ;;  %v1943_v39 = vld [vmem:[#allocation14 + $0x88] sm:$0xff] }
 0x60a   : > { %1858 = vmatpush1.bf16.msra.mxu1 %v4870_v40  ;;  %v1947_v40 = vld [vmem:[#allocation14 + $0xa8] sm:$0xff] }
 0x60b   : > { %1859 = vmatprep.subr.bf16.mxu1 %v4875_v41  ;;  %v4289_v41 = vcombine.low %v1934_v28, %v1938_v29  ;;  %v4340_v28 = vcombine.high %v1983_v18, %v1987_v12  ;;  %v1990_v29 = vld [vmem:[#allocation14 + $0x200] sm:$0xff] }
 0x60d   : > { %2739 = vmatpush1.bf16.msra.mxu0 %v4289_v41  ;;  %v2003_v41 = vld [vmem:[#allocation14 + $0x268] sm:$0xff] }
 0x60e   : > { %1860 = vmatpush1.bf16.msra.mxu1 %v4873_v42  ;;  %v4291_v42 = vcombine.low %v1935_v35, %v1939_v36  ;;  %v4339_v36 = vcombine.low %v1983_v18, %v1987_v12  ;;  %v2031_v18 = vld [vmem:[#allocation14 + $0x348] sm:$0xff] }
 0x60f   : > { %1861 = vmatprep.subr.bf16.mxu1 %v4878_v43  ;;  %v4298_v43 = vcombine.high %v1942_v26, %v1946_v38 }
 0x611   : > { %2740 = vmatprep.subr.bf16.mxu0 %v4298_v43 }
 0x612   : > { %1862 = vmatpush1.bf16.msra.mxu1 %v4876_v25  ;;  %v4300_v25 = vcombine.high %v1943_v39, %v1947_v40 }
 0x613   : > { %1863 = vmatprep.subr.bf16.mxu1 %v4881_v44  ;;  %v1950_v44 = vld [vmem:[#allocation14 + $0xc0] sm:$0xff] }
 0x616   : > { %1864 = vmatpush1.bf16.msra.mxu1 %v4879_v46  ;;  %v1954_v46 = vld [vmem:[#allocation14 + $0xe0] sm:$0xff] }
 0x617   : > { %1865 = vmatprep.subr.bf16.mxu1 %v4884_v47  ;;  %v1951_v47 = vld [vmem:[#allocation14 + $0xc8] sm:$0xff] }
 0x61a   : > { %1866 = vmatpush1.bf16.msra.mxu1 %v4882_v48  ;;  %v1955_v48 = vld [vmem:[#allocation14 + $0xe8] sm:$0xff] }
 0x61b   : > { %1867 = vmatprep.subr.bf16.mxu1 %v4887_v49  ;;  %v4297_v49 = vcombine.low %v1942_v26, %v1946_v38  ;;  %v1998_v38 = vld [vmem:[#allocation14 + $0x240] sm:$0xff] }
 0x61d   : > { %2741 = vmatpush1.bf16.msra.mxu0 %v4297_v49  ;;  %v2011_v49 = vld [vmem:[#allocation14 + $0x2a8] sm:$0xff] }
 0x61e   : > { %1868 = vmatpush1.bf16.msra.mxu1 %v4885_v50  ;;  %v4299_v50 = vcombine.low %v1943_v39, %v1947_v40  ;;  %v2002_v39 = vld [vmem:[#allocation14 + $0x260] sm:$0xff]  ;;  %v1999_v40 = vld [vmem:[#allocation14 + $0x248] sm:$0xff] }
 0x61f   : > { %1869 = vmatprep.subr.bf16.mxu1 %v4890_v51  ;;  %v4306_v51 = vcombine.high %v1950_v44, %v1954_v46 }
 0x621   : > { %2742 = vmatprep.subr.bf16.mxu0 %v4306_v51  ;;  %v4355_v51 = vcombine.low %v1999_v40, %v2003_v41 }
 0x622   : > { %1870 = vmatpush1.bf16.msra.mxu1 %v4888_v52  ;;  %v4308_v52 = vcombine.high %v1951_v47, %v1955_v48 }
 0x623   : > { %1871 = vmatprep.subr.bf16.mxu1 %v4893_v53  ;;  %v1958_v53 = vld [vmem:[#allocation14 + $0x100] sm:$0xff] }
 0x626   : > { %1872 = vmatpush1.bf16.msra.mxu1 %v4891_v54  ;;  %v1962_v54 = vld [vmem:[#allocation14 + $0x120] sm:$0xff] }
 0x627   : > { %1873 = vmatprep.subr.bf16.mxu1 %v4896_v55  ;;  %v1959_v55 = vld [vmem:[#allocation14 + $0x108] sm:$0xff] }
 0x62a   : > { %1874 = vmatpush1.bf16.msra.mxu1 %v4894_v56  ;;  %v1963_v56 = vld [vmem:[#allocation14 + $0x128] sm:$0xff] }
 0x62b   : > { %2777 = vmatprep.subr.bf16.mxu1 %v4284_v30  ;;  %v1991_v30 = vld [vmem:[#allocation14 + $0x208] sm:$0xff] }
 0x62c   : > { %v4347_v43 = vcombine.low %v1991_v30, %v1995_v1 }
 0x6b8   : > { %v1587_v57 = vpop.f32.mrb[4].mxu1 }
 0x6b9   : > { %v4570_v58 = vpop.f32.mrb[5].mxu1 }
 0x6ba   : > { %v1590_v59 = vpop.f32.mrb[6].mxu1  ;;  %v4307_v58 = vcombine.low %v1951_v47, %v1955_v48  ;;  %v2010_v47 = vld [vmem:[#allocation14 + $0x2a0] sm:$0xff]  ;;  %v2007_v48 = vld [vmem:[#allocation14 + $0x288] sm:$0xff] }
 0x6bb   : > { %v4571_v60 = vpop.f32.mrb[7].mxu1  ;;  %v4314_v59 = vcombine.high %v1958_v53, %v1962_v54 }
 0x6bc   : > { %v4316_v60 = vcombine.high %v1959_v55, %v1963_v56 }
 0x6c0   : > { %v1633_v61 = vpop.f32.mrb[8].mxu1 }
 0x6c1   : > { %v1639_v62 = vpack.c.bf16 %v1633_v61, %v1587_v57  ;;  %v4576_v63 = vpop.f32.mrb[9].mxu1  ;;  %v4305_v57 = vcombine.low %v1950_v44, %v1954_v46  ;;  %v1966_v61 = vld [vmem:[#allocation14 + $0x140] sm:$0xff]  ;;  %v4356_v44 = vcombine.high %v1999_v40, %v2003_v41  ;;  %v2047_v40 = vld [vmem:[#allocation14 + $0x3c8] sm:$0xff] }
 0x6c2   : > { %v1636_v0 = vpop.f32.mrb[10].mxu1  ;;  %v1967_v63 = vld [vmem:[#allocation14 + $0x148] sm:$0xff]  ;;  %v2006_v46 = vld [vmem:[#allocation14 + $0x280] sm:$0xff] }
 0x6c3   : > { %v1641_v3 = vrot.slane %v1639_v62, 4  ;;  %v4577_v5 = vpop.f32.mrb[11].mxu1  ;;  %v1971_v0 = vld [vmem:[#allocation14 + $0x168] sm:$0xff]  ;;  %2743 = vmatpush1.bf16.msra.mxu0 %v4305_v57 }
 0x6c4   : > { %2744 = vmatprep.subr.bf16.mxu0 %v4314_v59  ;;  %v4315_v5 = vcombine.low %v1959_v55, %v1963_v56  ;;  %v4363_v55 = vcombine.low %v2007_v48, %v2011_v49 }
 0x6c5   : > { %1875 = vmatprep.mubr.bf16.mxu1 %v1641_v3  ;;  %v4313_v3 = vcombine.low %v1958_v53, %v1962_v54  ;;  %v4364_v53 = vcombine.high %v2007_v48, %v2011_v49  ;;  %v4361_v54 = vcombine.low %v2006_v46, %v2010_v47  ;;  %v1929_v48 = vld [vmem:[#allocation14 + $0x18] sm:$0xff] }
 0x6c6   : > { %1876 = vmatmul.mubr.bf16.vlgmr.msra.gmra.mrb[12].mxu1 %v1639_v62  ;;  %v1970_v62 = vld [vmem:[#allocation14 + $0x160] sm:$0xff] }
 0x6c7   : > { %2778 = vmatpush1.bf16.msra.mxu1 %v4283_v34  ;;  %2745 = vmatpush1.bf16.msra.mxu0 %v4313_v3  ;;  %v1994_v34 = vld [vmem:[#allocation14 + $0x220] sm:$0xff]  ;;  %v2015_v3 = vld [vmem:[#allocation14 + $0x2c8] sm:$0xff] }
 0x6c8   : > { %2779 = vmatprep.subr.bf16.mxu1 %v4292_v37  ;;  %v4346_v26 = vcombine.high %v1990_v29, %v1994_v34  ;;  %v4348_v37 = vcombine.high %v1991_v30, %v1995_v1  ;;  %v2039_v30 = vld [vmem:[#allocation14 + $0x388] sm:$0xff] }
 0x6cb   : > { %2780 = vmatpush1.bf16.msra.mxu1 %v4291_v42  ;;  %v4345_v42 = vcombine.low %v1990_v29, %v1994_v34  ;;  %v2038_v29 = vld [vmem:[#allocation14 + $0x380] sm:$0xff] }
 0x6cc   : > { %2781 = vmatprep.subr.bf16.mxu1 %v4300_v25  ;;  %v4354_v25 = vcombine.high %v1998_v38, %v2002_v39  ;;  %v2042_v34 = vld [vmem:[#allocation14 + $0x3a0] sm:$0xff] }
 0x6cd   : > { %v4394_v1 = vcombine.high %v2038_v29, %v2042_v34 }
 0x6cf   : > { %2782 = vmatpush1.bf16.msra.mxu1 %v4299_v50  ;;  %v4353_v50 = vcombine.low %v1998_v38, %v2002_v39  ;;  %v2046_v38 = vld [vmem:[#allocation14 + $0x3c0] sm:$0xff] }
 0x6d0   : > { %2783 = vmatprep.subr.bf16.mxu1 %v4308_v52  ;;  %v4362_v52 = vcombine.high %v2006_v46, %v2010_v47  ;;  %v2050_v39 = vld [vmem:[#allocation14 + $0x3e0] sm:$0xff]  ;;  %v1928_v46 = vld [vmem:[#allocation14 + $0x10] sm:$0xff] }
 0x6d1   : > { %v4402_v41 = vcombine.high %v2046_v38, %v2050_v39  ;;  %v1932_v47 = vld [vmem:[#allocation14 + $0x30] sm:$0xff] }
 0x6d2   : > { %v4286_v49 = vcombine.high %v1928_v46, %v1932_v47 }
 0x6d3   : > { %2784 = vmatpush1.bf16.msra.mxu1 %v4307_v58 }
 0x6d4   : > { %2785 = vmatprep.subr.bf16.mxu1 %v4316_v60 }
 0x6d7   : > { %2786 = vmatpush1.bf16.msra.mxu1 %v4315_v5 }
 0x799   : > { %v1877_v8 = vpop.f32.mrb[12].mxu1 }
 0x79a   : > { %v1878_v10 = vadd.f32 %v1877_v8, %v1678_v6  ;;  %v1879_v13 = vpop.f32.mrb[13].mxu1  ;;  %v4322_v6 = vcombine.high %v1966_v61, %v1970_v62  ;;  %v1974_v8 = vld [vmem:[#allocation14 + $0x180] sm:$0xff] }
 0x79b   : > { %v1880_v14 = vadd.f32 %v1879_v13, %v1682_v7  ;;  %v1881_v21 = vpop.f32.mrb[14].mxu1  ;;  %v4324_v7 = vcombine.high %v1967_v63, %v1971_v0  ;;  %v1979_v13 = vld [vmem:[#allocation14 + $0x1a8] sm:$0xff] }
 0x79c   : > { %v6022_v22 = vadd.f32 %v1884_v11, %v1878_v10  ;;  %v1882_v23 = vpop.f32.mrb[15].mxu1  ;;  %v1978_v10 = vld [vmem:[#allocation14 + $0x1a0] sm:$0xff]  ;;  %v1975_v11 = vld [vmem:[#allocation14 + $0x188] sm:$0xff]  ;;  %2746 = vmatprep.subr.bf16.mxu0 %v4322_v6 }
 0x79d   : > { %v6024_v9 = vadd.f32 %v1885_v15, %v1880_v14  ;;  %v4321_v14 = vcombine.low %v1966_v61, %v1970_v62  ;;  %v4323_v15 = vcombine.low %v1967_v63, %v1971_v0  ;;  %v4330_v21 = vcombine.high %v1974_v8, %v1978_v10  ;;  %2787 = vmatprep.subr.bf16.mxu1 %v4324_v7  ;;  %v2014_v63 = vld [vmem:[#allocation14 + $0x2c0] sm:$0xff]  ;;  %v2019_v6 = vld [vmem:[#allocation14 + $0x2e8] sm:$0xff] }
 0x79e   : > { %v4332_v23 = vcombine.high %v1975_v11, %v1979_v13  ;;  %v4329_v45 = vcombine.low %v1974_v8, %v1978_v10  ;;  %v4331_v27 = vcombine.low %v1975_v11, %v1979_v13  ;;  %v2018_v0 = vld [vmem:[#allocation14 + $0x2e0] sm:$0xff]  ;;  %v4371_v8 = vcombine.low %v2015_v3, %v2019_v6  ;;  %v2023_v11 = vld [vmem:[#allocation14 + $0x308] sm:$0xff] }
 0x79f   : > { %v1888_v19 = vadd.f32 %v6024_v9, %v6022_v22  ;;  %2747 = vmatpush1.bf16.msra.mxu0 %v4321_v14  ;;  %2788 = vmatpush1.bf16.msra.mxu1 %v4323_v15  ;;  %v4370_v5 = vcombine.high %v2014_v63, %v2018_v0  ;;  %v4369_v7 = vcombine.low %v2014_v63, %v2018_v0  ;;  %v2026_v10 = vld [vmem:[#allocation14 + $0x320] sm:$0xff]  ;;  %v2027_v14 = vld [vmem:[#allocation14 + $0x328] sm:$0xff] }
 0x7a0   : > { %2748 = vmatprep.subr.bf16.mxu0 %v4330_v21  ;;  %2789 = vmatprep.subr.bf16.mxu1 %v4332_v23  ;;  %v4379_v21 = vcombine.low %v2023_v11, %v2027_v14  ;;  %v4380_v23 = vcombine.high %v2023_v11, %v2027_v14  ;;  %v1940_v11 = vld [vmem:[#allocation14 + $0x70] sm:$0xff]  ;;  %v1941_v14 = vld [vmem:[#allocation14 + $0x78] sm:$0xff] }
 0x7a1   : > { %1889 = vadd.xlane.f32.xlu0 %v1888_v19  ;;  %v1982_v19 = vld [vmem:[#allocation14 + $0x1c0] sm:$0xff] }
 0x7a2   : > { %v4338_v31 = vcombine.high %v1982_v19, %v1986_v24  ;;  %v4337_v35 = vcombine.low %v1982_v19, %v1986_v24  ;;  %v2030_v19 = vld [vmem:[#allocation14 + $0x340] sm:$0xff] }
 0x7a3   : > { %2749 = vmatpush1.bf16.msra.mxu0 %v4329_v45  ;;  %2790 = vmatpush1.bf16.msra.mxu1 %v4331_v27  ;;  %v2034_v24 = vld [vmem:[#allocation14 + $0x360] sm:$0xff]  ;;  %v2035_v45 = vld [vmem:[#allocation14 + $0x368] sm:$0xff] }
 0x7a4   : > { %2750 = vmatprep.subr.bf16.mxu0 %v4338_v31  ;;  %2791 = vmatprep.subr.bf16.mxu1 %v4340_v28  ;;  %v4386_v12 = vcombine.high %v2030_v19, %v2034_v24  ;;  %v4385_v27 = vcombine.low %v2030_v19, %v2034_v24  ;;  %v4387_v31 = vcombine.low %v2031_v18, %v2035_v45  ;;  %v1948_v19 = vld [vmem:[#allocation14 + $0xb0] sm:$0xff]  ;;  %v1945_v24 = vld [vmem:[#allocation14 + $0x98] sm:$0xff] }
 0x7a5   : > { %v4388_v28 = vcombine.high %v2031_v18, %v2035_v45  ;;  %v1949_v18 = vld [vmem:[#allocation14 + $0xb8] sm:$0xff] }
 0x7a7   : > { %2751 = vmatpush1.bf16.msra.mxu0 %v4337_v35  ;;  %2792 = vmatpush1.bf16.msra.mxu1 %v4339_v36  ;;  %v2043_v35 = vld [vmem:[#allocation14 + $0x3a8] sm:$0xff]  ;;  %v4393_v36 = vcombine.low %v2038_v29, %v2042_v34  ;;  %v1956_v29 = vld [vmem:[#allocation14 + $0xf0] sm:$0xff]  ;;  %v1953_v34 = vld [vmem:[#allocation14 + $0xd8] sm:$0xff] }
 0x7a8   : > { %2752 = vmatprep.subr.bf16.mxu0 %v4346_v26  ;;  %2793 = vmatprep.subr.bf16.mxu1 %v4348_v37  ;;  %v4395_v26 = vcombine.low %v2039_v30, %v2043_v35  ;;  %v4396_v37 = vcombine.high %v2039_v30, %v2043_v35  ;;  %v1957_v30 = vld [vmem:[#allocation14 + $0xf8] sm:$0xff]  ;;  %v4303_v35 = vcombine.low %v1945_v24, %v1949_v18 }
 0x7ab   : > { %2753 = vmatpush1.bf16.msra.mxu0 %v4345_v42  ;;  %2794 = vmatpush1.bf16.msra.mxu1 %v4347_v43  ;;  %v2051_v42 = vld [vmem:[#allocation14 + $0x3e8] sm:$0xff]  ;;  %v4401_v43 = vcombine.low %v2046_v38, %v2050_v39  ;;  %v1964_v38 = vld [vmem:[#allocation14 + $0x130] sm:$0xff]  ;;  %v1961_v39 = vld [vmem:[#allocation14 + $0x118] sm:$0xff] }
 0x7ac   : > { %2754 = vmatprep.subr.bf16.mxu0 %v4354_v25  ;;  %2795 = vmatprep.subr.bf16.mxu1 %v4356_v44  ;;  %v4404_v25 = vcombine.high %v2047_v40, %v2051_v42  ;;  %v4403_v44 = vcombine.low %v2047_v40, %v2051_v42  ;;  %v1965_v40 = vld [vmem:[#allocation14 + $0x138] sm:$0xff]  ;;  %v4311_v42 = vcombine.low %v1953_v34, %v1957_v30 }
 0x7af   : > { %2755 = vmatpush1.bf16.msra.mxu0 %v4353_v50  ;;  %2796 = vmatpush1.bf16.msra.mxu1 %v4355_v51  ;;  %v1933_v50 = vld [vmem:[#allocation14 + $0x38] sm:$0xff]  ;;  %v4285_v51 = vcombine.low %v1928_v46, %v1932_v47  ;;  %v1972_v46 = vld [vmem:[#allocation14 + $0x170] sm:$0xff] }
 0x7b0   : > { %2756 = vmatprep.subr.bf16.mxu0 %v4362_v52  ;;  %2797 = vmatprep.subr.bf16.mxu1 %v4364_v53  ;;  %v4287_v52 = vcombine.low %v1929_v48, %v1933_v50  ;;  %v4288_v53 = vcombine.high %v1929_v48, %v1933_v50  ;;  %v1969_v47 = vld [vmem:[#allocation14 + $0x158] sm:$0xff]  ;;  %v4319_v50 = vcombine.low %v1961_v39, %v1965_v40 }
 0x7b1   : > { %v1973_v48 = vld [vmem:[#allocation14 + $0x178] sm:$0xff] }
 0x7b3   : > { %2757 = vmatpush1.bf16.msra.mxu0 %v4361_v54  ;;  %2798 = vmatpush1.bf16.msra.mxu1 %v4363_v55 }
 0x7b4   : > { %2758 = vmatprep.subr.bf16.mxu0 %v4370_v5 }
 0x7b7   : > { %2759 = vmatpush1.bf16.msra.mxu0 %v4369_v7 }
 0x82e   : > { %v1890_v56 = vpop.xlane.xlu0 %1889 }
 0x82f   : > { %v1891_v57 = vmul.f32 0.00390625, %v1890_v56 }
 0x831   : > { %v6029_v58 = vsub.f32 %v6022_v22, %v1891_v57  ;;  %v6032_v59 = vsub.f32 %v6024_v9, %v1891_v57  ;;  %v4372_v22 = vcombine.high %v2015_v3, %v2019_v6  ;;  %v2022_v9 = vld [vmem:[#allocation14 + $0x300] sm:$0xff]  ;;  %v5117_v57 = vld [vmem:[%s6246_s29 + $0x8] sm:$0xff] }
 0x832   : > { %v4378_v13 = vcombine.high %v2022_v9, %v2026_v10  ;;  %v4377_v15 = vcombine.low %v2022_v9, %v2026_v10  ;;  %v1921_v5 = vrot.slane %v5117_v57, %v5944_v4  ;;  %v1936_v10 = vld [vmem:[#allocation14 + $0x50] sm:$0xff] }
 0x833   : > { %v1894_v60 = vmul.f32 %v6029_v58, %v6029_v58  ;;  %v1895_v61 = vmul.f32 %v6032_v59, %v6032_v59  ;;  %2799 = vmatprep.subr.bf16.mxu1 %v4372_v22 }
 0x834   : > { %2800 = vmatpush1.bf16.msra.mxu1 %v4371_v8  ;;  %2760 = vmatprep.subr.bf16.mxu0 %v4378_v13  ;;  %v1937_v13 = vld [vmem:[#allocation14 + $0x58] sm:$0xff] }
 0x835   : > { %v1896_v62 = vadd.f32 %v1895_v61, %v1894_v60  ;;  %2801 = vmatprep.subr.bf16.mxu1 %v4380_v23  ;;  %2761 = vmatpush1.bf16.msra.mxu0 %v4377_v15  ;;  %v1911_v60 = vrot.slane %v5117_v57, %v5941_v2  ;;  %v5118_v61 = vld [vmem:[%s6246_s29] sm:$0xff]  ;;  %v4296_v23 = vcombine.high %v1937_v13, %v1941_v14 }
 0x836   : > { %2762 = vmatprep.subr.bf16.mxu0 %v4386_v12  ;;  %v1917_v6 = vrot.slane %v5118_v61, %v5944_v4  ;;  %v4293_v12 = vcombine.low %v1936_v10, %v1940_v11  ;;  %v4295_v45 = vcombine.low %v1937_v13, %v1941_v14  ;;  %v1996_v13 = vld [vmem:[#allocation14 + $0x230] sm:$0xff]  ;;  %v1993_v14 = vld [vmem:[#allocation14 + $0x218] sm:$0xff] }
 0x837   : > { %1897 = vadd.xlane.f32.xlu1 %v1896_v62  ;;  %v1907_v62 = vrot.slane %v5118_v61, %v5941_v2 }
 0x838   : > { %2802 = vmatpush1.bf16.msra.mxu1 %v4379_v21  ;;  %v4294_v21 = vcombine.high %v1936_v10, %v1940_v11  ;;  %v1992_v11 = vld [vmem:[#allocation14 + $0x210] sm:$0xff] }
 0x839   : > { %2803 = vmatprep.subr.bf16.mxu1 %v4388_v28  ;;  %2763 = vmatpush1.bf16.msra.mxu0 %v4385_v27  ;;  %v1952_v28 = vld [vmem:[#allocation14 + $0xd0] sm:$0xff] }
 0x83a   : > { %2764 = vmatprep.subr.bf16.mxu0 %v4394_v1 }
 0x83c   : > { %2804 = vmatpush1.bf16.msra.mxu1 %v4387_v31  ;;  %v4304_v31 = vcombine.high %v1945_v24, %v1949_v18  ;;  %v2000_v24 = vld [vmem:[#allocation14 + $0x250] sm:$0xff] }
 0x83d   : > { %2805 = vmatprep.subr.bf16.mxu1 %v4396_v37  ;;  %2765 = vmatpush1.bf16.msra.mxu0 %v4393_v36  ;;  %v4310_v36 = vcombine.high %v1952_v28, %v1956_v29  ;;  %v1960_v37 = vld [vmem:[#allocation14 + $0x110] sm:$0xff] }
 0x83e   : > { %2766 = vmatprep.subr.bf16.mxu0 %v4402_v41  ;;  %v4309_v41 = vcombine.low %v1952_v28, %v1956_v29  ;;  %v2004_v18 = vld [vmem:[#allocation14 + $0x270] sm:$0xff] }
 0x83f   : > { %v4358_v28 = vcombine.high %v2000_v24, %v2004_v18 }
 0x840   : > { %2806 = vmatpush1.bf16.msra.mxu1 %v4395_v26  ;;  %v4312_v26 = vcombine.high %v1953_v34, %v1957_v30  ;;  %v2008_v34 = vld [vmem:[#allocation14 + $0x290] sm:$0xff] }
 0x841   : > { %2807 = vmatprep.subr.bf16.mxu1 %v4404_v25  ;;  %2767 = vmatpush1.bf16.msra.mxu0 %v4401_v43  ;;  %v4318_v43 = vcombine.high %v1960_v37, %v1964_v38  ;;  %v4320_v25 = vcombine.high %v1961_v39, %v1965_v40  ;;  %v2012_v30 = vld [vmem:[#allocation14 + $0x2b0] sm:$0xff] }
 0x842   : > { %2818 = vmatprep.subr.bf16.mxu0 %v4286_v49  ;;  %v4317_v49 = vcombine.low %v1960_v37, %v1964_v38  ;;  %v4366_v37 = vcombine.high %v2008_v34, %v2012_v30  ;;  %v2016_v39 = vld [vmem:[#allocation14 + $0x2d0] sm:$0xff] }
 0x843   : > { %v2020_v40 = vld [vmem:[#allocation14 + $0x2f0] sm:$0xff] }
 0x844   : > { %2808 = vmatpush1.bf16.msra.mxu1 %v4403_v44  ;;  %v1968_v44 = vld [vmem:[#allocation14 + $0x150] sm:$0xff] }
 0x845   : > { %2859 = vmatprep.subr.bf16.mxu1 %v4288_v53  ;;  %v1976_v53 = vld [vmem:[#allocation14 + $0x190] sm:$0xff]  ;;  %v4325_v57 = vcombine.low %v1968_v44, %v1972_v46 }
 0x8c4   : > { %v1898_v54 = vpop.xlane.xlu1 %1897 }
 0x8c5   : > { %v1899_v55 = vmul.f32 0.00390625, %v1898_v54  ;;  %v1980_v54 = vld [vmem:[#allocation14 + $0x1b0] sm:$0xff] }
 0x8c6   : > { %v4334_v61 = vcombine.high %v1976_v53, %v1980_v54 }
 0x8c7   : > { %v1900_v56 = vadd.f32 1e-05, %v1899_v55  ;;  %v1977_v55 = vld [vmem:[#allocation14 + $0x198] sm:$0xff] }
 0x8c9   : > { %5099 = vrsqrt.f32 %v1900_v56  ;;  %v1981_v56 = vld [vmem:[#allocation14 + $0x1b8] sm:$0xff] }
 0x8d3   : > { %v5100_v63 = vpop.eup %5099 }
 0x8d4   : > { %v1902_v0 = vmul.f32 %v5100_v63, %v6029_v58  ;;  %v1903_v3 = vmul.f32 %v5100_v63, %v6032_v59  ;;  %v1944_v59 = vld [vmem:[#allocation14 + $0x90] sm:$0xff] }
 0x8d5   : > { %v4302_v27 = vcombine.high %v1944_v59, %v1948_v19  ;;  %v4301_v1 = vcombine.low %v1944_v59, %v1948_v19  ;;  %v1984_v63 = vld [vmem:[#allocation14 + $0x1d0] sm:$0xff] }
 0x8d6   : > { %v1913_v7 = vmul.f32 %v1911_v60, %v1903_v3  ;;  %v1912_v8 = vmul.f32 %v1907_v62, %v1902_v0  ;;  %v4327_v60 = vcombine.low %v1969_v47, %v1973_v48  ;;  %v4336_v62 = vcombine.high %v1977_v55, %v1981_v56  ;;  %v1988_v0 = vld [vmem:[#allocation14 + $0x1f0] sm:$0xff]  ;;  %v1985_v3 = vld [vmem:[#allocation14 + $0x1d8] sm:$0xff] }
 0x8d7   : > { %v4341_v59 = vcombine.low %v1984_v63, %v1988_v0 }
 0x8d8   : > { %v6050_v22 = vadd.f32 %v1921_v5, %v1913_v7  ;;  %v6052_v9 = vadd.f32 %v1917_v6, %v1912_v8  ;;  %v1989_v5 = vld [vmem:[#allocation14 + $0x1f8] sm:$0xff]  ;;  %v4333_v6 = vcombine.low %v1976_v53, %v1980_v54  ;;  %v4335_v7 = vcombine.low %v1977_v55, %v1981_v56  ;;  %v2032_v55 = vld [vmem:[#allocation14 + $0x350] sm:$0xff] }
 0x8d9   : > { %v4342_v8 = vcombine.high %v1984_v63, %v1988_v0  ;;  %v4344_v10 = vcombine.high %v1985_v3, %v1989_v5  ;;  %v2036_v56 = vld [vmem:[#allocation14 + $0x370] sm:$0xff] }
 0x8da   : > { %v1925_v15 = vpack.c.bf16 %v6050_v22, %v6050_v22  ;;  %v6058_v58 = vpack.c.bf16 %v6052_v9, %v6052_v9  ;;  %v4390_v63 = vcombine.high %v2032_v55, %v2036_v56 }
 0x8dc   : > { %2768 = vmatprep.mubr.bf16.mxu0 %v1925_v15  ;;  %2809 = vmatprep.mubr.bf16.mxu1 %v1925_v15 }
 0x8dd   : > { %2769 = vmatmul.mubr.bf16.vlgmr.msra.gmra.mrb[16].mxu0 %v6058_v58  ;;  %2810 = vmatmul.mubr.bf16.vlgmr.msra.gmra.mrb[16].mxu1 %v6058_v58 }
 0x8de   : > { %2819 = vmatpush1.bf16.msra.mxu0 %v4285_v51  ;;  %2860 = vmatpush1.bf16.msra.mxu1 %v4287_v52  ;;  %v4326_v51 = vcombine.high %v1968_v44, %v1972_v46  ;;  %v4328_v52 = vcombine.high %v1969_v47, %v1973_v48  ;;  %v4374_v44 = vcombine.high %v2016_v39, %v2020_v40  ;;  %v2024_v47 = vld [vmem:[#allocation14 + $0x310] sm:$0xff] }
 0x8df   : > { %2850 = vmatprep.mubr.bf16.mxu0 %v1925_v15  ;;  %2891 = vmatprep.mubr.bf16.mxu1 %v1925_v15  ;;  %v1997_v15 = vld [vmem:[#allocation14 + $0x238] sm:$0xff]  ;;  %v2028_v48 = vld [vmem:[#allocation14 + $0x330] sm:$0xff] }
 0x8e0   : > { %2820 = vmatprep.subr.bf16.mxu0 %v4294_v21  ;;  %2861 = vmatprep.subr.bf16.mxu1 %v4296_v23  ;;  %v4343_v21 = vcombine.low %v1985_v3, %v1989_v5  ;;  %v4350_v23 = vcombine.high %v1992_v11, %v1996_v13  ;;  %v4352_v19 = vcombine.high %v1993_v14, %v1997_v15  ;;  %v2040_v3 = vld [vmem:[#allocation14 + $0x390] sm:$0xff] }
 0x8e1   : > { %v4382_v53 = vcombine.high %v2024_v47, %v2028_v48  ;;  %v2044_v5 = vld [vmem:[#allocation14 + $0x3b0] sm:$0xff] }
 0x8e2   : > { %2821 = vmatpush1.bf16.msra.mxu0 %v4293_v12  ;;  %2862 = vmatpush1.bf16.msra.mxu1 %v4295_v45  ;;  %v2001_v12 = vld [vmem:[#allocation14 + $0x258] sm:$0xff] }
 0x8e3   : > { %2822 = vmatprep.subr.bf16.mxu0 %v4302_v27  ;;  %2863 = vmatprep.subr.bf16.mxu1 %v4304_v31  ;;  %v2005_v45 = vld [vmem:[#allocation14 + $0x278] sm:$0xff]  ;;  %v4349_v27 = vcombine.low %v1992_v11, %v1996_v13  ;;  %v4351_v31 = vcombine.low %v1993_v14, %v1997_v15  ;;  %v4398_v11 = vcombine.high %v2040_v3, %v2044_v5  ;;  %v2048_v14 = vld [vmem:[#allocation14 + $0x3d0] sm:$0xff] }
 0x8e4   : > { %v4360_v29 = vcombine.high %v2001_v12, %v2005_v45  ;;  %v2052_v15 = vld [vmem:[#allocation14 + $0x3f0] sm:$0xff] }
 0x8e6   : > { %2823 = vmatpush1.bf16.msra.mxu0 %v4301_v1  ;;  %2864 = vmatpush1.bf16.msra.mxu1 %v4303_v35  ;;  %v2009_v1 = vld [vmem:[#allocation14 + $0x298] sm:$0xff] }
 0x8e7   : > { %2824 = vmatprep.subr.bf16.mxu0 %v4310_v36  ;;  %2865 = vmatprep.subr.bf16.mxu1 %v4312_v26  ;;  %v2013_v35 = vld [vmem:[#allocation14 + $0x2b8] sm:$0xff]  ;;  %v4357_v36 = vcombine.low %v2000_v24, %v2004_v18  ;;  %v4359_v26 = vcombine.low %v2001_v12, %v2005_v45  ;;  %v4406_v24 = vcombine.high %v2048_v14, %v2052_v15 }
 0x8e8   : > { %v4368_v38 = vcombine.high %v2009_v1, %v2013_v35  ;;  %v4405_v12 = vcombine.low %v2048_v14, %v2052_v15  ;;  %v4968_v14 = vld [vmem:[#allocation16 + $0x1b4] ss:$8 sps:$4 sm:$0xff]   ;;  %v4963_v15 = vld [vmem:[#allocation16 + $0xb0] ss:$8 sps:$4 sm:$0xff]  }
 0x8ea   : > { %2825 = vmatpush1.bf16.msra.mxu0 %v4309_v41  ;;  %2866 = vmatpush1.bf16.msra.mxu1 %v4311_v42  ;;  %v2017_v41 = vld [vmem:[#allocation14 + $0x2d8] sm:$0xff] }
 0x8eb   : > { %2826 = vmatprep.subr.bf16.mxu0 %v4318_v43  ;;  %2867 = vmatprep.subr.bf16.mxu1 %v4320_v25  ;;  %v2021_v42 = vld [vmem:[#allocation14 + $0x2f8] sm:$0xff]  ;;  %v4365_v43 = vcombine.low %v2008_v34, %v2012_v30  ;;  %v4367_v25 = vcombine.low %v2009_v1, %v2013_v35 }
 0x8ec   : > { %v4376_v46 = vcombine.high %v2017_v41, %v2021_v42  ;;  %v4905_v34 = vld [vmem:[#allocation16 + $0x14] ss:$8 sps:$4 sm:$0xff]   ;;  %v4903_v1 = vld [vmem:[#allocation16 + $0x10] ss:$8 sps:$4 sm:$0xff]  }
 0x8ed   : > { %v4908_v30 = vld [vmem:[#allocation16 + $0x114] ss:$8 sps:$4 sm:$0xff]   ;;  %v4906_v35 = vld [vmem:[#allocation16 + $0x110] ss:$8 sps:$4 sm:$0xff]  }
 0x8ee   : > { %2827 = vmatpush1.bf16.msra.mxu0 %v4317_v49  ;;  %2868 = vmatpush1.bf16.msra.mxu1 %v4319_v50  ;;  %v2025_v49 = vld [vmem:[#allocation14 + $0x318] sm:$0xff] }
 0x8ef   : > { %2828 = vmatprep.subr.bf16.mxu0 %v4326_v51  ;;  %2869 = vmatprep.subr.bf16.mxu1 %v4328_v52  ;;  %v2029_v50 = vld [vmem:[#allocation14 + $0x338] sm:$0xff]  ;;  %v4373_v51 = vcombine.low %v2016_v39, %v2020_v40  ;;  %v4375_v52 = vcombine.low %v2017_v41, %v2021_v42  ;;  %v4923_v42 = vld [vmem:[#allocation16 + $0x44] ss:$8 sps:$4 sm:$0xff]  }
 0x8f0   : > { %v4384_v54 = vcombine.high %v2025_v49, %v2029_v50  ;;  %v4917_v39 = vld [vmem:[#allocation16 + $0x34] ss:$8 sps:$4 sm:$0xff]   ;;  %v4915_v41 = vld [vmem:[#allocation16 + $0x30] ss:$8 sps:$4 sm:$0xff]  }
 0x8f1   : > { %v4920_v40 = vld [vmem:[#allocation16 + $0x134] ss:$8 sps:$4 sm:$0xff]  }
 0x8f2   : > { %2829 = vmatpush1.bf16.msra.mxu0 %v4325_v57  ;;  %2870 = vmatpush1.bf16.msra.mxu1 %v4327_v60  ;;  %v2033_v57 = vld [vmem:[#allocation14 + $0x358] sm:$0xff] }
 0x8f3   : > { %2830 = vmatprep.subr.bf16.mxu0 %v4334_v61  ;;  %2871 = vmatprep.subr.bf16.mxu1 %v4336_v62  ;;  %v2037_v60 = vld [vmem:[#allocation14 + $0x378] sm:$0xff]  ;;  %v4381_v61 = vcombine.low %v2024_v47, %v2028_v48  ;;  %v4383_v62 = vcombine.low %v2025_v49, %v2029_v50  ;;  %v4935_v50 = vld [vmem:[#allocation16 + $0x64] ss:$8 sps:$4 sm:$0xff]  }
 0x8f4   : > { %v4392_v0 = vcombine.high %v2033_v57, %v2037_v60  ;;  %v4932_v47 = vld [vmem:[#allocation16 + $0x154] ss:$8 sps:$4 sm:$0xff]   ;;  %v4927_v48 = vld [vmem:[#allocation16 + $0x50] ss:$8 sps:$4 sm:$0xff]  }
 0x8f5   : > { %v4930_v49 = vld [vmem:[#allocation16 + $0x150] ss:$8 sps:$4 sm:$0xff]  }
 0x8f6   : > { %2831 = vmatpush1.bf16.msra.mxu0 %v4333_v6  ;;  %2872 = vmatpush1.bf16.msra.mxu1 %v4335_v7  ;;  %v2041_v6 = vld [vmem:[#allocation14 + $0x398] sm:$0xff] }
 0x8f7   : > { %2832 = vmatprep.subr.bf16.mxu0 %v4342_v8  ;;  %2873 = vmatprep.subr.bf16.mxu1 %v4344_v10  ;;  %v2045_v7 = vld [vmem:[#allocation14 + $0x3b8] sm:$0xff]  ;;  %v4389_v8 = vcombine.low %v2032_v55, %v2036_v56  ;;  %v4391_v10 = vcombine.low %v2033_v57, %v2037_v60  ;;  %v4947_v60 = vld [vmem:[#allocation16 + $0x84] ss:$8 sps:$4 sm:$0xff]  }
 0x8f8   : > { %v4400_v13 = vcombine.high %v2041_v6, %v2045_v7  ;;  %v4944_v55 = vld [vmem:[#allocation16 + $0x174] ss:$8 sps:$4 sm:$0xff]   ;;  %v4939_v56 = vld [vmem:[#allocation16 + $0x70] ss:$8 sps:$4 sm:$0xff]  }
 0x8f9   : > { %v4942_v57 = vld [vmem:[#allocation16 + $0x170] ss:$8 sps:$4 sm:$0xff]  }
 0x8fa   : > { %2833 = vmatpush1.bf16.msra.mxu0 %v4341_v59  ;;  %2874 = vmatpush1.bf16.msra.mxu1 %v4343_v21  ;;  %v2049_v59 = vld [vmem:[#allocation14 + $0x3d8] sm:$0xff] }
 0x8fb   : > { %2834 = vmatprep.subr.bf16.mxu0 %v4350_v23  ;;  %2875 = vmatprep.subr.bf16.mxu1 %v4352_v19  ;;  %v2053_v21 = vld [vmem:[#allocation14 + $0x3f8] sm:$0xff]  ;;  %v4397_v23 = vcombine.low %v2040_v3, %v2044_v5  ;;  %v4399_v19 = vcombine.low %v2041_v6, %v2045_v7  ;;  %v4959_v7 = vld [vmem:[#allocation16 + $0xa4] ss:$8 sps:$4 sm:$0xff]  }
 0x8fc   : > { %v4408_v18 = vcombine.high %v2049_v59, %v2053_v21  ;;  %v4407_v45 = vcombine.low %v2049_v59, %v2053_v21  ;;  %v4956_v3 = vld [vmem:[#allocation16 + $0x194] ss:$8 sps:$4 sm:$0xff]   ;;  %v4951_v5 = vld [vmem:[#allocation16 + $0x90] ss:$8 sps:$4 sm:$0xff]   ;;  %v4971_v21 = vld [vmem:[#allocation16 + $0xc4] ss:$8 sps:$4 sm:$0xff]  }
 0x8fd   : > { %v4954_v6 = vld [vmem:[#allocation16 + $0x190] ss:$8 sps:$4 sm:$0xff]  }
 0x8fe   : > { %2835 = vmatpush1.bf16.msra.mxu0 %v4349_v27  ;;  %2876 = vmatpush1.bf16.msra.mxu1 %v4351_v31  ;;  %v4899_v27 = vld [vmem:[#allocation16 + $0x4] ss:$8 sps:$4 sm:$0xff]   ;;  %v4966_v59 = vld [vmem:[#allocation16 + $0x1b0] ss:$8 sps:$4 sm:$0xff]  }
 0x8ff   : > { %2836 = vmatprep.subr.bf16.mxu0 %v4358_v28  ;;  %2877 = vmatprep.subr.bf16.mxu1 %v4360_v29  ;;  %v4902_v31 = vld [vmem:[#allocation16 + $0x104] ss:$8 sps:$4 sm:$0xff]   ;;  %v4897_v28 = vld [vmem:[#allocation16] ss:$8 sps:$4 sm:$0xff]  }
 0x900   : > { %v4900_v29 = vld [vmem:[#allocation16 + $0x100] ss:$8 sps:$4 sm:$0xff]  }
 0x902   : > { %2837 = vmatpush1.bf16.msra.mxu0 %v4357_v36  ;;  %2878 = vmatpush1.bf16.msra.mxu1 %v4359_v26  ;;  %v4911_v36 = vld [vmem:[#allocation16 + $0x24] ss:$8 sps:$4 sm:$0xff]  }
 0x903   : > { %2838 = vmatprep.subr.bf16.mxu0 %v4366_v37  ;;  %2879 = vmatprep.subr.bf16.mxu1 %v4368_v38  ;;  %v4914_v26 = vld [vmem:[#allocation16 + $0x124] ss:$8 sps:$4 sm:$0xff]   ;;  %v4909_v37 = vld [vmem:[#allocation16 + $0x20] ss:$8 sps:$4 sm:$0xff]  }
 0x904   : > { %v4912_v38 = vld [vmem:[#allocation16 + $0x120] ss:$8 sps:$4 sm:$0xff]  }
 0x906   : > { %2839 = vmatpush1.bf16.msra.mxu0 %v4365_v43  ;;  %2880 = vmatpush1.bf16.msra.mxu1 %v4367_v25  ;;  %v4926_v43 = vld [vmem:[#allocation16 + $0x144] ss:$8 sps:$4 sm:$0xff]   ;;  %v4921_v25 = vld [vmem:[#allocation16 + $0x40] ss:$8 sps:$4 sm:$0xff]  }
 0x907   : > { %2840 = vmatprep.subr.bf16.mxu0 %v4374_v44  ;;  %2881 = vmatprep.subr.bf16.mxu1 %v4376_v46  ;;  %v4924_v44 = vld [vmem:[#allocation16 + $0x140] ss:$8 sps:$4 sm:$0xff]   ;;  %v4929_v46 = vld [vmem:[#allocation16 + $0x54] ss:$8 sps:$4 sm:$0xff]  }
 0x90a   : > { %2841 = vmatpush1.bf16.msra.mxu0 %v4373_v51  ;;  %2882 = vmatpush1.bf16.msra.mxu1 %v4375_v52  ;;  %v4938_v51 = vld [vmem:[#allocation16 + $0x164] ss:$8 sps:$4 sm:$0xff]   ;;  %v4933_v52 = vld [vmem:[#allocation16 + $0x60] ss:$8 sps:$4 sm:$0xff]  }
 0x90b   : > { %2842 = vmatprep.subr.bf16.mxu0 %v4382_v53  ;;  %2883 = vmatprep.subr.bf16.mxu1 %v4384_v54  ;;  %v4936_v53 = vld [vmem:[#allocation16 + $0x160] ss:$8 sps:$4 sm:$0xff]   ;;  %v4941_v54 = vld [vmem:[#allocation16 + $0x74] ss:$8 sps:$4 sm:$0xff]  }
 0x90e   : > { %2843 = vmatpush1.bf16.msra.mxu0 %v4381_v61  ;;  %2884 = vmatpush1.bf16.msra.mxu1 %v4383_v62  ;;  %v4950_v61 = vld [vmem:[#allocation16 + $0x184] ss:$8 sps:$4 sm:$0xff]   ;;  %v4945_v62 = vld [vmem:[#allocation16 + $0x80] ss:$8 sps:$4 sm:$0xff]  }
 0x90f   : > { %2844 = vmatprep.subr.bf16.mxu0 %v4390_v63  ;;  %2885 = vmatprep.subr.bf16.mxu1 %v4392_v0  ;;  %v4948_v63 = vld [vmem:[#allocation16 + $0x180] ss:$8 sps:$4 sm:$0xff]   ;;  %v4953_v0 = vld [vmem:[#allocation16 + $0x94] ss:$8 sps:$4 sm:$0xff]  }
 0x912   : > { %2845 = vmatpush1.bf16.msra.mxu0 %v4389_v8  ;;  %2886 = vmatpush1.bf16.msra.mxu1 %v4391_v10  ;;  %v4962_v8 = vld [vmem:[#allocation16 + $0x1a4] ss:$8 sps:$4 sm:$0xff]   ;;  %v4957_v10 = vld [vmem:[#allocation16 + $0xa0] ss:$8 sps:$4 sm:$0xff]  }
 0x913   : > { %2846 = vmatprep.subr.bf16.mxu0 %v4398_v11  ;;  %2887 = vmatprep.subr.bf16.mxu1 %v4400_v13  ;;  %v4960_v11 = vld [vmem:[#allocation16 + $0x1a0] ss:$8 sps:$4 sm:$0xff]   ;;  %v4965_v13 = vld [vmem:[#allocation16 + $0xb4] ss:$8 sps:$4 sm:$0xff]  }
 0x916   : > { %2847 = vmatpush1.bf16.msra.mxu0 %v4397_v23  ;;  %2888 = vmatpush1.bf16.msra.mxu1 %v4399_v19  ;;  %v4974_v23 = vld [vmem:[#allocation16 + $0x1c4] ss:$8 sps:$4 sm:$0xff]   ;;  %v4969_v19 = vld [vmem:[#allocation16 + $0xc0] ss:$8 sps:$4 sm:$0xff]  }
 0x917   : > { %2848 = vmatprep.subr.bf16.mxu0 %v4406_v24  ;;  %2889 = vmatprep.subr.bf16.mxu1 %v4408_v18  ;;  %v4972_v24 = vld [vmem:[#allocation16 + $0x1c0] ss:$8 sps:$4 sm:$0xff]   ;;  %v4977_v18 = vld [vmem:[#allocation16 + $0xd4] ss:$8 sps:$4 sm:$0xff]  }
 0x91a   : > { %2849 = vmatpush1.bf16.msra.mxu0 %v4405_v12  ;;  %2890 = vmatpush1.bf16.msra.mxu1 %v4407_v45  ;;  %v4980_v12 = vld [vmem:[#allocation16 + $0x1d4] ss:$8 sps:$4 sm:$0xff]   ;;  %v4975_v45 = vld [vmem:[#allocation16 + $0xd0] ss:$8 sps:$4 sm:$0xff]  }
 0x91b   : > { %3756 = vmatprep.subr.bf16.mxu0 %v4899_v27  ;;  %3797 = vmatprep.subr.bf16.mxu1 %v4902_v31  ;;  %v4978_v27 = vld [vmem:[#allocation16 + $0x1d0] ss:$8 sps:$4 sm:$0xff]   ;;  %v4983_v31 = vld [vmem:[#allocation16 + $0xe4] ss:$8 sps:$4 sm:$0xff]  }
 0x91d   : > { %2851 = vmatmul.mubr.bf16.vlgmr.msra.gmra.mrb[20].mxu0 %v6058_v58  ;;  %2892 = vmatmul.mubr.bf16.vlgmr.msra.gmra.mrb[20].mxu1 %v6058_v58  ;;  %v4918_v58 = vld [vmem:[#allocation16 + $0x130] ss:$8 sps:$4 sm:$0xff]  }
 0x91e   : > { %3757 = vmatpush1.bf16.msra.mxu0 %v4897_v28  ;;  %3798 = vmatpush1.bf16.msra.mxu1 %v4900_v29  ;;  %v4986_v28 = vld [vmem:[#allocation16 + $0x1e4] ss:$8 sps:$4 sm:$0xff]   ;;  %v4981_v29 = vld [vmem:[#allocation16 + $0xe0] ss:$8 sps:$4 sm:$0xff]  }
 0x91f   : > { %3758 = vmatprep.subr.bf16.mxu0 %v4905_v34  ;;  %3799 = vmatprep.subr.bf16.mxu1 %v4908_v30  ;;  %v4984_v34 = vld [vmem:[#allocation16 + $0x1e0] ss:$8 sps:$4 sm:$0xff]   ;;  %v4989_v30 = vld [vmem:[#allocation16 + $0xf4] ss:$8 sps:$4 sm:$0xff]  }
 0x922   : > { %3759 = vmatpush1.bf16.msra.mxu0 %v4903_v1  ;;  %3800 = vmatpush1.bf16.msra.mxu1 %v4906_v35  ;;  %v4992_v1 = vld [vmem:[#allocation16 + $0x1f4] ss:$8 sps:$4 sm:$0xff]   ;;  %v4987_v35 = vld [vmem:[#allocation16 + $0xf0] ss:$8 sps:$4 sm:$0xff]  }
 0x923   : > { %3760 = vmatprep.subr.bf16.mxu0 %v4911_v36  ;;  %3801 = vmatprep.subr.bf16.mxu1 %v4914_v26  ;;  %v4990_v36 = vld [vmem:[#allocation16 + $0x1f0] ss:$8 sps:$4 sm:$0xff]   ;;  %v4995_v26 = vld [vmem:[#allocation16 + $0x204] ss:$8 sps:$4 sm:$0xff]  }
 0x926   : > { %3761 = vmatpush1.bf16.msra.mxu0 %v4909_v37  ;;  %3802 = vmatpush1.bf16.msra.mxu1 %v4912_v38  ;;  %v4998_v37 = vld [vmem:[#allocation16 + $0x304] ss:$8 sps:$4 sm:$0xff]  }
 0x927   : > { %3762 = vmatprep.subr.bf16.mxu0 %v4917_v39  ;;  %3803 = vmatprep.subr.bf16.mxu1 %v4920_v40  ;;  %v6067_v38 = vld [vmem:[%s6247_s25] sm:$0xff] }
 0x928   : > { %v2059_v39 = vrot.slane %v6067_v38, %v5900_v17  ;;  %v2067_v40 = vrot.slane %v6067_v38, %v5941_v2 }
 0x92a   : > { %3763 = vmatpush1.bf16.msra.mxu0 %v4915_v41  ;;  %3804 = vmatpush1.bf16.msra.mxu1 %v4918_v58  ;;  %v2063_v41 = vrot.slane %v6067_v38, %v5913_v20  ;;  %v2071_v58 = vrot.slane %v6067_v38, %v5944_v4 }
 0x92b   : > { %3764 = vmatprep.subr.bf16.mxu0 %v4923_v42  ;;  %3805 = vmatprep.subr.bf16.mxu1 %v4926_v43 }
 0x92e   : > { %3765 = vmatpush1.bf16.msra.mxu0 %v4921_v25  ;;  %3806 = vmatpush1.bf16.msra.mxu1 %v4924_v44 }
 0x92f   : > { %3766 = vmatprep.subr.bf16.mxu0 %v4929_v46  ;;  %3807 = vmatprep.subr.bf16.mxu1 %v4932_v47 }
 0x932   : > { %3767 = vmatpush1.bf16.msra.mxu0 %v4927_v48  ;;  %3808 = vmatpush1.bf16.msra.mxu1 %v4930_v49 }
 0x933   : > { %3768 = vmatprep.subr.bf16.mxu0 %v4935_v50  ;;  %3809 = vmatprep.subr.bf16.mxu1 %v4938_v51 }
 0x936   : > { %3769 = vmatpush1.bf16.msra.mxu0 %v4933_v52  ;;  %3810 = vmatpush1.bf16.msra.mxu1 %v4936_v53 }
 0x937   : > { %3770 = vmatprep.subr.bf16.mxu0 %v4941_v54  ;;  %3811 = vmatprep.subr.bf16.mxu1 %v4944_v55 }
 0x93a   : > { %3771 = vmatpush1.bf16.msra.mxu0 %v4939_v56  ;;  %3812 = vmatpush1.bf16.msra.mxu1 %v4942_v57 }
 0x93b   : > { %3772 = vmatprep.subr.bf16.mxu0 %v4947_v60  ;;  %3813 = vmatprep.subr.bf16.mxu1 %v4950_v61 }
 0x93e   : > { %3773 = vmatpush1.bf16.msra.mxu0 %v4945_v62  ;;  %3814 = vmatpush1.bf16.msra.mxu1 %v4948_v63 }
 0x93f   : > { %3774 = vmatprep.subr.bf16.mxu0 %v4953_v0  ;;  %3815 = vmatprep.subr.bf16.mxu1 %v4956_v3 }
 0x942   : > { %3775 = vmatpush1.bf16.msra.mxu0 %v4951_v5  ;;  %3816 = vmatpush1.bf16.msra.mxu1 %v4954_v6 }
 0x943   : > { %3776 = vmatprep.subr.bf16.mxu0 %v4959_v7  ;;  %3817 = vmatprep.subr.bf16.mxu1 %v4962_v8 }
 0x946   : > { %3777 = vmatpush1.bf16.msra.mxu0 %v4957_v10  ;;  %3818 = vmatpush1.bf16.msra.mxu1 %v4960_v11 }
 0x947   : > { %3778 = vmatprep.subr.bf16.mxu0 %v4965_v13  ;;  %3819 = vmatprep.subr.bf16.mxu1 %v4968_v14 }
 0x94a   : > { %3779 = vmatpush1.bf16.msra.mxu0 %v4963_v15  ;;  %3820 = vmatpush1.bf16.msra.mxu1 %v4966_v59 }
 0x94b   : > { %3780 = vmatprep.subr.bf16.mxu0 %v4971_v21  ;;  %3821 = vmatprep.subr.bf16.mxu1 %v4974_v23 }
 0x94e   : > { %3781 = vmatpush1.bf16.msra.mxu0 %v4969_v19  ;;  %3822 = vmatpush1.bf16.msra.mxu1 %v4972_v24 }
 0x94f   : > { %3782 = vmatprep.subr.bf16.mxu0 %v4977_v18  ;;  %3823 = vmatprep.subr.bf16.mxu1 %v4980_v12 }
 0x952   : > { %3783 = vmatpush1.bf16.msra.mxu0 %v4975_v45  ;;  %3824 = vmatpush1.bf16.msra.mxu1 %v4978_v27 }
 0x953   : > { %3784 = vmatprep.subr.bf16.mxu0 %v4983_v31  ;;  %3825 = vmatprep.subr.bf16.mxu1 %v4986_v28 }
 0x956   : > { %3785 = vmatpush1.bf16.msra.mxu0 %v4981_v29  ;;  %3826 = vmatpush1.bf16.msra.mxu1 %v4984_v34 }
 0x957   : > { %3786 = vmatprep.subr.bf16.mxu0 %v4989_v30  ;;  %3827 = vmatprep.subr.bf16.mxu1 %v4992_v1  ;;  %v4993_v30 = vld [vmem:[#allocation16 + $0x200] ss:$8 sps:$4 sm:$0xff]  }
 0x95a   : > { %3787 = vmatpush1.bf16.msra.mxu0 %v4987_v35  ;;  %3828 = vmatpush1.bf16.msra.mxu1 %v4990_v36  ;;  %v4996_v36 = vld [vmem:[#allocation16 + $0x300] ss:$8 sps:$4 sm:$0xff]  }
 0x95b   : > { %3838 = vmatprep.subr.bf16.mxu0 %v4995_v26  ;;  %3879 = vmatprep.subr.bf16.mxu1 %v4998_v37  ;;  %v5001_v37 = vld [vmem:[#allocation16 + $0x214] ss:$8 sps:$4 sm:$0xff]  }
 0x9b0   : > { %v2770_v42 = vpop.f32.mrb[16].mxu0  ;;  %v2811_v43 = vpop.f32.mrb[16].mxu1 }
 0x9b1   : > { %v2771_v25 = vadd.f32 %v2770_v42, %v2059_v39  ;;  %v2812_v44 = vadd.f32 %v2811_v43, %v2067_v40  ;;  %v2772_v46 = vpop.f32.mrb[17].mxu0  ;;  %v2813_v47 = vpop.f32.mrb[17].mxu1  ;;  %v5004_v40 = vld [vmem:[#allocation16 + $0x314] ss:$8 sps:$4 sm:$0xff]   ;;  %v5007_v42 = vld [vmem:[#allocation16 + $0x224] ss:$8 sps:$4 sm:$0xff]  }
 0x9b2   : > { %v2773_v48 = vadd.f32 %v2772_v46, %v2063_v41  ;;  %v2814_v49 = vadd.f32 %v2813_v47, %v2071_v58  ;;  %v2774_v50 = vpop.f32.mrb[18].mxu0  ;;  %v2815_v51 = vpop.f32.mrb[18].mxu1  ;;  %v4999_v41 = vld [vmem:[#allocation16 + $0x210] ss:$8 sps:$4 sm:$0xff]   ;;  %v5010_v43 = vld [vmem:[#allocation16 + $0x324] ss:$8 sps:$4 sm:$0xff]  }
 0x9b3   : > { %v2908_v17 = vmul.f32 0.044715, %v2771_v25  ;;  %v2910_v52 = vmul.f32 0.044715, %v2812_v44  ;;  %v2775_v53 = vpop.f32.mrb[19].mxu0  ;;  %v2816_v2 = vpop.f32.mrb[19].mxu1 }
 0x9b4   : > { %v2909_v54 = vmul.f32 0.044715, %v2773_v48  ;;  %v2911_v55 = vmul.f32 0.044715, %v2814_v49  ;;  %v2900_v15 = vmul.f32 0.5, %v2771_v25  ;;  %v2901_v23 = vmul.f32 0.5, %v2773_v48 }
 0x9b5   : > { %v2916_v20 = vmul.f32 %v2908_v17, %v2771_v25  ;;  %v2918_v56 = vmul.f32 %v2910_v52, %v2812_v44  ;;  %v2903_v18 = vmul.f32 0.5, %v2814_v49  ;;  %v2902_v31 = vmul.f32 0.5, %v2812_v44  ;;  %v5002_v58 = vld [vmem:[#allocation16 + $0x310] ss:$8 sps:$4 sm:$0xff]   ;;  %v5013_v46 = vld [vmem:[#allocation16 + $0x234] ss:$8 sps:$4 sm:$0xff]  }
 0x9b6   : > { %v2917_v57 = vmul.f32 %v2909_v54, %v2773_v48  ;;  %v2919_v4 = vmul.f32 %v2911_v55, %v2814_v49  ;;  %v5016_v47 = vld [vmem:[#allocation16 + $0x334] ss:$8 sps:$4 sm:$0xff]   ;;  %v5019_v50 = vld [vmem:[#allocation16 + $0x244] ss:$8 sps:$4 sm:$0xff]   ;;  %v5017_v17 = vld [vmem:[#allocation16 + $0x240] ss:$8 sps:$4 sm:$0xff]  }
 0x9b7   : > { %v2924_v60 = vmul.f32 %v2916_v20, %v2771_v25  ;;  %v2926_v61 = vmul.f32 %v2918_v56, %v2812_v44  ;;  %v5022_v51 = vld [vmem:[#allocation16 + $0x344] ss:$8 sps:$4 sm:$0xff]   ;;  %v5020_v52 = vld [vmem:[#allocation16 + $0x340] ss:$8 sps:$4 sm:$0xff]   ;;  %v5025_v53 = vld [vmem:[#allocation16 + $0x254] ss:$8 sps:$4 sm:$0xff]  }
 0x9b8   : > { %v2925_v62 = vmul.f32 %v2917_v57, %v2773_v48  ;;  %v2927_v63 = vmul.f32 %v2919_v4, %v2814_v49  ;;  %v5028_v2 = vld [vmem:[#allocation16 + $0x354] ss:$8 sps:$4 sm:$0xff]   ;;  %v5023_v54 = vld [vmem:[#allocation16 + $0x250] ss:$8 sps:$4 sm:$0xff]   ;;  %v5031_v20 = vld [vmem:[#allocation16 + $0x264] ss:$8 sps:$4 sm:$0xff]  }
 0x9b9   : > { %v2932_v0 = vadd.f32 %v2924_v60, %v2771_v25  ;;  %v2934_v3 = vadd.f32 %v2926_v61, %v2812_v44  ;;  %v5005_v25 = vld [vmem:[#allocation16 + $0x220] ss:$8 sps:$4 sm:$0xff]   ;;  %v5026_v55 = vld [vmem:[#allocation16 + $0x350] ss:$8 sps:$4 sm:$0xff]   ;;  %v5034_v56 = vld [vmem:[#allocation16 + $0x364] ss:$8 sps:$4 sm:$0xff]  }
 0x9ba   : > { %v2933_v5 = vadd.f32 %v2925_v62, %v2773_v48  ;;  %v2935_v6 = vadd.f32 %v2927_v63, %v2814_v49  ;;  %v5008_v44 = vld [vmem:[#allocation16 + $0x320] ss:$8 sps:$4 sm:$0xff]   ;;  %v5011_v48 = vld [vmem:[#allocation16 + $0x230] ss:$8 sps:$4 sm:$0xff]   ;;  %v5037_v60 = vld [vmem:[#allocation16 + $0x274] ss:$8 sps:$4 sm:$0xff]  }
 0x9bb   : > { %v2940_v7 = vmul.f32 0.7978846, %v2932_v0  ;;  %v2942_v11 = vmul.f32 0.7978846, %v2934_v3  ;;  %v5014_v49 = vld [vmem:[#allocation16 + $0x330] ss:$8 sps:$4 sm:$0xff]  }
 0x9bc   : > { %v2941_v8 = vmul.f32 0.7978846, %v2933_v5  ;;  %v2943_v10 = vmul.f32 0.7978846, %v2935_v6  ;;  %v5029_v57 = vld [vmem:[#allocation16 + $0x260] ss:$8 sps:$4 sm:$0xff]  }
 0x9bd   : > { %5101 = vtanh.f32 %v2940_v7  ;;  %v5032_v4 = vld [vmem:[#allocation16 + $0x360] ss:$8 sps:$4 sm:$0xff]   ;;  %v5040_v61 = vld [vmem:[#allocation16 + $0x374] ss:$8 sps:$4 sm:$0xff]   ;;  %v5035_v62 = vld [vmem:[#allocation16 + $0x270] ss:$8 sps:$4 sm:$0xff]   ;;  %v2075_v7 = vrot.slane %v6067_v38, %v5967_v32 }
 0x9be   : > { %5103 = vtanh.f32 %v2941_v8  ;;  %v2082_v63 = vsub.s32 6, %v5897_v16  ;;  %v5038_v0 = vld [vmem:[#allocation16 + $0x370] ss:$8 sps:$4 sm:$0xff]   ;;  %v5043_v3 = vld [vmem:[#allocation16 + $0x284] ss:$8 sps:$4 sm:$0xff]   ;;  %v2086_v5 = vsub.s32 7, %v5897_v16 }
 0x9bf   : > { %5105 = vtanh.f32 %v2943_v10  ;;  %v5046_v6 = vld [vmem:[#allocation16 + $0x384] ss:$8 sps:$4 sm:$0xff]   ;;  %v5041_v10 = vld [vmem:[#allocation16 + $0x280] ss:$8 sps:$4 sm:$0xff]   ;;  %v5052_v16 = vld [vmem:[#allocation16 + $0x394] ss:$8 sps:$4 sm:$0xff]  }
 0x9c0   : > { %5107 = vtanh.f32 %v2942_v11  ;;  %v2083_v8 = vrot.slane %v6067_v38, %v2082_v63  ;;  %v5044_v11 = vld [vmem:[#allocation16 + $0x380] ss:$8 sps:$4 sm:$0xff]   ;;  %v5071_v63 = vld [vmem:[#allocation16 + $0x2d0] ss:$8 sps:$4 sm:$0xff]  }
 0x9c7   : > { %v5102_v13 = vpop.eup %5101 }
 0x9c8   : > { %v5104_v14 = vpop.eup %5103  ;;  %v2956_v59 = vadd.f32 1.0, %v5102_v13  ;;  %v2079_v13 = vrot.slane %v6067_v38, %v5970_v33 }
 0x9c9   : > { %v5106_v21 = vpop.eup %5105  ;;  %v2957_v19 = vadd.f32 1.0, %v5104_v14  ;;  %v2087_v14 = vrot.slane %v6067_v38, %v2086_v5  ;;  %v5082_v5 = vld [vmem:[#allocation16 + $0x3e4] ss:$8 sps:$4 sm:$0xff]  }
 0x9ca   : > { %v5108_v24 = vpop.eup %5107  ;;  %v2959_v12 = vadd.f32 1.0, %v5106_v21  ;;  %v2964_v45 = vmul.f32 %v2956_v59, %v2900_v15  ;;  %v5049_v15 = vld [vmem:[#allocation16 + $0x294] ss:$8 sps:$4 sm:$0xff]  }
 0x9cb   : > { %v2965_v27 = vmul.f32 %v2957_v19, %v2901_v23  ;;  %v2958_v28 = vadd.f32 1.0, %v5108_v24 }
 0x9cc   : > { %v2967_v29 = vmul.f32 %v2959_v12, %v2903_v18  ;;  %v2972_v26 = vpack.c.bf16 %v2964_v45, %v2964_v45  ;;  %v5047_v18 = vld [vmem:[#allocation16 + $0x290] ss:$8 sps:$4 sm:$0xff]  }
 0x9cd   : > { %v2973_v34 = vpack.c.bf16 %v2965_v27, %v2965_v27  ;;  %v2966_v1 = vmul.f32 %v2958_v28, %v2902_v31  ;;  %v5050_v12 = vld [vmem:[#allocation16 + $0x390] ss:$8 sps:$4 sm:$0xff]   ;;  %v5055_v28 = vld [vmem:[#allocation16 + $0x2a4] ss:$8 sps:$4 sm:$0xff]  }
 0x9ce   : > { %v2975_v35 = vpack.c.bf16 %v2967_v29, %v2967_v29  ;;  %v5058_v29 = vld [vmem:[#allocation16 + $0x3a4] ss:$8 sps:$4 sm:$0xff]  }
 0x9cf   : > { %3788 = vmatprep.mubr.bf16.mxu0 %v2973_v34  ;;  %v2974_v39 = vpack.c.bf16 %v2966_v1, %v2966_v1 }
 0x9d0   : > { %3829 = vmatprep.mubr.bf16.mxu1 %v2975_v35  ;;  %3789 = vmatmul.mubr.bf16.vlgmr.msra.gmra.mrb[24].mxu0 %v2972_v26 }
 0x9d1   : > { %3830 = vmatmul.mubr.bf16.vlgmr.msra.gmra.mrb[24].mxu1 %v2974_v39  ;;  %3839 = vmatpush1.bf16.msra.mxu0 %v4993_v30 }
 0x9d2   : > { %3880 = vmatpush1.bf16.msra.mxu1 %v4996_v36  ;;  %3840 = vmatprep.subr.bf16.mxu0 %v5001_v37 }
 0x9d3   : > { %3881 = vmatprep.subr.bf16.mxu1 %v5004_v40  ;;  %v5053_v40 = vld [vmem:[#allocation16 + $0x2a0] ss:$8 sps:$4 sm:$0xff]  }
 0x9d5   : > { %3841 = vmatpush1.bf16.msra.mxu0 %v4999_v41 }
 0x9d6   : > { %3882 = vmatpush1.bf16.msra.mxu1 %v5002_v58  ;;  %3842 = vmatprep.subr.bf16.mxu0 %v5007_v42  ;;  %v5056_v42 = vld [vmem:[#allocation16 + $0x3a0] ss:$8 sps:$4 sm:$0xff]  }
 0x9d7   : > { %3883 = vmatprep.subr.bf16.mxu1 %v5010_v43  ;;  %v5061_v43 = vld [vmem:[#allocation16 + $0x2b4] ss:$8 sps:$4 sm:$0xff]  }
 0x9d9   : > { %3843 = vmatpush1.bf16.msra.mxu0 %v5005_v25 }
 0x9da   : > { %3884 = vmatpush1.bf16.msra.mxu1 %v5008_v44  ;;  %3844 = vmatprep.subr.bf16.mxu0 %v5013_v46  ;;  %v5064_v46 = vld [vmem:[#allocation16 + $0x3b4] ss:$8 sps:$4 sm:$0xff]  }
 0x9db   : > { %3885 = vmatprep.subr.bf16.mxu1 %v5016_v47 }
 0x9dd   : > { %3845 = vmatpush1.bf16.msra.mxu0 %v5011_v48 }
 0x9de   : > { %3886 = vmatpush1.bf16.msra.mxu1 %v5014_v49  ;;  %3846 = vmatprep.subr.bf16.mxu0 %v5019_v50 }
 0x9df   : > { %3887 = vmatprep.subr.bf16.mxu1 %v5022_v51  ;;  %v5059_v51 = vld [vmem:[#allocation16 + $0x2b0] ss:$8 sps:$4 sm:$0xff]  }
 0x9e1   : > { %3847 = vmatpush1.bf16.msra.mxu0 %v5017_v17  ;;  %v5062_v17 = vld [vmem:[#allocation16 + $0x3b0] ss:$8 sps:$4 sm:$0xff]  }
 0x9e2   : > { %3888 = vmatpush1.bf16.msra.mxu1 %v5020_v52  ;;  %3848 = vmatprep.subr.bf16.mxu0 %v5025_v53  ;;  %v5067_v52 = vld [vmem:[#allocation16 + $0x2c4] ss:$8 sps:$4 sm:$0xff]  }
 0x9e3   : > { %3889 = vmatprep.subr.bf16.mxu1 %v5028_v2 }
 0x9e5   : > { %3849 = vmatpush1.bf16.msra.mxu0 %v5023_v54  ;;  %v5070_v54 = vld [vmem:[#allocation16 + $0x3c4] ss:$8 sps:$4 sm:$0xff]  }
 0x9e6   : > { %3890 = vmatpush1.bf16.msra.mxu1 %v5026_v55  ;;  %3850 = vmatprep.subr.bf16.mxu0 %v5031_v20 }
 0x9e7   : > { %3891 = vmatprep.subr.bf16.mxu1 %v5034_v56 }
 0x9e9   : > { %3851 = vmatpush1.bf16.msra.mxu0 %v5029_v57 }
 0x9ea   : > { %3892 = vmatpush1.bf16.msra.mxu1 %v5032_v4  ;;  %3852 = vmatprep.subr.bf16.mxu0 %v5037_v60  ;;  %v5065_v4 = vld [vmem:[#allocation16 + $0x2c0] ss:$8 sps:$4 sm:$0xff]  }
 0x9eb   : > { %3893 = vmatprep.subr.bf16.mxu1 %v5040_v61  ;;  %v5068_v60 = vld [vmem:[#allocation16 + $0x3c0] ss:$8 sps:$4 sm:$0xff]   ;;  %v5073_v61 = vld [vmem:[#allocation16 + $0x2d4] ss:$8 sps:$4 sm:$0xff]  }
 0x9ed   : > { %3853 = vmatpush1.bf16.msra.mxu0 %v5035_v62  ;;  %v5076_v62 = vld [vmem:[#allocation16 + $0x3d4] ss:$8 sps:$4 sm:$0xff]  }
 0x9ee   : > { %3894 = vmatpush1.bf16.msra.mxu1 %v5038_v0  ;;  %3854 = vmatprep.subr.bf16.mxu0 %v5043_v3  ;;  %v5074_v0 = vld [vmem:[#allocation16 + $0x3d0] ss:$8 sps:$4 sm:$0xff]   ;;  %v5079_v3 = vld [vmem:[#allocation16 + $0x2e4] ss:$8 sps:$4 sm:$0xff]  }
 0x9ef   : > { %3895 = vmatprep.subr.bf16.mxu1 %v5046_v6  ;;  %v5077_v6 = vld [vmem:[#allocation16 + $0x2e0] ss:$8 sps:$4 sm:$0xff]  }
 0x9f0   : > { %v2852_v59 = vpop.f32.mrb[20].mxu0  ;;  %v2893_v21 = vpop.f32.mrb[20].mxu1 }
 0x9f1   : > { %v6085_v23 = vadd.f32 %v2852_v59, %v2075_v7  ;;  %v6087_v19 = vadd.f32 %v2893_v21, %v2083_v8  ;;  %v2854_v32 = vpop.f32.mrb[21].mxu0  ;;  %v2895_v24 = vpop.f32.mrb[21].mxu1  ;;  %3855 = vmatpush1.bf16.msra.mxu0 %v5041_v10  ;;  %v5080_v7 = vld [vmem:[#allocation16 + $0x3e0] ss:$8 sps:$4 sm:$0xff]   ;;  %v5085_v8 = vld [vmem:[#allocation16 + $0x2f4] ss:$8 sps:$4 sm:$0xff]  }
 0x9f2   : > { %v6089_v45 = vadd.f32 %v2854_v32, %v2079_v13  ;;  %v6091_v27 = vadd.f32 %v2895_v24, %v2087_v14  ;;  %3896 = vmatpush1.bf16.msra.mxu1 %v5044_v11  ;;  %v2856_v38 = vpop.f32.mrb[22].mxu0  ;;  %v2897_v31 = vpop.f32.mrb[22].mxu1  ;;  %3856 = vmatprep.subr.bf16.mxu0 %v5049_v15  ;;  %v5088_v11 = vld [vmem:[#allocation16 + $0x3f4] ss:$8 sps:$4 sm:$0xff]   ;;  %v5083_v59 = vld [vmem:[#allocation16 + $0x2f0] ss:$8 sps:$4 sm:$0xff]  }
 0x9f3   : > { %v2912_v34 = vmul.f32 0.044715, %v6085_v23  ;;  %v2914_v30 = vmul.f32 0.044715, %v6087_v19  ;;  %v2857_v1 = vpop.f32.mrb[23].mxu0  ;;  %v2898_v35 = vpop.f32.mrb[23].mxu1  ;;  %3897 = vmatprep.subr.bf16.mxu1 %v5052_v16 }
 0x9f4   : > { %v2913_v36 = vmul.f32 0.044715, %v6089_v45  ;;  %v2915_v26 = vmul.f32 0.044715, %v6091_v27  ;;  %v2904_v14 = vmul.f32 0.5, %v6085_v23  ;;  %v2905_v21 = vmul.f32 0.5, %v6089_v45 }
 0x9f5   : > { %v2920_v37 = vmul.f32 %v2912_v34, %v6085_v23  ;;  %v2922_v39 = vmul.f32 %v2914_v30, %v6087_v19  ;;  %3857 = vmatpush1.bf16.msra.mxu0 %v5047_v18  ;;  %v5086_v18 = vld [vmem:[#allocation16 + $0x3f0] ss:$8 sps:$4 sm:$0xff]  }
 0x9f6   : > { %v2921_v41 = vmul.f32 %v2913_v36, %v6089_v45  ;;  %v2923_v58 = vmul.f32 %v2915_v26, %v6091_v27  ;;  %3898 = vmatpush1.bf16.msra.mxu1 %v5050_v12  ;;  %3858 = vmatprep.subr.bf16.mxu0 %v5055_v28  ;;  %v2907_v12 = vmul.f32 0.5, %v6091_v27 }
 0x9f7   : > { %v2928_v25 = vmul.f32 %v2920_v37, %v6085_v23  ;;  %v2930_v44 = vmul.f32 %v2922_v39, %v6087_v19  ;;  %3899 = vmatprep.subr.bf16.mxu1 %v5058_v29  ;;  %v2906_v29 = vmul.f32 0.5, %v6087_v19 }
 0x9f8   : > { %v2929_v47 = vmul.f32 %v2921_v41, %v6089_v45  ;;  %v2931_v48 = vmul.f32 %v2923_v58, %v6091_v27 }
 0x9f9   : > { %v2936_v49 = vadd.f32 %v2928_v25, %v6085_v23  ;;  %v2938_v50 = vadd.f32 %v2930_v44, %v6087_v19  ;;  %3859 = vmatpush1.bf16.msra.mxu0 %v5053_v40  ;;  %v5120_v19 = vld [vmem:[%s6246_s29 + $0x8] sm:$0xff] }
 0x9fa   : > { %3900 = vmatpush1.bf16.msra.mxu1 %v5056_v42  ;;  %3860 = vmatprep.subr.bf16.mxu0 %v5061_v43  ;;  %v2937_v53 = vadd.f32 %v2929_v47, %v6089_v45  ;;  %v2939_v2 = vadd.f32 %v2931_v48, %v6091_v27  ;;  %v5119_v27 = vld [vmem:[%s6246_s29] sm:$0xff]  ;;  %v3115_v37 = vrot.slane %v5120_v19, %v5970_v33 }
 0x9fb   : > { %3901 = vmatprep.subr.bf16.mxu1 %v5064_v46  ;;  %v2944_v55 = vmul.f32 0.7978846, %v2936_v49  ;;  %v2946_v57 = vmul.f32 0.7978846, %v2938_v50  ;;  %v3111_v26 = vrot.slane %v5119_v27, %v5970_v33 }
 0x9fc   : > { %v2945_v20 = vmul.f32 0.7978846, %v2937_v53  ;;  %v2947_v56 = vmul.f32 0.7978846, %v2939_v2 }
 0x9fd   : > { %3861 = vmatpush1.bf16.msra.mxu0 %v5059_v51  ;;  %5109 = vtanh.f32 %v2944_v55  ;;  %v3920_v55 = vmul.f32 7.483315, %v6052_v9 }
 0x9fe   : > { %3902 = vmatpush1.bf16.msra.mxu1 %v5062_v17  ;;  %3862 = vmatprep.subr.bf16.mxu0 %v5067_v52  ;;  %5111 = vtanh.f32 %v2945_v20 }
 0x9ff   : > { %3903 = vmatprep.subr.bf16.mxu1 %v5070_v54  ;;  %5113 = vtanh.f32 %v2947_v56 }
 0xa00   : > { %5115 = vtanh.f32 %v2946_v57 }
 0xa01   : > { %3863 = vmatpush1.bf16.msra.mxu0 %v5065_v4  ;;  %v3921_v4 = vmul.f32 7.483315, %v6050_v22 }
 0xa02   : > { %3904 = vmatpush1.bf16.msra.mxu1 %v5068_v60  ;;  %3864 = vmatprep.subr.bf16.mxu0 %v5073_v61 }
 0xa03   : > { %3905 = vmatprep.subr.bf16.mxu1 %v5076_v62 }
 0xa05   : > { %3865 = vmatpush1.bf16.msra.mxu0 %v5071_v63 }
 0xa06   : > { %3906 = vmatpush1.bf16.msra.mxu1 %v5074_v0  ;;  %3866 = vmatprep.subr.bf16.mxu0 %v5079_v3 }
 0xa07   : > { %v5110_v10 = vpop.eup %5109  ;;  %3907 = vmatprep.subr.bf16.mxu1 %v5082_v5 }
 0xa08   : > { %v5112_v13 = vpop.eup %5111  ;;  %v2960_v15 = vadd.f32 1.0, %v5110_v10 }
 0xa09   : > { %v5114_v16 = vpop.eup %5113  ;;  %3867 = vmatpush1.bf16.msra.mxu0 %v5077_v6  ;;  %v2961_v32 = vadd.f32 1.0, %v5112_v13 }
 0xa0a   : > { %v5116_v24 = vpop.eup %5115  ;;  %3908 = vmatpush1.bf16.msra.mxu1 %v5080_v7  ;;  %3868 = vmatprep.subr.bf16.mxu0 %v5085_v8  ;;  %v2963_v38 = vadd.f32 1.0, %v5114_v16  ;;  %v2968_v31 = vmul.f32 %v2960_v15, %v2904_v14 }
 0xa0b   : > { %3909 = vmatprep.subr.bf16.mxu1 %v5088_v11  ;;  %v2969_v28 = vmul.f32 %v2961_v32, %v2905_v21  ;;  %v2962_v23 = vadd.f32 1.0, %v5116_v24 }
 0xa0c   : > { %v2971_v34 = vmul.f32 %v2963_v38, %v2907_v12  ;;  %v2976_v35 = vpack.c.bf16 %v2968_v31, %v2968_v31 }
 0xa0d   : > { %3869 = vmatpush1.bf16.msra.mxu0 %v5083_v59  ;;  %v2977_v30 = vpack.c.bf16 %v2969_v28, %v2969_v28  ;;  %v2970_v1 = vmul.f32 %v2962_v23, %v2906_v29 }
 0xa0e   : > { %3910 = vmatpush1.bf16.msra.mxu1 %v5086_v18  ;;  %v2979_v45 = vpack.c.bf16 %v2971_v34, %v2971_v34 }
 0xa0f   : > { %3870 = vmatprep.mubr.bf16.mxu0 %v2977_v30  ;;  %v2978_v36 = vpack.c.bf16 %v2970_v1, %v2970_v1 }
 0xa10   : > { %3911 = vmatprep.mubr.bf16.mxu1 %v2979_v45  ;;  %3871 = vmatmul.mubr.bf16.vlgmr.msra.gmra.mrb[28].mxu0 %v2976_v35 }
 0xa11   : > { %3912 = vmatmul.mubr.bf16.vlgmr.msra.gmra.mrb[28].mxu1 %v2978_v36 }
 0xaa3   : > { %v3790_v39 = vpop.f32.mrb[24].mxu0 }
 0xaa4   : > { %v3791_v40 = vadd.f32 %v3790_v39, %v3111_v26  ;;  %v3831_v41 = vpop.f32.mrb[24].mxu1  ;;  %v3792_v58 = vpop.f32.mrb[25].mxu0 }
 0xaa5   : > { %v3793_v42 = vadd.f32 %v3792_v58, %v3115_v37  ;;  %v3833_v43 = vpop.f32.mrb[25].mxu1  ;;  %v3794_v25 = vpop.f32.mrb[26].mxu0 }
 0xaa6   : > { %v3832_v44 = vadd.f32 %v3831_v41, %v3791_v40  ;;  %v3835_v46 = vpop.f32.mrb[26].mxu1  ;;  %v3795_v47 = vpop.f32.mrb[27].mxu0 }
 0xaa7   : > { %v3834_v48 = vadd.f32 %v3833_v43, %v3793_v42  ;;  %v3836_v49 = vpop.f32.mrb[27].mxu1 }
 0xae3   : > { %v3872_v50 = vpop.f32.mrb[28].mxu0 }
 0xae4   : > { %v3873_v51 = vadd.f32 %v3872_v50, %v3832_v44  ;;  %v3913_v17 = vpop.f32.mrb[28].mxu1  ;;  %v3874_v52 = vpop.f32.mrb[29].mxu0 }
 0xae5   : > { %v3875_v53 = vadd.f32 %v3874_v52, %v3834_v48  ;;  %v3915_v33 = vpop.f32.mrb[29].mxu1  ;;  %v3876_v2 = vpop.f32.mrb[30].mxu0 }
 0xae6   : > { %v3914_v54 = vadd.f32 %v3913_v17, %v3873_v51  ;;  %v3917_v20 = vpop.f32.mrb[30].mxu1  ;;  %v3877_v56 = vpop.f32.mrb[31].mxu0 }
 0xae7   : > { %v3916_v57 = vadd.f32 %v3915_v33, %v3875_v53  ;;  %v3918_v60 = vpop.f32.mrb[31].mxu1 }
 0xae8   : > { %v3922_v61 = vadd.f32 %v3920_v55, %v3914_v54 }
 0xae9   : > { %v3923_v62 = vadd.f32 %v3921_v4, %v3916_v57 }
 0xaeb   : > { %v4544_v63 = vpack.c.bf16 %v3923_v62, %v3922_v61 }
 0xaed   : > { %3932 = vst [vmem:[%s556_s20] sm:$0xff] %v4544_v63 }
 0xaee   : > { %5392 = shalt.err (!%p5389_p4)
}
 0xaef   : > { %s5393_s14 = scalar_lea.hbm %s6128_s1, 128  ;;  %s5397_s11 = scalar_lea.hbm %s6249_s27, 256 }
 0xaf0   : > { %p5394_p13 = scmp.ne.s32.totalorder %s6128_s1, %s5393_s14  ;;  %p5398_p10 = scmp.lt.u32.totalorder %s6128_s1, %s6249_s27 }
 0xaf1   : > { %p5399_p11 = scmp.lt.u32.totalorder %s5397_s11, %s5393_s14  ;;  %p5401_p9 = scmp.lt.u32.totalorder %s5393_s14, %s6128_s1 }
 0xaf2   : > { %p5395_p7 = pnand %p5394_p13, %p6250_p6 }
 0xaf3   : > { %p5400_p8 = por %p5399_p11, %p5398_p10 }
 0xaf4   : > { %p5396_p1 = pneg %p5395_p7 }
 0xaf5   : > { %p5402_p12 = por %p5401_p9, %p5400_p8 }
 0xaf7   : > { %p5403_p5 = pnand %p5402_p12, %p5396_p1 }
 0xaf9   : > { %5406 = shalt.err (!%p5403_p5)
}
 0xafa   : > { %4608 = dma.vmem_to_hbm [thread:$0]  (%p6250_p6), %s6130_s28, 128, %s6128_s1, %s3934_s17  }
 0xafb PF: > { %s6251_s13 = sld [smem:[#allocation24_spill]]  ;;  %s6252_s9 = sld [smem:[#allocation29_spill]] }
 0xafc   : > { %s6253_s5 = sld [smem:[#allocation25_spill]] }
 0xb01   : > { %s3960_s8 = sand.u32 1, %s6251_s13   ;;  %p6254_p0 = scmp.ne.s32.totalorder %s6252_s9, 0 }
 0xb02   : > { %p6255_p2 = scmp.ge.s32.totalorder %s6253_s5, 2  ;;  %s3961_s12 = scalar_lea.sflag [#allocation4], %s3960_s8 }
 0xb04   : > { %p4640_p3 = pnand %p6255_p2, %p6254_p0 }
 0xb06   : > { %5444 = dma.done.wait (!%p4640_p3), %s3961_s12, 128  }
 0xb07   : > { %5446 = vsyncadd (!%p4640_p3), %s3961_s12, 4294967168  ;;  %s6256_s20 = sld [smem:[#allocation26_spill]]  ;;  %s6257_s26 = sld [smem:[#allocation27_spill]] }
 0xb08   : > { %s6258_s17 = smov %s5453_s18  ;;  %s6259_s18 = smov %s5457_s19 }
 0xb0d   : > { %p30_p4 = scmp.ge.s32.totalorder %s6256_s20, 4   ;;  %s6260_s19 = smov %s6257_s26 }
 0xb0f   :  { %32 = sbr.rel (!%p30_p4) target bundleno = 18 (0x12), region = 157 }
 0xb16   :  { %3966 = vsyncpa [#allocation3], 1 }
 0xb17   :  { %3968 = vsyncpa [#allocation3 + $0x1], 1 }
 0xb18   :  { %3969 = vsyncpa [#allocation6], 1 }
 0xb19   :  { %3971 = vsyncpa [#allocation6 + $0x1], 1 }
 0xb1a   :  { %3972 = vsyncpa [#allocation9], 1 }
 0xb1b   :  { %3973 = vsyncpa [#allocation12], 1 }
 0xb1c   :  { %3974 = vsyncpa [#allocation15], 1 }
 0xb1d   :  { %3975 = vsyncpa [#allocation4], 1 }
 0xb1e   :  { %3977 = vsyncpa [#allocation4 + $0x1], 1 }

</bundles_post_ra>
